<compile_context>
chip_gen: v7x
topology: tpu7x:2x2x1
jax: 0.10.0
libtpu: 0.0.40
codegen_flags: <defaults>
</compile_context>

<pallas_src>
import functools
import math

import numpy as np
import jax
import jax.numpy as jnp
from jax import lax
from jax.experimental import pallas as pl
from jax.experimental.pallas import tpu as pltpu


# --------------------------------------------------------------------------- #
# Fused Pallas kernel
# --------------------------------------------------------------------------- #
def _leaky(x):
    return jnp.where(x >= 0.0, x, x * 0.2)


def _conv_paired(xp2, w_ref, b_ref, Ho, Wo, C):
    """k=4, s=2, p=1 conv of one image as 4 deep-K matmuls.

    xp2   : (2*(Ho+1), Wo+1, 2*C)  padded input with adjacent column pairs folded
                                   into the channel axis: xp2[i, j, rw*C+c] = xpad[i, 2j+rw, c]
    w_ref : (4, 4*C, Cout) bf16    packed taps: [2*dh+dw, rh*2C + rw*C + ci, co]
    b_ref : (1, Cout)      f32
    returns (Ho*Wo, Cout) f32 after bias + LeakyReLU(0.2).
    """
    Hs, Ws = Ho + 1, Wo + 1
    xp3 = xp2.reshape(Hs, 2, Ws, 2 * C)                         # split row pairs (free)
    rows = jnp.concatenate([xp3[:, 0], xp3[:, 1]], axis=-1)     # (Hs, Ws, 4C)
    rows = rows.astype(jnp.bfloat16)
    acc = None
    for dh in range(2):
        for dw in range(2):
            lhs = rows[dh:dh + Ho, dw:dw + Wo, :].reshape(Ho * Wo, 4 * C)
            part = jnp.dot(lhs, w_ref[2 * dh + dw],
                           preferred_element_type=jnp.float32)
            acc = part if acc is None else acc + part
    return _leaky(acc + b_ref[...])


def _encoder_kernel(*refs, conv_meta, latentdim):
    """Whole Encoder forward for one batch element (grid step)."""
    n = len(conv_meta)
    tex_ref, verts_ref = refs[0], refs[1]
    conv_refs = refs[2:2 + 2 * n]                      # (w4, bias) per conv layer
    wv_ref, bv_ref, w2_ref, b2_ref, wh_ref, bh_ref = refs[2 + 2 * n:8 + 2 * n]
    z_ref, kld_ref = refs[8 + 2 * n:10 + 2 * n]
    pad_refs = refs[10 + 2 * n:]                       # padded inter-layer scratch

    # ---- texbranch1: conv stack, everything stays in VMEM ------------------
    Ho, Wo, Cin, Cout = conv_meta[0]
    xp2 = tex_ref[0]                                   # (2*(Ho+1), Wo+1, 2*Cin) f32
    y = _conv_paired(xp2, conv_refs[0], conv_refs[1], Ho, Wo, Cin)

    for l in range(1, n):
        pHo, pWo, _, pCout = conv_meta[l - 1]
        pad = pad_refs[l - 1]                          # (pHo+2, pWo+2, pCout) f32
        pad[...] = jnp.zeros(pad.shape, pad.dtype)     # zero borders
        pad[pl.ds(1, pHo), pl.ds(1, pWo), :] = y.reshape(pHo, pWo, pCout)
        Ho, Wo, Cin, Cout = conv_meta[l]
        # re-view the padded slab with adjacent column pairs folded into lanes
        xp2 = pad[...].reshape(2 * (Ho + 1), Wo + 1, 2 * Cin)
        y = _conv_paired(xp2, conv_refs[2 * l], conv_refs[2 * l + 1], Ho, Wo, Cin)

    # ---- tail: texbranch2 + vertbranch + fused mu/logstd head + KL ---------
    texfeat = Ho * Wo * Cout
    t_flat = y.reshape(1, texfeat).astype(jnp.bfloat16)
    xt = _leaky(jnp.dot(t_flat, w2_ref[...],
                        preferred_element_type=jnp.float32) + b2_ref[...])
    xv = _leaky(jnp.dot(verts_ref[0].astype(jnp.bfloat16), wv_ref[...],
                        preferred_element_type=jnp.float32) + bv_ref[...])
    xc = jnp.concatenate([xv, xt], axis=-1).astype(jnp.bfloat16)   # (1, 512)
    mls = jnp.dot(xc, wh_ref[...],
                  preferred_element_type=jnp.float32) + bh_ref[...]  # (1, 2L)

    mu = mls[:, :latentdim] * 0.1
    logstd = mls[:, latentdim:] * 0.01
    z_ref[0] = mu                                      # eval mode: z = mu
    kld = -0.5 - logstd + 0.5 * mu * mu + 0.5 * jnp.exp(2.0 * logstd)
    kld_ref[0] = jnp.mean(kld, axis=-1, keepdims=True)


# --------------------------------------------------------------------------- #
# Forward wrapper (single fused pallas_call)
# --------------------------------------------------------------------------- #
def encoder_forward(params, verts, texture_nchw, losslist, *, conv_meta, latentdim):
    assert losslist is not None
    B = verts.shape[0]
    n = len(conv_meta)

    # Only host-side glue: NCHW->NHWC, pad by 1, fold column pairs into channels.
    Ho0, Wo0, Cin0, _ = conv_meta[0]
    t = jnp.transpose(texture_nchw, (0, 2, 3, 1))
    t = jnp.pad(t, ((0, 0), (1, 1), (1, 1), (0, 0)))
    t = t.reshape(B, 2 * (Ho0 + 1), Wo0 + 1, 2 * Cin0)          # (B, 34, 17, 6)

    v = verts.reshape(B, 1, -1)                                  # (B, 1, vertsize)

    conv_args = []
    for (w4, bias) in params["texbranch1"]:
        conv_args += [w4, bias]
    wv, bv = params["vertbranch"]
    w2, b2 = params["texbranch2"]
    wh, bh = params["head"]
    inputs = [t, v] + conv_args + [wv, bv, w2, b2, wh, bh]

    def _const(nd):
        return lambda b_, _nd=nd: (0,) * _nd

    in_specs = [
        pl.BlockSpec((1,) + t.shape[1:], lambda b_: (b_, 0, 0, 0)),
        pl.BlockSpec((1,) + v.shape[1:], lambda b_: (b_, 0, 0)),
    ]
    for a in inputs[2:]:
        in_specs.append(pl.BlockSpec(a.shape, _const(a.ndim)))

    out_shape = (
        jax.ShapeDtypeStruct((B, 1, latentdim), jnp.float32),
        jax.ShapeDtypeStruct((B, 1, 1), jnp.float32),
    )
    out_specs = (
        pl.BlockSpec((1, 1, latentdim), lambda b_: (b_, 0, 0)),
        pl.BlockSpec((1, 1, 1), lambda b_: (b_, 0, 0)),
    )
    scratch_shapes = [
        pltpu.VMEM((conv_meta[l][0] + 2, conv_meta[l][1] + 2, conv_meta[l][3]),
                   jnp.float32)
        for l in range(n - 1)
    ]

    z, kld = pl.pallas_call(
        functools.partial(_encoder_kernel, conv_meta=conv_meta, latentdim=latentdim),
        out_shape=out_shape,
        grid=(B,),
        in_specs=in_specs,
        out_specs=out_specs,
        scratch_shapes=scratch_shapes,
        compiler_params=pltpu.CompilerParams(dimension_semantics=("parallel",)),
    )(*inputs)

    # TODO(synk): training-mode reparameterization (mu + exp(logstd)*randn) not
    # implemented; eval path (z = mu) only.
    losses = {}
    if "kldiv" in losslist:
        losses["kldiv"] = kld[:, 0, 0]
    return {"encoding": z[:, 0, :]}, losses


# --------------------------------------------------------------------------- #
# Parameter setup (deterministic, synthetic) — ELR gain + 'demod' normalization
# --------------------------------------------------------------------------- #
def _demod(w, gain, axes, eps=1e-8):
    wg = w * gain
    return wg * jax.lax.rsqrt(jnp.sum(wg * wg, axis=axes, keepdims=True) + eps)


def init_encoder_params(key, *, latentdim, hiq, texsize, vertsize, demod=True):
    cm = 2 if hiq else 1
    nlayers = int(np.log2(texsize)) - 2
    keys = iter(jax.random.split(key, 2 * nlayers + 8))
    params, ref = {}, {}

    # vertbranch = LinearELR(vertsize, 256, norm='demod', act=LeakyReLU(0.2))
    w = jax.random.normal(next(keys), (256, vertsize), jnp.float32)
    b = jax.random.normal(next(keys), (256,), jnp.float32) * 0.1
    w = _demod(w, math.sqrt(2.0 / vertsize), axes=(1,))
    ref["vert"] = (w, b)
    params["vertbranch"] = (w.T.astype(jnp.bfloat16),
                            b.reshape(1, 256).astype(jnp.float32))

    # texbranch1: replicate the torch channel bookkeeping
    chout, chin = 128 * cm, 128 * cm
    conv_shapes = []
    for i in range(nlayers):
        if i == nlayers - 1:
            chin = 3
        conv_shapes.append((chin, chout))
        if chin == chout:
            chin = chout // 2
        else:
            chout = chin
    conv_shapes = conv_shapes[::-1]                 # nn.Sequential(*layers[::-1])

    def _pad128(c):
        return int(np.ceil(c / 128) * 128)

    convs, ref_convs, conv_meta = [], [], []
    H = texsize
    for i, (cin, cout) in enumerate(conv_shapes):
        w = jax.random.normal(next(keys), (cout, cin, 4, 4), jnp.float32)
        b = jax.random.normal(next(keys), (cout,), jnp.float32) * 0.1
        gain = math.sqrt(2.0 / (cin * 16))
        wd = _demod(w, gain, axes=(1, 2, 3)) if demod else w * gain
        ref_convs.append((wd, b))

        cin_p = cin if i == 0 else conv_meta[i - 1][3]       # match prev padded cout
        cout_p = cout if i == nlayers - 1 else _pad128(cout)  # lane-dense intermediates

        wpad = jnp.zeros((cout_p, cin_p, 4, 4), jnp.float32).at[:cout, :cin].set(wd)
        bpad = jnp.zeros((1, cout_p), jnp.float32).at[0, :cout].set(b)

        # (co, ci, kh, kw) -> (4, 4*cin_p, cout_p): tap index 2*dh+dw,
        # contraction index rh*(2*cin_p) + rw*cin_p + ci.
        w4 = wpad.reshape(cout_p, cin_p, 2, 2, 2, 2)          # (co, ci, dh, rh, dw, rw)
        w4 = jnp.transpose(w4, (2, 4, 3, 5, 1, 0))            # (dh, dw, rh, rw, ci, co)
        w4 = w4.reshape(4, 4 * cin_p, cout_p).astype(jnp.bfloat16)

        H = H // 2
        conv_meta.append((H, H, cin_p, cout_p))
        convs.append((w4, bpad))
    params["texbranch1"] = convs
    ref["convs"] = ref_convs

    # texbranch2 = LinearELR(cm*128*4*4, 256, norm='demod', act=LeakyReLU(0.2))
    texfeat = cm * 128 * 4 * 4
    last_cout = conv_shapes[-1][1]
    w = jax.random.normal(next(keys), (256, texfeat), jnp.float32)
    b = jax.random.normal(next(keys), (256,), jnp.float32) * 0.1
    w = _demod(w, math.sqrt(2.0 / texfeat), axes=(1,))
    ref["tex2"] = (w, b)
    # Fold the torch NCHW `.reshape(B, -1)` into a row permutation so the NHWC
    # flattened conv output is consumed directly (mathematically identical).
    perm = np.arange(texfeat).reshape(last_cout, 4, 4).transpose(1, 2, 0).reshape(-1)
    params["texbranch2"] = (w.T[perm].astype(jnp.bfloat16),
                            b.reshape(1, 256).astype(jnp.float32))

    # mu / logstd = LinearELR(512, latentdim) fused into one lane-dense head.
    sc = math.sqrt(1.0 / 512)
    wmu = jax.random.normal(next(keys), (latentdim, 512), jnp.float32) * sc
    bmu = jax.random.normal(next(keys), (latentdim,), jnp.float32) * 0.1
    wls = jax.random.normal(next(keys), (latentdim, 512), jnp.float32) * sc
    bls = jax.random.normal(next(keys), (latentdim,), jnp.float32) * 0.1
    ref["mu"], ref["logstd"] = (wmu, bmu), (wls, bls)
    wh = jnp.concatenate([wmu.T, wls.T], axis=1)              # (512, 2L)
    bh = jnp.concatenate([bmu, bls]).reshape(1, 2 * latentdim)
    params["head"] = (wh.astype(jnp.bfloat16), bh.astype(jnp.float32))

    return params, tuple(conv_meta), ref


# --------------------------------------------------------------------------- #
# Pure-JAX f32 reference (for a tolerance check)
# --------------------------------------------------------------------------- #
def reference_forward(ref, verts, texture_nchw):
    B = verts.shape[0]
    x = texture_nchw
    for (w, b) in ref["convs"]:
        x = lax.conv_general_dilated(x, w, window_strides=(2, 2),
                                     padding=((1, 1), (1, 1)),
                                     dimension_numbers=("NCHW", "OIHW", "NCHW"))
        x = x + b.reshape(1, -1, 1, 1)
        x = jnp.where(x >= 0.0, x, 0.2 * x)
    t = x.reshape(B, -1)
    w2, b2 = ref["tex2"]
    t = t @ w2.T + b2
    t = jnp.where(t >= 0.0, t, 0.2 * t)
    wv, bv = ref["vert"]
    v = verts.reshape(B, -1) @ wv.T + bv
    v = jnp.where(v >= 0.0, v, 0.2 * v)
    xc = jnp.concatenate([v, t], axis=1)
    wmu, bmu = ref["mu"]
    wls, bls = ref["logstd"]
    mu = (xc @ wmu.T + bmu) * 0.1
    logstd = (xc @ wls.T + bls) * 0.01
    kld = jnp.mean(-0.5 - logstd + 0.5 * mu ** 2 + 0.5 * jnp.exp(2.0 * logstd), axis=-1)
    return mu, kld


# --------------------------------------------------------------------------- #
if __name__ == "__main__":
    key = jax.random.PRNGKey(0)
    kp, kv, kt = jax.random.split(key, 3)

    batch, latentdim, texsize, nverts = 2, 64, 32, 64
    vertsize = nverts * 3

    params, conv_meta, ref = init_encoder_params(
        kp, latentdim=latentdim, hiq=False, texsize=texsize,
        vertsize=vertsize, demod=True)

    verts = jax.random.normal(kv, (batch, nverts, 3), jnp.float32)
    texture = jax.random.normal(kt, (batch, 3, texsize, texsize), jnp.float32)

    fwd = jax.jit(functools.partial(encoder_forward, losslist=("kldiv",),
                                    conv_meta=conv_meta, latentdim=latentdim))
    out, losses = fwd(params, verts, texture)
    z = jax.block_until_ready(out["encoding"])
    kld = jax.block_until_ready(losses["kldiv"])

    assert z.shape == (batch, latentdim)
    assert kld.shape == (batch,)
    assert bool(jnp.all(jnp.isfinite(z))) and bool(jnp.all(jnp.isfinite(kld)))

    # Tolerance check against the pure-JAX reference (bf16 matmul operands).
    z_ref, kld_ref = reference_forward(ref, verts, texture)
    np.testing.assert_allclose(np.asarray(z), np.asarray(z_ref), rtol=0.1, atol=0.02)
    np.testing.assert_allclose(np.asarray(kld), np.asarray(kld_ref), rtol=0.2, atol=1e-3)

    print("KERNEL_OK")
</pallas_src>

<mosaic_0001>
module attributes {stable_mosaic.version = 11 : i64} {
  func.func @_encoder_kernel(%arg0: i32, %arg1: memref<1x34x17x6xf32, #tpu.memory_space<vmem>>, %arg2: memref<1x1x192xf32, #tpu.memory_space<vmem>>, %arg3: memref<4x12x128xbf16, #tpu.memory_space<vmem>>, %arg4: memref<1x128xf32, #tpu.memory_space<vmem>>, %arg5: memref<4x512x128xbf16, #tpu.memory_space<vmem>>, %arg6: memref<1x128xf32, #tpu.memory_space<vmem>>, %arg7: memref<4x512x128xbf16, #tpu.memory_space<vmem>>, %arg8: memref<1x128xf32, #tpu.memory_space<vmem>>, %arg9: memref<192x256xbf16, #tpu.memory_space<vmem>>, %arg10: memref<1x256xf32, #tpu.memory_space<vmem>>, %arg11: memref<2048x256xbf16, #tpu.memory_space<vmem>>, %arg12: memref<1x256xf32, #tpu.memory_space<vmem>>, %arg13: memref<512x128xbf16, #tpu.memory_space<vmem>>, %arg14: memref<1x128xf32, #tpu.memory_space<vmem>>, %arg15: memref<1x1x64xf32, #tpu.memory_space<vmem>>, %arg16: memref<1x1x1xf32, #tpu.memory_space<vmem>>, %arg17: memref<18x18x128xf32, #tpu.memory_space<vmem>>, %arg18: memref<10x10x128xf32, #tpu.memory_space<vmem>>) attributes {dimension_semantics = [#tpu.dimension_semantics<parallel>], iteration_bounds = array<i64: 2>, scalar_prefetch = 0 : i64, scratch_operands = 2 : i64, tpu.core_type = #tpu.core_type<tc>, window_params = [{transform_indices = @transform_0, window_bounds = array<i64: 1, 34, 17, 6>}, {transform_indices = @transform_1, window_bounds = array<i64: 1, 1, 192>}, {pipeline_mode = #tpu.pipeline_mode<synchronous>, transform_indices = @transform_2, window_bounds = array<i64: 4, 12, 128>}, {pipeline_mode = #tpu.pipeline_mode<synchronous>, transform_indices = @transform_3, window_bounds = array<i64: 1, 128>}, {pipeline_mode = #tpu.pipeline_mode<synchronous>, transform_indices = @transform_4, window_bounds = array<i64: 4, 512, 128>}, {pipeline_mode = #tpu.pipeline_mode<synchronous>, transform_indices = @transform_5, window_bounds = array<i64: 1, 128>}, {pipeline_mode = #tpu.pipeline_mode<synchronous>, transform_indices = @transform_6, window_bounds = array<i64: 4, 512, 128>}, {pipeline_mode = #tpu.pipeline_mode<synchronous>, transform_indices = @transform_7, window_bounds = array<i64: 1, 128>}, {pipeline_mode = #tpu.pipeline_mode<synchronous>, transform_indices = @transform_8, window_bounds = array<i64: 192, 256>}, {pipeline_mode = #tpu.pipeline_mode<synchronous>, transform_indices = @transform_9, window_bounds = array<i64: 1, 256>}, {pipeline_mode = #tpu.pipeline_mode<synchronous>, transform_indices = @transform_10, window_bounds = array<i64: 2048, 256>}, {pipeline_mode = #tpu.pipeline_mode<synchronous>, transform_indices = @transform_11, window_bounds = array<i64: 1, 256>}, {pipeline_mode = #tpu.pipeline_mode<synchronous>, transform_indices = @transform_12, window_bounds = array<i64: 512, 128>}, {pipeline_mode = #tpu.pipeline_mode<synchronous>, transform_indices = @transform_13, window_bounds = array<i64: 1, 128>}, {transform_indices = @transform_14, window_bounds = array<i64: 1, 1, 64>}, {transform_indices = @transform_15, window_bounds = array<i64: 1, 1, 1>}]} {
    %c0 = arith.constant 0 : index
    %c0_0 = arith.constant 0 : index
    %c0_1 = arith.constant 0 : index
    %c0_2 = arith.constant 0 : index
    %0 = vector.load %arg1[%c0, %c0_0, %c0_1, %c0_2] : memref<1x34x17x6xf32, #tpu.memory_space<vmem>>, vector<1x34x17x6xf32>
    %1 = vector.shape_cast %0 : vector<1x34x17x6xf32> to vector<34x17x6xf32>
    %2 = vector.shape_cast %1 : vector<34x17x6xf32> to vector<17x2x17x6xf32>
    %3 = vector.extract_strided_slice %2 {offsets = [0, 0, 0, 0], sizes = [17, 1, 17, 6], strides = [1, 1, 1, 1]} : vector<17x2x17x6xf32> to vector<17x1x17x6xf32>
    %4 = vector.shape_cast %3 : vector<17x1x17x6xf32> to vector<17x17x6xf32>
    %5 = vector.extract_strided_slice %2 {offsets = [0, 1, 0, 0], sizes = [17, 1, 17, 6], strides = [1, 1, 1, 1]} : vector<17x2x17x6xf32> to vector<17x1x17x6xf32>
    %6 = vector.shape_cast %5 : vector<17x1x17x6xf32> to vector<17x17x6xf32>
    %7 = tpu.concatenate %4, %6 in 2 : vector<17x17x6xf32>, vector<17x17x6xf32> -> vector<17x17x12xf32>
    %8 = arith.truncf %7 : vector<17x17x12xf32> to vector<17x17x12xbf16>
    %9 = vector.extract_strided_slice %8 {offsets = [0, 0, 0], sizes = [16, 16, 12], strides = [1, 1, 1]} : vector<17x17x12xbf16> to vector<16x16x12xbf16>
    %10 = vector.shape_cast %9 : vector<16x16x12xbf16> to vector<256x12xbf16>
    %c0_3 = arith.constant 0 : index
    %c0_4 = arith.constant 0 : index
    %c0_5 = arith.constant 0 : index
    %11 = vector.load %arg3[%c0_3, %c0_4, %c0_5] : memref<4x12x128xbf16, #tpu.memory_space<vmem>>, vector<1x12x128xbf16>
    %12 = vector.shape_cast %11 : vector<1x12x128xbf16> to vector<12x128xbf16>
    %cst = arith.constant dense<0.000000e+00> : vector<256x128xf32>
    %13 = tpu.matmul %10, %12, %cst {dimension_numbers = #tpu.dot_dimension_numbers<[1], [0], [0], [1], [0, 0, 1, 1], [], []>} : vector<256x12xbf16>, vector<12x128xbf16>, vector<256x128xf32> -> vector<256x128xf32>
    %14 = vector.extract_strided_slice %8 {offsets = [0, 1, 0], sizes = [16, 16, 12], strides = [1, 1, 1]} : vector<17x17x12xbf16> to vector<16x16x12xbf16>
    %15 = vector.shape_cast %14 : vector<16x16x12xbf16> to vector<256x12xbf16>
    %c1 = arith.constant 1 : index
    %c0_6 = arith.constant 0 : index
    %c0_7 = arith.constant 0 : index
    %16 = vector.load %arg3[%c1, %c0_6, %c0_7] : memref<4x12x128xbf16, #tpu.memory_space<vmem>>, vector<1x12x128xbf16>
    %17 = vector.shape_cast %16 : vector<1x12x128xbf16> to vector<12x128xbf16>
    %cst_8 = arith.constant dense<0.000000e+00> : vector<256x128xf32>
    %18 = tpu.matmul %15, %17, %cst_8 {dimension_numbers = #tpu.dot_dimension_numbers<[1], [0], [0], [1], [0, 0, 1, 1], [], []>} : vector<256x12xbf16>, vector<12x128xbf16>, vector<256x128xf32> -> vector<256x128xf32>
    %19 = arith.addf %13, %18 : vector<256x128xf32>
    %20 = vector.extract_strided_slice %8 {offsets = [1, 0, 0], sizes = [16, 16, 12], strides = [1, 1, 1]} : vector<17x17x12xbf16> to vector<16x16x12xbf16>
    %21 = vector.shape_cast %20 : vector<16x16x12xbf16> to vector<256x12xbf16>
    %c2 = arith.constant 2 : index
    %c0_9 = arith.constant 0 : index
    %c0_10 = arith.constant 0 : index
    %22 = vector.load %arg3[%c2, %c0_9, %c0_10] : memref<4x12x128xbf16, #tpu.memory_space<vmem>>, vector<1x12x128xbf16>
    %23 = vector.shape_cast %22 : vector<1x12x128xbf16> to vector<12x128xbf16>
    %cst_11 = arith.constant dense<0.000000e+00> : vector<256x128xf32>
    %24 = tpu.matmul %21, %23, %cst_11 {dimension_numbers = #tpu.dot_dimension_numbers<[1], [0], [0], [1], [0, 0, 1, 1], [], []>} : vector<256x12xbf16>, vector<12x128xbf16>, vector<256x128xf32> -> vector<256x128xf32>
    %25 = arith.addf %19, %24 : vector<256x128xf32>
    %26 = vector.extract_strided_slice %8 {offsets = [1, 1, 0], sizes = [16, 16, 12], strides = [1, 1, 1]} : vector<17x17x12xbf16> to vector<16x16x12xbf16>
    %27 = vector.shape_cast %26 : vector<16x16x12xbf16> to vector<256x12xbf16>
    %c3 = arith.constant 3 : index
    %c0_12 = arith.constant 0 : index
    %c0_13 = arith.constant 0 : index
    %28 = vector.load %arg3[%c3, %c0_12, %c0_13] : memref<4x12x128xbf16, #tpu.memory_space<vmem>>, vector<1x12x128xbf16>
    %29 = vector.shape_cast %28 : vector<1x12x128xbf16> to vector<12x128xbf16>
    %cst_14 = arith.constant dense<0.000000e+00> : vector<256x128xf32>
    %30 = tpu.matmul %27, %29, %cst_14 {dimension_numbers = #tpu.dot_dimension_numbers<[1], [0], [0], [1], [0, 0, 1, 1], [], []>} : vector<256x12xbf16>, vector<12x128xbf16>, vector<256x128xf32> -> vector<256x128xf32>
    %31 = arith.addf %25, %30 : vector<256x128xf32>
    %c0_15 = arith.constant 0 : index
    %c0_16 = arith.constant 0 : index
    %32 = vector.load %arg4[%c0_15, %c0_16] : memref<1x128xf32, #tpu.memory_space<vmem>>, vector<1x128xf32>
    %33 = vector.broadcast %32 : vector<1x128xf32> to vector<256x128xf32>
    %34 = arith.addf %31, %33 : vector<256x128xf32>
    %cst_17 = arith.constant 0.000000e+00 : f32
    %35 = vector.broadcast %cst_17 : f32 to vector<256x128xf32>
    %36 = arith.cmpf oge, %34, %35 : vector<256x128xf32>
    %cst_18 = arith.constant 2.000000e-01 : f32
    %37 = vector.broadcast %cst_18 : f32 to vector<256x128xf32>
    %38 = arith.mulf %34, %37 : vector<256x128xf32>
    %39 = arith.select %36, %34, %38 : vector<256x128xi1>, vector<256x128xf32>
    %cst_19 = arith.constant 0.000000e+00 : f32
    %40 = vector.broadcast %cst_19 : f32 to vector<18x18x128xf32>
    %c0_20 = arith.constant 0 : index
    %c0_21 = arith.constant 0 : index
    %c0_22 = arith.constant 0 : index
    %41 = vector.load %arg17[%c0_20, %c0_21, %c0_22] : memref<18x18x128xf32, #tpu.memory_space<vmem>>, vector<18x18x128xf32>
    tpu.vector_store %arg17[%c0_20, %c0_21, %c0_22], %40 {strides = array<i32>} : memref<18x18x128xf32, #tpu.memory_space<vmem>>, vector<18x18x128xf32>,
    %42 = vector.shape_cast %39 : vector<256x128xf32> to vector<16x16x128xf32>
    %c1_23 = arith.constant 1 : index
    %c1_24 = arith.constant 1 : index
    %c0_25 = arith.constant 0 : index
    %43 = vector.load %arg17[%c1_23, %c1_24, %c0_25] : memref<18x18x128xf32, #tpu.memory_space<vmem>>, vector<16x16x128xf32>
    tpu.vector_store %arg17[%c1_23, %c1_24, %c0_25], %42 {strides = array<i32>} : memref<18x18x128xf32, #tpu.memory_space<vmem>>, vector<16x16x128xf32>,
    %c0_26 = arith.constant 0 : index
    %c0_27 = arith.constant 0 : index
    %c0_28 = arith.constant 0 : index
    %44 = vector.load %arg17[%c0_26, %c0_27, %c0_28] : memref<18x18x128xf32, #tpu.memory_space<vmem>>, vector<18x18x128xf32>
    %45 = vector.shape_cast %44 : vector<18x18x128xf32> to vector<18x9x256xf32>
    %46 = vector.shape_cast %45 : vector<18x9x256xf32> to vector<9x2x9x256xf32>
    %47 = vector.extract_strided_slice %46 {offsets = [0, 0, 0, 0], sizes = [9, 1, 9, 256], strides = [1, 1, 1, 1]} : vector<9x2x9x256xf32> to vector<9x1x9x256xf32>
    %48 = vector.shape_cast %47 : vector<9x1x9x256xf32> to vector<9x9x256xf32>
    %49 = vector.extract_strided_slice %46 {offsets = [0, 1, 0, 0], sizes = [9, 1, 9, 256], strides = [1, 1, 1, 1]} : vector<9x2x9x256xf32> to vector<9x1x9x256xf32>
    %50 = vector.shape_cast %49 : vector<9x1x9x256xf32> to vector<9x9x256xf32>
    %51 = tpu.concatenate %48, %50 in 2 : vector<9x9x256xf32>, vector<9x9x256xf32> -> vector<9x9x512xf32>
    %52 = arith.truncf %51 : vector<9x9x512xf32> to vector<9x9x512xbf16>
    %53 = vector.extract_strided_slice %52 {offsets = [0, 0, 0], sizes = [8, 8, 512], strides = [1, 1, 1]} : vector<9x9x512xbf16> to vector<8x8x512xbf16>
    %54 = vector.shape_cast %53 : vector<8x8x512xbf16> to vector<64x512xbf16>
    %c0_29 = arith.constant 0 : index
    %c0_30 = arith.constant 0 : index
    %c0_31 = arith.constant 0 : index
    %55 = vector.load %arg5[%c0_29, %c0_30, %c0_31] : memref<4x512x128xbf16, #tpu.memory_space<vmem>>, vector<1x512x128xbf16>
    %56 = vector.shape_cast %55 : vector<1x512x128xbf16> to vector<512x128xbf16>
    %cst_32 = arith.constant dense<0.000000e+00> : vector<64x128xf32>
    %57 = tpu.matmul %54, %56, %cst_32 {dimension_numbers = #tpu.dot_dimension_numbers<[1], [0], [0], [1], [0, 0, 1, 1], [], []>} : vector<64x512xbf16>, vector<512x128xbf16>, vector<64x128xf32> -> vector<64x128xf32>
    %58 = vector.extract_strided_slice %52 {offsets = [0, 1, 0], sizes = [8, 8, 512], strides = [1, 1, 1]} : vector<9x9x512xbf16> to vector<8x8x512xbf16>
    %59 = vector.shape_cast %58 : vector<8x8x512xbf16> to vector<64x512xbf16>
    %c1_33 = arith.constant 1 : index
    %c0_34 = arith.constant 0 : index
    %c0_35 = arith.constant 0 : index
    %60 = vector.load %arg5[%c1_33, %c0_34, %c0_35] : memref<4x512x128xbf16, #tpu.memory_space<vmem>>, vector<1x512x128xbf16>
    %61 = vector.shape_cast %60 : vector<1x512x128xbf16> to vector<512x128xbf16>
    %cst_36 = arith.constant dense<0.000000e+00> : vector<64x128xf32>
    %62 = tpu.matmul %59, %61, %cst_36 {dimension_numbers = #tpu.dot_dimension_numbers<[1], [0], [0], [1], [0, 0, 1, 1], [], []>} : vector<64x512xbf16>, vector<512x128xbf16>, vector<64x128xf32> -> vector<64x128xf32>
    %63 = arith.addf %57, %62 : vector<64x128xf32>
    %64 = vector.extract_strided_slice %52 {offsets = [1, 0, 0], sizes = [8, 8, 512], strides = [1, 1, 1]} : vector<9x9x512xbf16> to vector<8x8x512xbf16>
    %65 = vector.shape_cast %64 : vector<8x8x512xbf16> to vector<64x512xbf16>
    %c2_37 = arith.constant 2 : index
    %c0_38 = arith.constant 0 : index
    %c0_39 = arith.constant 0 : index
    %66 = vector.load %arg5[%c2_37, %c0_38, %c0_39] : memref<4x512x128xbf16, #tpu.memory_space<vmem>>, vector<1x512x128xbf16>
    %67 = vector.shape_cast %66 : vector<1x512x128xbf16> to vector<512x128xbf16>
    %cst_40 = arith.constant dense<0.000000e+00> : vector<64x128xf32>
    %68 = tpu.matmul %65, %67, %cst_40 {dimension_numbers = #tpu.dot_dimension_numbers<[1], [0], [0], [1], [0, 0, 1, 1], [], []>} : vector<64x512xbf16>, vector<512x128xbf16>, vector<64x128xf32> -> vector<64x128xf32>
    %69 = arith.addf %63, %68 : vector<64x128xf32>
    %70 = vector.extract_strided_slice %52 {offsets = [1, 1, 0], sizes = [8, 8, 512], strides = [1, 1, 1]} : vector<9x9x512xbf16> to vector<8x8x512xbf16>
    %71 = vector.shape_cast %70 : vector<8x8x512xbf16> to vector<64x512xbf16>
    %c3_41 = arith.constant 3 : index
    %c0_42 = arith.constant 0 : index
    %c0_43 = arith.constant 0 : index
    %72 = vector.load %arg5[%c3_41, %c0_42, %c0_43] : memref<4x512x128xbf16, #tpu.memory_space<vmem>>, vector<1x512x128xbf16>
    %73 = vector.shape_cast %72 : vector<1x512x128xbf16> to vector<512x128xbf16>
    %cst_44 = arith.constant dense<0.000000e+00> : vector<64x128xf32>
    %74 = tpu.matmul %71, %73, %cst_44 {dimension_numbers = #tpu.dot_dimension_numbers<[1], [0], [0], [1], [0, 0, 1, 1], [], []>} : vector<64x512xbf16>, vector<512x128xbf16>, vector<64x128xf32> -> vector<64x128xf32>
    %75 = arith.addf %69, %74 : vector<64x128xf32>
    %c0_45 = arith.constant 0 : index
    %c0_46 = arith.constant 0 : index
    %76 = vector.load %arg6[%c0_45, %c0_46] : memref<1x128xf32, #tpu.memory_space<vmem>>, vector<1x128xf32>
    %77 = vector.broadcast %76 : vector<1x128xf32> to vector<64x128xf32>
    %78 = arith.addf %75, %77 : vector<64x128xf32>
    %cst_47 = arith.constant 0.000000e+00 : f32
    %79 = vector.broadcast %cst_47 : f32 to vector<64x128xf32>
    %80 = arith.cmpf oge, %78, %79 : vector<64x128xf32>
    %cst_48 = arith.constant 2.000000e-01 : f32
    %81 = vector.broadcast %cst_48 : f32 to vector<64x128xf32>
    %82 = arith.mulf %78, %81 : vector<64x128xf32>
    %83 = arith.select %80, %78, %82 : vector<64x128xi1>, vector<64x128xf32>
    %cst_49 = arith.constant 0.000000e+00 : f32
    %84 = vector.broadcast %cst_49 : f32 to vector<10x10x128xf32>
    %c0_50 = arith.constant 0 : index
    %c0_51 = arith.constant 0 : index
    %c0_52 = arith.constant 0 : index
    %85 = vector.load %arg18[%c0_50, %c0_51, %c0_52] : memref<10x10x128xf32, #tpu.memory_space<vmem>>, vector<10x10x128xf32>
    tpu.vector_store %arg18[%c0_50, %c0_51, %c0_52], %84 {strides = array<i32>} : memref<10x10x128xf32, #tpu.memory_space<vmem>>, vector<10x10x128xf32>,
    %86 = vector.shape_cast %83 : vector<64x128xf32> to vector<8x8x128xf32>
    %c1_53 = arith.constant 1 : index
    %c1_54 = arith.constant 1 : index
    %c0_55 = arith.constant 0 : index
    %87 = vector.load %arg18[%c1_53, %c1_54, %c0_55] : memref<10x10x128xf32, #tpu.memory_space<vmem>>, vector<8x8x128xf32>
    tpu.vector_store %arg18[%c1_53, %c1_54, %c0_55], %86 {strides = array<i32>} : memref<10x10x128xf32, #tpu.memory_space<vmem>>, vector<8x8x128xf32>,
    %c0_56 = arith.constant 0 : index
    %c0_57 = arith.constant 0 : index
    %c0_58 = arith.constant 0 : index
    %88 = vector.load %arg18[%c0_56, %c0_57, %c0_58] : memref<10x10x128xf32, #tpu.memory_space<vmem>>, vector<10x10x128xf32>
    %89 = vector.shape_cast %88 : vector<10x10x128xf32> to vector<10x5x256xf32>
    %90 = vector.shape_cast %89 : vector<10x5x256xf32> to vector<5x2x5x256xf32>
    %91 = vector.extract_strided_slice %90 {offsets = [0, 0, 0, 0], sizes = [5, 1, 5, 256], strides = [1, 1, 1, 1]} : vector<5x2x5x256xf32> to vector<5x1x5x256xf32>
    %92 = vector.shape_cast %91 : vector<5x1x5x256xf32> to vector<5x5x256xf32>
    %93 = vector.extract_strided_slice %90 {offsets = [0, 1, 0, 0], sizes = [5, 1, 5, 256], strides = [1, 1, 1, 1]} : vector<5x2x5x256xf32> to vector<5x1x5x256xf32>
    %94 = vector.shape_cast %93 : vector<5x1x5x256xf32> to vector<5x5x256xf32>
    %95 = tpu.concatenate %92, %94 in 2 : vector<5x5x256xf32>, vector<5x5x256xf32> -> vector<5x5x512xf32>
    %96 = arith.truncf %95 : vector<5x5x512xf32> to vector<5x5x512xbf16>
    %97 = vector.extract_strided_slice %96 {offsets = [0, 0, 0], sizes = [4, 4, 512], strides = [1, 1, 1]} : vector<5x5x512xbf16> to vector<4x4x512xbf16>
    %98 = vector.shape_cast %97 : vector<4x4x512xbf16> to vector<16x512xbf16>
    %c0_59 = arith.constant 0 : index
    %c0_60 = arith.constant 0 : index
    %c0_61 = arith.constant 0 : index
    %99 = vector.load %arg7[%c0_59, %c0_60, %c0_61] : memref<4x512x128xbf16, #tpu.memory_space<vmem>>, vector<1x512x128xbf16>
    %100 = vector.shape_cast %99 : vector<1x512x128xbf16> to vector<512x128xbf16>
    %cst_62 = arith.constant dense<0.000000e+00> : vector<16x128xf32>
    %101 = tpu.matmul %98, %100, %cst_62 {dimension_numbers = #tpu.dot_dimension_numbers<[1], [0], [0], [1], [0, 0, 1, 1], [], []>} : vector<16x512xbf16>, vector<512x128xbf16>, vector<16x128xf32> -> vector<16x128xf32>
    %102 = vector.extract_strided_slice %96 {offsets = [0, 1, 0], sizes = [4, 4, 512], strides = [1, 1, 1]} : vector<5x5x512xbf16> to vector<4x4x512xbf16>
    %103 = vector.shape_cast %102 : vector<4x4x512xbf16> to vector<16x512xbf16>
    %c1_63 = arith.constant 1 : index
    %c0_64 = arith.constant 0 : index
    %c0_65 = arith.constant 0 : index
    %104 = vector.load %arg7[%c1_63, %c0_64, %c0_65] : memref<4x512x128xbf16, #tpu.memory_space<vmem>>, vector<1x512x128xbf16>
    %105 = vector.shape_cast %104 : vector<1x512x128xbf16> to vector<512x128xbf16>
    %cst_66 = arith.constant dense<0.000000e+00> : vector<16x128xf32>
    %106 = tpu.matmul %103, %105, %cst_66 {dimension_numbers = #tpu.dot_dimension_numbers<[1], [0], [0], [1], [0, 0, 1, 1], [], []>} : vector<16x512xbf16>, vector<512x128xbf16>, vector<16x128xf32> -> vector<16x128xf32>
    %107 = arith.addf %101, %106 : vector<16x128xf32>
    %108 = vector.extract_strided_slice %96 {offsets = [1, 0, 0], sizes = [4, 4, 512], strides = [1, 1, 1]} : vector<5x5x512xbf16> to vector<4x4x512xbf16>
    %109 = vector.shape_cast %108 : vector<4x4x512xbf16> to vector<16x512xbf16>
    %c2_67 = arith.constant 2 : index
    %c0_68 = arith.constant 0 : index
    %c0_69 = arith.constant 0 : index
    %110 = vector.load %arg7[%c2_67, %c0_68, %c0_69] : memref<4x512x128xbf16, #tpu.memory_space<vmem>>, vector<1x512x128xbf16>
    %111 = vector.shape_cast %110 : vector<1x512x128xbf16> to vector<512x128xbf16>
    %cst_70 = arith.constant dense<0.000000e+00> : vector<16x128xf32>
    %112 = tpu.matmul %109, %111, %cst_70 {dimension_numbers = #tpu.dot_dimension_numbers<[1], [0], [0], [1], [0, 0, 1, 1], [], []>} : vector<16x512xbf16>, vector<512x128xbf16>, vector<16x128xf32> -> vector<16x128xf32>
    %113 = arith.addf %107, %112 : vector<16x128xf32>
    %114 = vector.extract_strided_slice %96 {offsets = [1, 1, 0], sizes = [4, 4, 512], strides = [1, 1, 1]} : vector<5x5x512xbf16> to vector<4x4x512xbf16>
    %115 = vector.shape_cast %114 : vector<4x4x512xbf16> to vector<16x512xbf16>
    %c3_71 = arith.constant 3 : index
    %c0_72 = arith.constant 0 : index
    %c0_73 = arith.constant 0 : index
    %116 = vector.load %arg7[%c3_71, %c0_72, %c0_73] : memref<4x512x128xbf16, #tpu.memory_space<vmem>>, vector<1x512x128xbf16>
    %117 = vector.shape_cast %116 : vector<1x512x128xbf16> to vector<512x128xbf16>
    %cst_74 = arith.constant dense<0.000000e+00> : vector<16x128xf32>
    %118 = tpu.matmul %115, %117, %cst_74 {dimension_numbers = #tpu.dot_dimension_numbers<[1], [0], [0], [1], [0, 0, 1, 1], [], []>} : vector<16x512xbf16>, vector<512x128xbf16>, vector<16x128xf32> -> vector<16x128xf32>
    %119 = arith.addf %113, %118 : vector<16x128xf32>
    %c0_75 = arith.constant 0 : index
    %c0_76 = arith.constant 0 : index
    %120 = vector.load %arg8[%c0_75, %c0_76] : memref<1x128xf32, #tpu.memory_space<vmem>>, vector<1x128xf32>
    %121 = vector.broadcast %120 : vector<1x128xf32> to vector<16x128xf32>
    %122 = arith.addf %119, %121 : vector<16x128xf32>
    %cst_77 = arith.constant 0.000000e+00 : f32
    %123 = vector.broadcast %cst_77 : f32 to vector<16x128xf32>
    %124 = arith.cmpf oge, %122, %123 : vector<16x128xf32>
    %cst_78 = arith.constant 2.000000e-01 : f32
    %125 = vector.broadcast %cst_78 : f32 to vector<16x128xf32>
    %126 = arith.mulf %122, %125 : vector<16x128xf32>
    %127 = arith.select %124, %122, %126 : vector<16x128xi1>, vector<16x128xf32>
    %128 = vector.shape_cast %127 : vector<16x128xf32> to vector<1x2048xf32>
    %129 = arith.truncf %128 : vector<1x2048xf32> to vector<1x2048xbf16>
    %c0_79 = arith.constant 0 : index
    %c0_80 = arith.constant 0 : index
    %130 = vector.load %arg11[%c0_79, %c0_80] : memref<2048x256xbf16, #tpu.memory_space<vmem>>, vector<2048x256xbf16>
    %cst_81 = arith.constant dense<0.000000e+00> : vector<1x256xf32>
    %131 = tpu.matmul %129, %130, %cst_81 {dimension_numbers = #tpu.dot_dimension_numbers<[1], [0], [0], [1], [0, 0, 1, 1], [], []>} : vector<1x2048xbf16>, vector<2048x256xbf16>, vector<1x256xf32> -> vector<1x256xf32>
    %c0_82 = arith.constant 0 : index
    %c0_83 = arith.constant 0 : index
    %132 = vector.load %arg12[%c0_82, %c0_83] : memref<1x256xf32, #tpu.memory_space<vmem>>, vector<1x256xf32>
    %133 = arith.addf %131, %132 : vector<1x256xf32>
    %cst_84 = arith.constant 0.000000e+00 : f32
    %134 = vector.broadcast %cst_84 : f32 to vector<1x256xf32>
    %135 = arith.cmpf oge, %133, %134 : vector<1x256xf32>
    %cst_85 = arith.constant 2.000000e-01 : f32
    %136 = vector.broadcast %cst_85 : f32 to vector<1x256xf32>
    %137 = arith.mulf %133, %136 : vector<1x256xf32>
    %138 = arith.select %135, %133, %137 : vector<1x256xi1>, vector<1x256xf32>
    %c0_86 = arith.constant 0 : index
    %c0_87 = arith.constant 0 : index
    %c0_88 = arith.constant 0 : index
    %139 = vector.load %arg2[%c0_86, %c0_87, %c0_88] : memref<1x1x192xf32, #tpu.memory_space<vmem>>, vector<1x1x192xf32>
    %140 = vector.shape_cast %139 : vector<1x1x192xf32> to vector<1x192xf32>
    %141 = arith.truncf %140 : vector<1x192xf32> to vector<1x192xbf16>
    %c0_89 = arith.constant 0 : index
    %c0_90 = arith.constant 0 : index
    %142 = vector.load %arg9[%c0_89, %c0_90] : memref<192x256xbf16, #tpu.memory_space<vmem>>, vector<192x256xbf16>
    %cst_91 = arith.constant dense<0.000000e+00> : vector<1x256xf32>
    %143 = tpu.matmul %141, %142, %cst_91 {dimension_numbers = #tpu.dot_dimension_numbers<[1], [0], [0], [1], [0, 0, 1, 1], [], []>} : vector<1x192xbf16>, vector<192x256xbf16>, vector<1x256xf32> -> vector<1x256xf32>
    %c0_92 = arith.constant 0 : index
    %c0_93 = arith.constant 0 : index
    %144 = vector.load %arg10[%c0_92, %c0_93] : memref<1x256xf32, #tpu.memory_space<vmem>>, vector<1x256xf32>
    %145 = arith.addf %143, %144 : vector<1x256xf32>
    %cst_94 = arith.constant 0.000000e+00 : f32
    %146 = vector.broadcast %cst_94 : f32 to vector<1x256xf32>
    %147 = arith.cmpf oge, %145, %146 : vector<1x256xf32>
    %cst_95 = arith.constant 2.000000e-01 : f32
    %148 = vector.broadcast %cst_95 : f32 to vector<1x256xf32>
    %149 = arith.mulf %145, %148 : vector<1x256xf32>
    %150 = arith.select %147, %145, %149 : vector<1x256xi1>, vector<1x256xf32>
    %151 = tpu.concatenate %150, %138 in 1 : vector<1x256xf32>, vector<1x256xf32> -> vector<1x512xf32>
    %152 = arith.truncf %151 : vector<1x512xf32> to vector<1x512xbf16>
    %c0_96 = arith.constant 0 : index
    %c0_97 = arith.constant 0 : index
    %153 = vector.load %arg13[%c0_96, %c0_97] : memref<512x128xbf16, #tpu.memory_space<vmem>>, vector<512x128xbf16>
    %cst_98 = arith.constant dense<0.000000e+00> : vector<1x128xf32>
    %154 = tpu.matmul %152, %153, %cst_98 {dimension_numbers = #tpu.dot_dimension_numbers<[1], [0], [0], [1], [0, 0, 1, 1], [], []>} : vector<1x512xbf16>, vector<512x128xbf16>, vector<1x128xf32> -> vector<1x128xf32>
    %c0_99 = arith.constant 0 : index
    %c0_100 = arith.constant 0 : index
    %155 = vector.load %arg14[%c0_99, %c0_100] : memref<1x128xf32, #tpu.memory_space<vmem>>, vector<1x128xf32>
    %156 = arith.addf %154, %155 : vector<1x128xf32>
    %157 = vector.extract_strided_slice %156 {offsets = [0, 0], sizes = [1, 64], strides = [1, 1]} : vector<1x128xf32> to vector<1x64xf32>
    %cst_101 = arith.constant 1.000000e-01 : f32
    %158 = vector.broadcast %cst_101 : f32 to vector<1x64xf32>
    %159 = arith.mulf %157, %158 : vector<1x64xf32>
    %160 = vector.extract_strided_slice %156 {offsets = [0, 64], sizes = [1, 64], strides = [1, 1]} : vector<1x128xf32> to vector<1x64xf32>
    %cst_102 = arith.constant 0.00999999977 : f32
    %161 = vector.broadcast %cst_102 : f32 to vector<1x64xf32>
    %162 = arith.mulf %160, %161 : vector<1x64xf32>
    %c0_103 = arith.constant 0 : index
    %c0_104 = arith.constant 0 : index
    %c0_105 = arith.constant 0 : index
    %163 = vector.load %arg15[%c0_103, %c0_104, %c0_105] : memref<1x1x64xf32, #tpu.memory_space<vmem>>, vector<1x1x64xf32>
    %164 = vector.shape_cast %163 : vector<1x1x64xf32> to vector<1x64xf32>
    %165 = vector.shape_cast %159 : vector<1x64xf32> to vector<1x1x64xf32>
    tpu.vector_store %arg15[%c0_103, %c0_104, %c0_105], %165 {strides = array<i32>} : memref<1x1x64xf32, #tpu.memory_space<vmem>>, vector<1x1x64xf32>,
    %cst_106 = arith.constant -5.000000e-01 : f32
    %166 = vector.broadcast %cst_106 : f32 to vector<1x64xf32>
    %167 = arith.subf %166, %162 : vector<1x64xf32>
    %cst_107 = arith.constant 5.000000e-01 : f32
    %168 = vector.broadcast %cst_107 : f32 to vector<1x64xf32>
    %169 = arith.mulf %168, %159 : vector<1x64xf32>
    %170 = arith.mulf %169, %159 : vector<1x64xf32>
    %171 = arith.addf %167, %170 : vector<1x64xf32>
    %cst_108 = arith.constant 2.000000e+00 : f32
    %172 = vector.broadcast %cst_108 : f32 to vector<1x64xf32>
    %173 = arith.mulf %172, %162 : vector<1x64xf32>
    %174 = math.exp %173 : vector<1x64xf32>
    %cst_109 = arith.constant 5.000000e-01 : f32
    %175 = vector.broadcast %cst_109 : f32 to vector<1x64xf32>
    %176 = arith.mulf %175, %174 : vector<1x64xf32>
    %177 = arith.addf %171, %176 : vector<1x64xf32>
    %cst_110 = arith.constant dense<0.000000e+00> : vector<1xf32>
    %178 = vector.multi_reduction <add>, %177, %cst_110 [1] : vector<1x64xf32> to vector<1xf32>
    %179 = vector.shape_cast %178 : vector<1xf32> to vector<1x1xf32>
    %cst_111 = arith.constant 6.400000e+01 : f32
    %180 = vector.broadcast %cst_111 : f32 to vector<1x1xf32>
    %181 = arith.divf %179, %180 : vector<1x1xf32>
    %c0_112 = arith.constant 0 : index
    %c0_113 = arith.constant 0 : index
    %c0_114 = arith.constant 0 : index
    %182 = vector.load %arg16[%c0_112, %c0_113, %c0_114] : memref<1x1x1xf32, #tpu.memory_space<vmem>>, vector<1x1x1xf32>
    %183 = vector.shape_cast %182 : vector<1x1x1xf32> to vector<1x1xf32>
    %184 = vector.shape_cast %181 : vector<1x1xf32> to vector<1x1x1xf32>
    tpu.vector_store %arg16[%c0_112, %c0_113, %c0_114], %184 {strides = array<i32>} : memref<1x1x1xf32, #tpu.memory_space<vmem>>, vector<1x1x1xf32>,
    return
  }
  func.func @transform_0(%arg0: i32) -> (i32, i32, i32, i32) {
    %c0_i32 = arith.constant 0 : i32
    %c0_i32_0 = arith.constant 0 : i32
    %c0_i32_1 = arith.constant 0 : i32
    %c0_i32_2 = arith.constant 0 : i32
    return %arg0, %c0_i32, %c0_i32_0, %c0_i32_1 : i32, i32, i32, i32
  }
  func.func @transform_1(%arg0: i32) -> (i32, i32, i32) {
    %c0_i32 = arith.constant 0 : i32
    %c0_i32_0 = arith.constant 0 : i32
    %c0_i32_1 = arith.constant 0 : i32
    return %arg0, %c0_i32, %c0_i32_0 : i32, i32, i32
  }
  func.func @transform_2(%arg0: i32) -> (i32, i32, i32) {
    %c0_i32 = arith.constant 0 : i32
    %c0_i32_0 = arith.constant 0 : i32
    %c0_i32_1 = arith.constant 0 : i32
    %c0_i32_2 = arith.constant 0 : i32
    return %c0_i32, %c0_i32_0, %c0_i32_1 : i32, i32, i32
  }
  func.func @transform_3(%arg0: i32) -> (i32, i32) {
    %c0_i32 = arith.constant 0 : i32
    %c0_i32_0 = arith.constant 0 : i32
    %c0_i32_1 = arith.constant 0 : i32
    return %c0_i32, %c0_i32_0 : i32, i32
  }
  func.func @transform_4(%arg0: i32) -> (i32, i32, i32) {
    %c0_i32 = arith.constant 0 : i32
    %c0_i32_0 = arith.constant 0 : i32
    %c0_i32_1 = arith.constant 0 : i32
    %c0_i32_2 = arith.constant 0 : i32
    return %c0_i32, %c0_i32_0, %c0_i32_1 : i32, i32, i32
  }
  func.func @transform_5(%arg0: i32) -> (i32, i32) {
    %c0_i32 = arith.constant 0 : i32
    %c0_i32_0 = arith.constant 0 : i32
    %c0_i32_1 = arith.constant 0 : i32
    return %c0_i32, %c0_i32_0 : i32, i32
  }
  func.func @transform_6(%arg0: i32) -> (i32, i32, i32) {
    %c0_i32 = arith.constant 0 : i32
    %c0_i32_0 = arith.constant 0 : i32
    %c0_i32_1 = arith.constant 0 : i32
    %c0_i32_2 = arith.constant 0 : i32
    return %c0_i32, %c0_i32_0, %c0_i32_1 : i32, i32, i32
  }
  func.func @transform_7(%arg0: i32) -> (i32, i32) {
    %c0_i32 = arith.constant 0 : i32
    %c0_i32_0 = arith.constant 0 : i32
    %c0_i32_1 = arith.constant 0 : i32
    return %c0_i32, %c0_i32_0 : i32, i32
  }
  func.func @transform_8(%arg0: i32) -> (i32, i32) {
    %c0_i32 = arith.constant 0 : i32
    %c0_i32_0 = arith.constant 0 : i32
    %c0_i32_1 = arith.constant 0 : i32
    return %c0_i32, %c0_i32_0 : i32, i32
  }
  func.func @transform_9(%arg0: i32) -> (i32, i32) {
    %c0_i32 = arith.constant 0 : i32
    %c0_i32_0 = arith.constant 0 : i32
    %c0_i32_1 = arith.constant 0 : i32
    return %c0_i32, %c0_i32_0 : i32, i32
  }
  func.func @transform_10(%arg0: i32) -> (i32, i32) {
    %c0_i32 = arith.constant 0 : i32
    %c0_i32_0 = arith.constant 0 : i32
    %c0_i32_1 = arith.constant 0 : i32
    return %c0_i32, %c0_i32_0 : i32, i32
  }
  func.func @transform_11(%arg0: i32) -> (i32, i32) {
    %c0_i32 = arith.constant 0 : i32
    %c0_i32_0 = arith.constant 0 : i32
    %c0_i32_1 = arith.constant 0 : i32
    return %c0_i32, %c0_i32_0 : i32, i32
  }
  func.func @transform_12(%arg0: i32) -> (i32, i32) {
    %c0_i32 = arith.constant 0 : i32
    %c0_i32_0 = arith.constant 0 : i32
    %c0_i32_1 = arith.constant 0 : i32
    return %c0_i32, %c0_i32_0 : i32, i32
  }
  func.func @transform_13(%arg0: i32) -> (i32, i32) {
    %c0_i32 = arith.constant 0 : i32
    %c0_i32_0 = arith.constant 0 : i32
    %c0_i32_1 = arith.constant 0 : i32
    return %c0_i32, %c0_i32_0 : i32, i32
  }
  func.func @transform_14(%arg0: i32) -> (i32, i32, i32) {
    %c0_i32 = arith.constant 0 : i32
    %c0_i32_0 = arith.constant 0 : i32
    %c0_i32_1 = arith.constant 0 : i32
    return %arg0, %c0_i32, %c0_i32_0 : i32, i32, i32
  }
  func.func @transform_15(%arg0: i32) -> (i32, i32, i32) {
    %c0_i32 = arith.constant 0 : i32
    %c0_i32_0 = arith.constant 0 : i32
    %c0_i32_1 = arith.constant 0 : i32
    return %arg0, %c0_i32, %c0_i32_0 : i32, i32, i32
  }
}

</mosaic_0001>

<bundles_post_ra>
// kernel: encoder_forward.1
= control target key start
LH: loop header
LB: loop body
LE: loop exit
PB: predicated region body
PF: predicated region fallthrough
CT: control target
= control target key end

     0   :  { %s15119_s0 = inlined_call_operand.vmem [shape: f32[2,34,17,6], index: 0, kind: input, shape index: {}]   ;;  %s15120_s1 = inlined_call_operand.vmem [shape: f32[2,1,192], index: 1, kind: input, shape index: {}]   ;;  %s15121_s2 = inlined_call_operand.vmem [shape: bf16[4,12,128], index: 2, kind: input, shape index: {}]   ;;  %s15122_s3 = inlined_call_operand.vmem [shape: f32[1,128], index: 3, kind: input, shape index: {}]   ;;  %s15123_s4 = inlined_call_operand.hbm [shape: bf16[4,512,128], index: 4, kind: input, shape index: {}]   ;;  %s15124_s5 = inlined_call_operand.vmem [shape: f32[1,128], index: 5, kind: input, shape index: {}]   ;;  %s15125_s6 = inlined_call_operand.hbm [shape: bf16[4,512,128], index: 6, kind: input, shape index: {}]   ;;  %s15126_s7 = inlined_call_operand.vmem [shape: f32[1,128], index: 7, kind: input, shape index: {}]   ;;  %s15127_s8 = inlined_call_operand.vmem [shape: bf16[192,256], index: 8, kind: input, shape index: {}]   ;;  %s15128_s9 = inlined_call_operand.vmem [shape: f32[1,256], index: 9, kind: input, shape index: {}]   ;;  %s15129_s10 = inlined_call_operand.vmem [shape: bf16[2048,256], index: 10, kind: input, shape index: {}]   ;;  %s15130_s11 = inlined_call_operand.vmem [shape: f32[1,256], index: 11, kind: input, shape index: {}]   ;;  %s15131_s12 = inlined_call_operand.vmem [shape: bf16[512,128], index: 12, kind: input, shape index: {}]   ;;  %s15132_s13 = inlined_call_operand.vmem [shape: f32[1,128], index: 13, kind: input, shape index: {}]   ;;  %s15133_s14 = inlined_call_operand.hbm [shape: f32[2,1,64], index: 14, kind: output, shape index: {0}]   ;;  %s15134_s15 = inlined_call_operand.vmem [shape: f32[2,1,1], index: 15, kind: output, shape index: {1}]  }
   0x1   :  { %15155 = sst [smem:[#allocation24_spill]] %s15133_s14 }
   0x2   :  { %15156 = sst [smem:[#allocation25_spill]] %s15134_s15 }
   0x3   :  { %21 = vsyncpa [#allocation5], 0 }
   0x4   :  { %22 = vsyncpa [#allocation8], 0 }
   0x5   :  { %23 = vsyncpa [#allocation6], 0 }
   0x6   :  { %25 = vsyncpa [#allocation6 + $0x1], 0  ;;  %s12604_s18 = smov 0   ;;  %s12606_s19 = smov 0  }
   0x7   :  { %s12608_s20 = smov 0   ;;  %s12610_s21 = smov 0  }
   0x8 LB: > { %15157 = sst [smem:[#allocation13_spill]] %s12501_s18  ;;  %s12625_s22 = sadd.s32 4294967295, %s12513_s21   ;;  %s12513_s21 = sphi %s12610_s21, %s15211_s21   ;;  %s12509_s20 = sphi %s12608_s20, %s15216_s20   ;;  %s12505_s19 = sphi %s12606_s19, %s15215_s19   ;;  %s12501_s18 = sphi %s12604_s18, %s15214_s18  }
   0x9   : > { %15158 = sst [smem:[#allocation14_spill]] %s12509_s20  ;;  %s9688_s23 = sadd.s32 4294967294, %s12513_s21  }
   0xa   : > { %15159 = sst [smem:[#allocation15_spill]] %s12513_s21  ;;  %s12629_s24 = sadd.s32 1, %s12513_s21  }
   0xb   : > { %15160 = sst [smem:[#allocation16_spill]] %s12629_s24  ;;  %s342_s25 = sadd.s32 1, %s12509_s20 }
   0xc   : > { %s339_s26 = ssub.s32 %s12513_s21, %s12629_s24  ;;  %p352_p0 = scmp.ne.s32.totalorder %s12509_s20, %s12505_s19 }
   0xd   : > { %p340_p1 = scmp.eq.s32.totalorder %s339_s26, 0  ;;  %p353_p2 = scmp.eq.s32.totalorder %s12625_s22, 1 }
   0xe   : > { %p358_p3 = scmp.ne.s32.totalorder %s12505_s19, %s12501_s18  ;;  %p359_p4 = scmp.eq.s32.totalorder %s9688_s23, 1 }
   0xf   : > { %s12640_s27 = scalar_select %p340_p1, %s12509_s20, %s342_s25  }
  0x10   : > { %p12642_p5 = por %p353_p2, %p352_p0  ;;  %p12646_p6 = por %p359_p4, %p358_p3 }
  0x11   : > { %15161 = sst [smem:[#allocation17_spill]] %s12640_s27  ;;  %p9689_p7 = scmp.ge.s32.totalorder %s12513_s21, 1 }
  0x12   : > { %s15162_s28 = scalar_select %p12642_p5, 1, 0 }
  0x13   : > { %s15164_s29 = scalar_select %p12646_p6, 1, 0 }
  0x14   : > { %15163 = sst [smem:[#allocation18_spill]] %s15162_s28  ;;  %p392_p8 = scmp.lt.s32.totalorder %s12513_s21, 3 }
  0x15   : > { %15165 = sst [smem:[#allocation19_spill]] %s15164_s29  ;;  %p15141_p9 = scmp.eq.s32.totalorder %s12625_s22, 0 }
  0x16   : > { %p12653_p10 = pnand %p9689_p7, %p392_p8  ;;  %s12515_s16 = smov [#allocation4]  }
  0x17   : > { %s410_s17 = sshll.u32 %s12515_s16, 4  ;;  %s12516_s25 = smov [#allocation7]   ;;  %s411_s17 = int_to_ptr.vmem [resolvable:$true] %s410_s17 }
  0x18   : > { %s15166_s30 = scalar_select %p12653_p10, 1, 0 }
  0x19   : > { %p11492_p11 = pneg %p12653_p10  ;;  %s426_s26 = sshll.u32 %s12516_s25, 4  ;;  %s12665_s26 = int_to_ptr.vmem [resolvable:$true] %s426_s26 }
  0x1a   : > { %s12387_s24 = scalar_lea.hbm %s15123_s4, 16384 }
  0x1b   : > { %p12661_p12 = pnand %p15141_p9, %p11492_p11  ;;  %p12388_p13 = scmp.ne.s32.totalorder %s15123_s4, %s12387_s24 }
  0x1c   : > { %p12394_p3 = scmp.lt.u32.totalorder %s12387_s24, %s15123_s4 }
  0x1d   : > { %p12389_p0 = pneg %p12661_p12 }
  0x1f   : > { %p12390_p1 = pnand %p12389_p0, %p12388_p13 }
  0x21   : > { %p12391_p2 = pneg %p12390_p1 }
  0x23   : > { %p12396_p4 = pnand %p12394_p3, %p12391_p2 }
  0x25   : > { %12399 = shalt.err (!%p12396_p4)
}
  0x26   : > { %s12400_s25 = scalar_lea.vmem %s411_s17, 16384  ;;  %p12408_p9 = scmp.lt.s32.totalorder %s411_s17, %s411_s17 }
  0x27   : > { %p12401_p7 = scmp.ne.s32.totalorder %s411_s17, %s12400_s25  ;;  %p12409_p6 = scmp.lt.s32.totalorder %s12400_s25, %s12400_s25 }
  0x29   : > { %p12403_p8 = pnand %p12401_p7, %p12389_p0  ;;  %p12410_p5 = por %p12409_p6, %p12408_p9 }
  0x2b   : > { %p12404_p11 = pneg %p12403_p8 }
  0x2d   : > { %p12411_p10 = pnand %p12410_p5, %p12404_p11 }
  0x2f   : > { %12414 = shalt.err (!%p12411_p10)
}
  0x30   : > { %s12517_s20 = smov 64   ;;  %s12518_s27 = smov 4  }
  0x31   : > { %11495 = dma.hbm_to_vmem [thread:$0]  (!%p12661_p12), %s15123_s4, 16384, %s411_s17, [#allocation5], %s12517_s20, %s12517_s20, %s12518_s27  }
  0x32   : > { %s12415_s16 = scalar_lea.hbm %s15125_s6, 16384 }
  0x33   : > { %p12416_p13 = scmp.ne.s32.totalorder %s15125_s6, %s12415_s16  ;;  %p12422_p9 = scmp.lt.u32.totalorder %s12415_s16, %s15125_s6 }
  0x35   : > { %p12418_p5 = pnand %p12416_p13, %p12389_p0 }
  0x37   : > { %p12419_p6 = pneg %p12418_p5 }
  0x39   : > { %p12424_p10 = pnand %p12422_p9, %p12419_p6 }
  0x3b   : > { %12427 = shalt.err (!%p12424_p10)
}
  0x3c   : > { %s12428_s17 = scalar_lea.vmem %s12665_s26, 16384  ;;  %p12436_p4 = scmp.lt.s32.totalorder %s12665_s26, %s12665_s26 }
  0x3d   : > { %p12429_p1 = scmp.ne.s32.totalorder %s12665_s26, %s12428_s17  ;;  %p12437_p7 = scmp.lt.s32.totalorder %s12428_s17, %s12428_s17 }
  0x3f   : > { %p12431_p2 = pnand %p12429_p1, %p12389_p0  ;;  %p12438_p8 = por %p12437_p7, %p12436_p4 }
  0x41   : > { %p12432_p3 = pneg %p12431_p2 }
  0x43   : > { %p12439_p11 = pnand %p12438_p8, %p12432_p3 }
  0x45   : > { %12442 = shalt.err (!%p12439_p11)
}
  0x46   : > { %11498 = dma.hbm_to_vmem [thread:$0]  (!%p12661_p12), %s15125_s6, 16384, %s12665_s26, [#allocation8], %s12517_s20, %s12517_s20, %s12518_s27  }
  0x47   : > { %p15168_p13 = scmp.ne.s32.totalorder %s15166_s30, 0 }
  0x49   : > { %478 = sbr.rel (%p15168_p13) target bundleno = 2737 (0xab1), region = 76 }
  0x50   : > { %p15169_p5 = scmp.eq.s32.totalorder %s12625_s22, 0 }
  0x52   : > { %12488 = dma.done.wait (%p15169_p5), [#allocation5], 16384   ;;  %p15170_p0 = pmov %p15169_p5 }
  0x54   : > { %12490 = vsyncadd (%p15170_p0), [#allocation5], 4294950912  ;;  %p15171_p6 = pmov %p15170_p0 }
  0x55   : > { %p15172_p9 = pmov %p15170_p0 }
  0x56   : > { %12492 = dma.done.wait (%p15171_p6), [#allocation8], 16384  }
  0x57   : > { %12494 = vsyncadd (%p15172_p9), [#allocation8], 4294950912  ;;  %p536_p10 = scmp.lt.s32.totalorder %s12625_s22, 1  ;;  %s12519_s27 = smov 6   ;;  %vm1193_vm0 = vcmask 1045504   ;;  %vm855_vm1 = vcmask 48128  }
  0x58   : > { %v11673_v38 = vld [vmem:[%s15121_s2 + $0x8] sm:$0x3f]   ;;  %v11674_v42 = vld [vmem:[%s15121_s2 + $0x18] sm:$0x3f]   ;;  %v11675_v44 = vld [vmem:[%s15121_s2] sm:$0x3f]  }
  0x59   : > { %s12726_s28 = scalar_select %p536_p10, %s12625_s22, 1  ;;  %11477 = vmatprep.subr.msk.bf16.mxu1 %vm1193_vm0, %v11673_v38  ;;  %v1195_v41 = vsel %vm1193_vm0, %v11673_v38, 0  ;;  %11480 = vmatprep.subr.msk.bf16.mxu0 %vm1193_vm0, %v11674_v42  ;;  %v1789_v48 = vsel %vm1193_vm0, %v11674_v42, 0  ;;  %vm943_vm2 = vsmask.f32 7424  ;;  %vm1144_vm3 = vcmask 97280  }
  0x5a   : > { %11216 = vmatpush3.bf16.msra.mxu1 %v1195_v41  ;;  %11318 = vmatpush3.bf16.msra.mxu0 %v1789_v48  ;;  %vm3028_vm12 = vsmask.f32 3328  ;;  %vm3029_vm13 = vsmask.f32 7440  ;;  %s529_s16 = sand.u32 1, %s12505_s19   ;;  %s12522_s17 = smov 64  }
  0x5b   : > { %s11481_s30 = smul.u32 816, %s12726_s28  ;;  %11478 = vmatprep.subr.msk.bf16.mxu1 %vm1193_vm0, %v11675_v44  ;;  %s9697_s15 = sshll.u32 %s12726_s28, 1 }
  0x5c   : > { %s530_s25 = scalar_lea.vmem [#allocation9], %s529_s16  ;;  %s15203_s14 = sld [smem:[#allocation18_spill]] }
  0x5d   : > { %s12732_s20 = scalar_lea.vmem %s15119_s0, %s11481_s30  ;;  %s15204_s26 = sld [smem:[#allocation24_spill]] }
  0x5e   : > { %v554_v0 = vld [vmem:[%s12732_s20 + $0x28] sm:$0x1]  ;;  %v560_v1 = vld [vmem:[%s12732_s20 + $0x58] sm:$0x1]  ;;  %v553_v4 = vld [vmem:[%s12732_s20 + $0x20] sm:$0xff]  ;;  %s9562_s18 = scalar_lea.sflag [#allocation6], %s529_s16 }
  0x5f   : > { %v552_v2 = vld [vmem:[%s12732_s20 + $0x18] sm:$0xff]  ;;  %v11558_v3 = vpack.i.bf16 %v560_v1, %v554_v0  ;;  %v565_v6 = vld [vmem:[%s12732_s20 + $0x80] sm:$0xff]  ;;  %v558_v8 = vld [vmem:[%s12732_s20 + $0x48] sm:$0xff]  ;;  %s12523_s24 = smov [#allocation9]  }
  0x60   : > { %v564_v5 = vld [vmem:[%s12732_s20 + $0x78] sm:$0xff]  ;;  %v11548_v7 = vpack.i.bf16 %v553_v4, %v552_v2  ;;  %v559_v9 = vld [vmem:[%s12732_s20 + $0x50] sm:$0xff]  ;;  %v566_v12 = vld [vmem:[%s12732_s20 + $0x88] sm:$0x1]  ;;  %s12447_s29 = sshll.u32 %s12523_s24, 4  ;;  %s12448_s29 = int_to_ptr.vmem [resolvable:$false] %s12447_s29 }
  0x61   : > { %11559 = vrot.lane.b32.xlu1 %v11558_v3, %s12519_s27  ;;  %v11563_v10 = vpack.i.bf16 %v565_v6, %v564_v5  ;;  %v11553_v11 = vpack.i.bf16 %v559_v9, %v558_v8  ;;  %v572_v13 = vld [vmem:[%s12732_s20 + $0xb8] sm:$0x1]  ;;  %v570_v14 = vld [vmem:[%s12732_s20 + $0xa8] sm:$0xff]  ;;  %v571_v15 = vld [vmem:[%s12732_s20 + $0xb0] sm:$0xff] }
  0x62   : > { %11549 = vrot.lane.b32.xlu0 %v11548_v7, %s12519_s27  ;;  %v11573_v16 = vpack.i.bf16 %v572_v13, %v566_v12  ;;  %v11568_v17 = vpack.i.bf16 %v571_v15, %v570_v14  ;;  %v582_v18 = vld [vmem:[%s12732_s20 + $0x108] sm:$0xff]  ;;  %v583_v19 = vld [vmem:[%s12732_s20 + $0x110] sm:$0xff]  ;;  %v576_v20 = vld [vmem:[%s12732_s20 + $0xd8] sm:$0xff]  ;;  %p15205_p1 = scmp.ne.s32.totalorder %s15203_s14, 0 }
  0x63   : > { %v577_v21 = vld [vmem:[%s12732_s20 + $0xe0] sm:$0xff]  ;;  %v11583_v22 = vpack.i.bf16 %v583_v19, %v582_v18  ;;  %v588_v24 = vld [vmem:[%s12732_s20 + $0x138] sm:$0xff]  ;;  %v578_v26 = vld [vmem:[%s12732_s20 + $0xe8] sm:$0x1] }
  0x64   : > { %v11578_v23 = vpack.i.bf16 %v577_v21, %v576_v20  ;;  %v589_v25 = vld [vmem:[%s12732_s20 + $0x140] sm:$0xff]  ;;  %v584_v27 = vld [vmem:[%s12732_s20 + $0x118] sm:$0x1]  ;;  %v590_v30 = vld [vmem:[%s12732_s20 + $0x148] sm:$0x1] }
  0x65   : > { %11564 = vrot.lane.b32.xlu1 %v11563_v10, %s12519_s27  ;;  %v11593_v28 = vpack.i.bf16 %v589_v25, %v588_v24  ;;  %v11588_v29 = vpack.i.bf16 %v584_v27, %v578_v26  ;;  %v596_v31 = vld [vmem:[%s12732_s20 + $0x178] sm:$0x1]  ;;  %v594_v32 = vld [vmem:[%s12732_s20 + $0x168] sm:$0xff]  ;;  %v595_v33 = vld [vmem:[%s12732_s20 + $0x170] sm:$0xff] }
  0x66   : > { %11554 = vrot.lane.b32.xlu0 %v11553_v11, %s12519_s27  ;;  %v11603_v34 = vpack.i.bf16 %v596_v31, %v590_v30  ;;  %v606_v35 = vld [vmem:[%s12732_s20 + $0x1c8] sm:$0xff]  ;;  %v11598_v36 = vpack.i.bf16 %v595_v33, %v594_v32  ;;  %v607_v37 = vld [vmem:[%s12732_s20 + $0x1d0] sm:$0xff]  ;;  %v600_v39 = vld [vmem:[%s12732_s20 + $0x198] sm:$0xff] }
  0x67   : > { %v601_v40 = vld [vmem:[%s12732_s20 + $0x1a0] sm:$0xff]  ;;  %v11613_v43 = vpack.i.bf16 %v607_v37, %v606_v35  ;;  %v612_v46 = vld [vmem:[%s12732_s20 + $0x1f8] sm:$0xff]  ;;  %v602_v49 = vld [vmem:[%s12732_s20 + $0x1a8] sm:$0x1] }
  0x68   : > { %v11608_v45 = vpack.i.bf16 %v601_v40, %v600_v39  ;;  %v613_v47 = vld [vmem:[%s12732_s20 + $0x200] sm:$0xff]  ;;  %v608_v50 = vld [vmem:[%s12732_s20 + $0x1d8] sm:$0x1]  ;;  %v614_v52 = vld [vmem:[%s12732_s20 + $0x208] sm:$0x1] }
  0x69   : > { %11574 = vrot.lane.b32.xlu1 %v11573_v16, %s12519_s27  ;;  %v11623_v51 = vpack.i.bf16 %v613_v47, %v612_v46  ;;  %v11618_v53 = vpack.i.bf16 %v608_v50, %v602_v49  ;;  %v620_v54 = vld [vmem:[%s12732_s20 + $0x238] sm:$0x1]  ;;  %v618_v55 = vld [vmem:[%s12732_s20 + $0x228] sm:$0xff]  ;;  %v619_v56 = vld [vmem:[%s12732_s20 + $0x230] sm:$0xff]  ;;  %v12823_v16 = vsel %vm1193_vm0, %v11675_v44, 0 }
  0x6a   : > { %11569 = vrot.lane.b32.xlu0 %v11568_v17, %s12519_s27  ;;  %v11633_v57 = vpack.i.bf16 %v620_v54, %v614_v52  ;;  %v630_v58 = vld [vmem:[%s12732_s20 + $0x288] sm:$0xff]  ;;  %v631_v59 = vld [vmem:[%s12732_s20 + $0x290] sm:$0xff]  ;;  %v11628_v60 = vpack.i.bf16 %v619_v56, %v618_v55  ;;  %v624_v61 = vld [vmem:[%s12732_s20 + $0x258] sm:$0xff] }
  0x6b   : > { %v625_v62 = vld [vmem:[%s12732_s20 + $0x260] sm:$0xff]  ;;  %v636_v63 = vld [vmem:[%s12732_s20 + $0x2b8] sm:$0xff]  ;;  %v11643_v1 = vpack.i.bf16 %v631_v59, %v630_v58  ;;  %v626_v2 = vld [vmem:[%s12732_s20 + $0x268] sm:$0x1] }
  0x6c   : > { %v637_v0 = vld [vmem:[%s12732_s20 + $0x2c0] sm:$0xff]  ;;  %v632_v3 = vld [vmem:[%s12732_s20 + $0x298] sm:$0x1]  ;;  %v11638_v4 = vpack.i.bf16 %v625_v62, %v624_v61  ;;  %v638_v7 = vld [vmem:[%s12732_s20 + $0x2c8] sm:$0x1] }
  0x6d   : > { %11584 = vrot.lane.b32.xlu1 %v11583_v22, %s12519_s27  ;;  %v11653_v5 = vpack.i.bf16 %v637_v0, %v636_v63  ;;  %v11648_v6 = vpack.i.bf16 %v632_v3, %v626_v2  ;;  %v644_v8 = vld [vmem:[%s12732_s20 + $0x2f8] sm:$0x1]  ;;  %v642_v9 = vld [vmem:[%s12732_s20 + $0x2e8] sm:$0xff]  ;;  %v643_v10 = vld [vmem:[%s12732_s20 + $0x2f0] sm:$0xff] }
  0x6e   : > { %11579 = vrot.lane.b32.xlu0 %v11578_v23, %s12519_s27  ;;  %v11663_v11 = vpack.i.bf16 %v644_v8, %v638_v7  ;;  %v11658_v12 = vpack.i.bf16 %v643_v10, %v642_v9  ;;  %v648_v13 = vld [vmem:[%s12732_s20 + $0x318] sm:$0xff]  ;;  %v649_v14 = vld [vmem:[%s12732_s20 + $0x320] sm:$0xff]  ;;  %v650_v17 = vld [vmem:[%s12732_s20 + $0x328] sm:$0x1] }
  0x6f   : > { %v11668_v15 = vpack.i.bf16 %v649_v14, %v648_v13  ;;  %v12831_v18 = vld [vmem:[%s15121_s2 + $0x10] sm:$0x3f]   ;;  %v557_v20 = vld [vmem:[%s12732_s20 + $0x40] sm:$0x1]  ;;  %v550_v23 = vld [vmem:[%s12732_s20 + $0x8] sm:$0xff] }
  0x70   : > { %v12835_v19 = vsel %vm1193_vm0, %v12831_v18, 0  ;;  %v551_v21 = vld [vmem:[%s12732_s20 + $0x10] sm:$0x1]  ;;  %v549_v22 = vld [vmem:[%s12732_s20] sm:$0xff]  ;;  %v562_v31 = vld [vmem:[%s12732_s20 + $0x68] sm:$0xff] }
  0x71   : > { %11594 = vrot.lane.b32.xlu1 %v11593_v28, %s12519_s27  ;;  %v561_v30 = vld [vmem:[%s12732_s20 + $0x60] sm:$0xff]  ;;  %v555_v33 = vld [vmem:[%s12732_s20 + $0x30] sm:$0xff]  ;;  %v568_v54 = vld [vmem:[%s12732_s20 + $0x98] sm:$0xff] }
  0x72   : > { %11589 = vrot.lane.b32.xlu0 %v11588_v29, %s12519_s27  ;;  %v563_v48 = vld [vmem:[%s12732_s20 + $0x70] sm:$0x1]  ;;  %v569_v49 = vld [vmem:[%s12732_s20 + $0xa0] sm:$0x1] }
  0x73   : > { %v573_v10 = vld [vmem:[%s12732_s20 + $0xc0] sm:$0xff] }
  0x75   : > { %11604 = vrot.lane.b32.xlu1 %v11603_v34, %s12519_s27  ;;  %v556_v34 = vld [vmem:[%s12732_s20 + $0x38] sm:$0xff] }
  0x76   : > { %11599 = vrot.lane.b32.xlu0 %v11598_v36, %s12519_s27 }
  0x79   : > { %11614 = vrot.lane.b32.xlu1 %v11613_v43, %s12519_s27 }
  0x7a   : > { %11609 = vrot.lane.b32.xlu0 %v11608_v45, %s12519_s27 }
  0x7d   : > { %11624 = vrot.lane.b32.xlu1 %v11623_v51, %s12519_s27 }
  0x7e   : > { %11619 = vrot.lane.b32.xlu0 %v11618_v53, %s12519_s27  ;;  %v567_v53 = vld [vmem:[%s12732_s20 + $0x90] sm:$0xff] }
  0x81   : > { %11634 = vrot.lane.b32.xlu1 %v11633_v57, %s12519_s27 }
  0x82   : > { %11629 = vrot.lane.b32.xlu0 %v11628_v60, %s12519_s27 }
  0x85   : > { %11644 = vrot.lane.b32.xlu1 %v11643_v1, %s12519_s27 }
  0x86   : > { %11639 = vrot.lane.b32.xlu0 %v11638_v4, %s12519_s27 }
  0x89   : > { %11654 = vrot.lane.b32.xlu1 %v11653_v5, %s12519_s27 }
  0x8a   : > { %11649 = vrot.lane.b32.xlu0 %v11648_v6, %s12519_s27  ;;  %v580_v6 = vld [vmem:[%s12732_s20 + $0xf8] sm:$0xff] }
  0x8d   : > { %11664 = vrot.lane.b32.xlu1 %v11663_v11, %s12519_s27  ;;  %v574_v11 = vld [vmem:[%s12732_s20 + $0xc8] sm:$0xff] }
  0x8e   : > { %11659 = vrot.lane.b32.xlu0 %v11658_v12, %s12519_s27 }
  0x91   : > { %802 = vrot.lane.b32.xlu1 %v650_v17, %s12519_s27 }
  0x92   : > { %11669 = vrot.lane.b32.xlu0 %v11668_v15, %s12519_s27  ;;  %s544_s27 = scalar_lea.vmem %s15120_s1, %s9697_s15  ;;  %s10536_s15 = sshll.u32 %s12625_s22, 4 }
  0xd3   : > { %v11560_v24 = vpop.permute.xlu1 %11559 }
  0xd4   : > { %v11562_v25 = vunpack.i.h.bf16 %v11560_v24  ;;  %v11561_v26 = vunpack.i.l.bf16 %v11560_v24  ;;  %v11550_v27 = vpop.permute.xlu0 %11549 }
  0xd5   : > { %v11552_v28 = vunpack.i.h.bf16 %v11550_v27  ;;  %v11551_v29 = vunpack.i.l.bf16 %v11550_v27 }
  0xd6   : > { %v861_v32 = vsel %vm855_vm1, %v557_v20, %v11562_v25  ;;  %v858_v35 = vsel %vm855_vm1, %v551_v21, %v11561_v26  ;;  %v579_v21 = vld [vmem:[%s12732_s20 + $0xf0] sm:$0xff] }
  0xd7   : > { %v910_v36 = vpack.c.bf16 %v861_v32, %v861_v32  ;;  %v856_v37 = vsel %vm855_vm1, %v549_v22, %v11551_v29  ;;  %v857_v38 = vsel %vm855_vm1, %v550_v23, %v11552_v28  ;;  %v11565_v39 = vpop.permute.xlu1 %11564  ;;  %v908_v40 = vpack.c.bf16 %v858_v35, %v858_v35 }
  0xd8   : > { %v12849_v41 = vpack.c.bf16 %v857_v38, %v856_v37  ;;  %v11567_v42 = vunpack.i.h.bf16 %v11565_v39  ;;  %v11566_v43 = vunpack.i.l.bf16 %v11565_v39  ;;  %v11555_v44 = vpop.permute.xlu0 %11554  ;;  %v586_v37 = vld [vmem:[%s12732_s20 + $0x128] sm:$0xff] }
  0xd9   : > { %v12851_v45 = vshll.u32 %v910_v36, 16  ;;  %v11557_v46 = vunpack.i.h.bf16 %v11555_v44  ;;  %v11556_v47 = vunpack.i.l.bf16 %v11555_v44  ;;  %v952_v50 = vshll.u32 %v908_v40, 16 }
  0xda   : > { %v863_v51 = vsel %vm855_vm1, %v562_v31, %v11567_v42  ;;  %v862_v52 = vsel %vm855_vm1, %v561_v30, %v11566_v43  ;;  %v945_v55 = vshrl.u32 %v12849_v41, 16  ;;  %v947_v56 = vshll.u32 %v12849_v41, 16 }
  0xdb   : > { %v966_v57 = vrot.slane %v12851_v45, 1  ;;  %v12862_v58 = vpack.c.bf16 %v863_v51, %v862_v52  ;;  %v860_v59 = vsel %vm855_vm1, %v556_v34, %v11557_v46  ;;  %v859_v60 = vsel %vm855_vm1, %v555_v33, %v11556_v47  ;;  %v11575_v61 = vpop.permute.xlu1 %11574  ;;  %v575_v33 = vld [vmem:[%s12732_s20 + $0xd0] sm:$0x1]  ;;  %v581_v34 = vld [vmem:[%s12732_s20 + $0x100] sm:$0x1] }
  0xdc   : > { %v12866_v62 = vpack.c.bf16 %v860_v59, %v859_v60  ;;  %v11577_v63 = vunpack.i.h.bf16 %v11575_v61  ;;  %v11576_v0 = vunpack.i.l.bf16 %v11575_v61  ;;  %v11570_v1 = vpop.permute.xlu0 %11569  ;;  %v949_v2 = vrot.slane %v947_v56, 1  ;;  %v587_v61 = vld [vmem:[%s12732_s20 + $0x130] sm:$0x1] }
  0xdd   : > { %v11572_v3 = vunpack.i.h.bf16 %v11570_v1  ;;  %v11571_v4 = vunpack.i.l.bf16 %v11570_v1  ;;  %v954_v5 = vrot.slane %v952_v50, 1  ;;  %v969_v7 = vshrl.u32 %v12862_v58, 16  ;;  %v585_v50 = vld [vmem:[%s12732_s20 + $0x120] sm:$0xff] }
  0xde   : > { %v867_v8 = vsel %vm855_vm1, %v569_v49, %v11577_v63  ;;  %v864_v9 = vsel %vm855_vm1, %v563_v48, %v11576_v0  ;;  %v950_v12 = vor.u32 %v949_v2, %v945_v55  ;;  %v957_v13 = vshrl.u32 %v12866_v62, 16  ;;  %v593_v63 = vld [vmem:[%s12732_s20 + $0x160] sm:$0x1] }
  0xdf   : > { %v914_v14 = vpack.c.bf16 %v867_v8, %v867_v8  ;;  %v912_v15 = vpack.c.bf16 %v864_v9, %v864_v9  ;;  %v866_v17 = vsel %vm855_vm1, %v568_v54, %v11572_v3  ;;  %v865_v20 = vsel %vm855_vm1, %v567_v53, %v11571_v4  ;;  %v11585_v22 = vpop.permute.xlu1 %11584  ;;  %v592_v9 = vld [vmem:[%s12732_s20 + $0x158] sm:$0xff] }
  0xe0   : > { %v11580_v23 = vpop.permute.xlu0 %11579  ;;  %v955_v24 = vsel %vm943_vm2, %v950_v12, %v954_v5  ;;  %v11587_v25 = vunpack.i.h.bf16 %v11585_v22  ;;  %v11586_v26 = vunpack.i.l.bf16 %v11585_v22  ;;  %v12882_v31 = vpack.c.bf16 %v866_v17, %v865_v20 }
  0xe1   : > { %v12879_v27 = vshll.u32 %v914_v14, 16  ;;  %v976_v28 = vshll.u32 %v912_v15, 16  ;;  %v11582_v29 = vunpack.i.h.bf16 %v11580_v23  ;;  %v11581_v30 = vunpack.i.l.bf16 %v11580_v23  ;;  %11217 = vmatprep.mubr.msk.bf16.mxu1 %vm1144_vm3, %v955_v24  ;;  %v591_v15 = vld [vmem:[%s12732_s20 + $0x150] sm:$0xff] }
  0xe2   : > { %v872_v32 = vsel %vm855_vm1, %v580_v6, %v11587_v25  ;;  %v959_v35 = vshll.u32 %v12866_v62, 16  ;;  %v971_v36 = vshll.u32 %v12862_v58, 16  ;;  %v871_v46 = vsel %vm855_vm1, %v579_v21, %v11586_v26  ;;  %v598_v25 = vld [vmem:[%s12732_s20 + $0x188] sm:$0xff] }
  0xe3   : > { %v990_v38 = vrot.slane %v12879_v27, 1  ;;  %v978_v39 = vrot.slane %v976_v28, 1  ;;  %v869_v40 = vsel %vm855_vm1, %v574_v11, %v11582_v29  ;;  %v868_v42 = vsel %vm855_vm1, %v573_v10, %v11581_v30  ;;  %v11595_v43 = vpop.permute.xlu1 %11594  ;;  %v597_v30 = vld [vmem:[%s12732_s20 + $0x180] sm:$0xff] }
  0xe4   : > { %v12893_v44 = vpack.c.bf16 %v869_v40, %v868_v42  ;;  %v11590_v47 = vpop.permute.xlu0 %11589  ;;  %v961_v48 = vrot.slane %v959_v35, 1  ;;  %v973_v49 = vrot.slane %v971_v36, 1  ;;  %v11597_v53 = vunpack.i.h.bf16 %v11595_v43  ;;  %v604_v42 = vld [vmem:[%s12732_s20 + $0x1b8] sm:$0xff] }
  0xe5   : > { %v11592_v51 = vunpack.i.h.bf16 %v11590_v47  ;;  %v11591_v52 = vunpack.i.l.bf16 %v11590_v47  ;;  %v11596_v54 = vunpack.i.l.bf16 %v11595_v43  ;;  %v981_v59 = vshrl.u32 %v12882_v31, 16 }
  0xe6   : > { %v962_v55 = vor.u32 %v961_v48, %v957_v13  ;;  %v974_v56 = vor.u32 %v973_v49, %v969_v7  ;;  %v983_v60 = vshll.u32 %v12882_v31, 16  ;;  %v12901_v0 = vpack.c.bf16 %v872_v32, %v871_v46  ;;  %v603_v48 = vld [vmem:[%s12732_s20 + $0x1b0] sm:$0xff] }
  0xe7   : > { %v873_v1 = vsel %vm855_vm1, %v581_v34, %v11592_v51  ;;  %v870_v2 = vsel %vm855_vm1, %v575_v33, %v11591_v52  ;;  %v875_v3 = vsel %vm855_vm1, %v586_v37, %v11597_v53  ;;  %v11605_v4 = vpop.permute.xlu1 %11604  ;;  %v874_v11 = vsel %vm855_vm1, %v585_v50, %v11596_v54  ;;  %v599_v49 = vld [vmem:[%s12732_s20 + $0x190] sm:$0x1]  ;;  %v605_v50 = vld [vmem:[%s12732_s20 + $0x1c0] sm:$0x1] }
  0xe8   : > { %v918_v5 = vpack.c.bf16 %v873_v1, %v873_v1  ;;  %v916_v6 = vpack.c.bf16 %v870_v2, %v870_v2  ;;  %v967_v7 = vsel %vm943_vm2, %v962_v55, %v966_v57  ;;  %v979_v8 = vsel %vm943_vm2, %v974_v56, %v978_v39  ;;  %v11600_v10 = vpop.permute.xlu0 %11599 }
  0xe9   : > { %11218 = vmatmul.mubr.msk.bf16.vlgmr.msra.gmra.mrb[0].mxu1 %vm1144_vm3, %v967_v7  ;;  %11319 = vmatprep.mubr.msk.bf16.mxu0 %vm1144_vm3, %v967_v7  ;;  %v985_v12 = vrot.slane %v983_v60, 1  ;;  %v11607_v13 = vunpack.i.h.bf16 %v11605_v4  ;;  %v11606_v14 = vunpack.i.l.bf16 %v11605_v4  ;;  %v11602_v57 = vunpack.i.h.bf16 %v11600_v10 }
  0xea   : > { %v12915_v17 = vshll.u32 %v918_v5, 16  ;;  %v1000_v45 = vshll.u32 %v916_v6, 16  ;;  %11250 = vmatpush3.bf16.msra.mxu1 %v12823_v16  ;;  %11320 = vmatmul.mubr.msk.bf16.vlgmr.msra.gmra.mrb[0].mxu0 %vm1144_vm3, %v979_v8  ;;  %v11601_v20 = vunpack.i.l.bf16 %v11600_v10  ;;  %v993_v24 = vshrl.u32 %v12893_v44, 16 }
  0xeb   : > { %11221 = vmatprep.mubr.msk.bf16.mxu1 %vm1144_vm3, %v979_v8  ;;  %v986_v21 = vor.u32 %v985_v12, %v981_v59  ;;  %v879_v22 = vsel %vm855_vm1, %v593_v63, %v11607_v13  ;;  %v876_v23 = vsel %vm855_vm1, %v587_v61, %v11606_v14  ;;  %v11615_v26 = vpop.permute.xlu1 %11614  ;;  %11479 = vmatprep.subr.msk.bf16.mxu1 %vm1193_vm0, %v12831_v18  ;;  %v995_v36 = vshll.u32 %v12893_v44, 16  ;;  %v609_v14 = vld [vmem:[%s12732_s20 + $0x1e0] sm:$0xff] }
  0xec   : > { %v1014_v16 = vrot.slane %v12915_v17, 1  ;;  %v1002_v27 = vrot.slane %v1000_v45, 1  ;;  %v922_v28 = vpack.c.bf16 %v879_v22, %v879_v22  ;;  %v920_v29 = vpack.c.bf16 %v876_v23, %v876_v23  ;;  %v11610_v32 = vpop.permute.xlu0 %11609  ;;  %v611_v23 = vld [vmem:[%s12732_s20 + $0x1f0] sm:$0x1] }
  0xed   : > { %v12928_v33 = vpack.c.bf16 %v875_v3, %v874_v11  ;;  %v991_v34 = vsel %vm943_vm2, %v986_v21, %v990_v38  ;;  %v878_v35 = vsel %vm855_vm1, %v592_v9, %v11602_v57  ;;  %v877_v39 = vsel %vm855_vm1, %v591_v15, %v11601_v20  ;;  %v610_v9 = vld [vmem:[%s12732_s20 + $0x1e8] sm:$0xff]  ;;  %v617_v15 = vld [vmem:[%s12732_s20 + $0x220] sm:$0x1] }
  0xee   : > { %11323 = vmatprep.mubr.msk.bf16.mxu0 %vm1144_vm3, %v991_v34  ;;  %v12934_v18 = vshll.u32 %v922_v28, 16  ;;  %v12936_v37 = vshll.u32 %v920_v29, 16  ;;  %v11612_v40 = vunpack.i.h.bf16 %v11610_v32  ;;  %v997_v43 = vrot.slane %v995_v36, 1 }
  0xef   : > { %v11611_v46 = vunpack.i.l.bf16 %v11610_v32  ;;  %v1005_v47 = vshrl.u32 %v12901_v0, 16  ;;  %v1007_v38 = vshll.u32 %v12901_v0, 16  ;;  %v11625_v51 = vpop.permute.xlu1 %11624  ;;  %v11617_v55 = vunpack.i.h.bf16 %v11615_v26 }
  0xf0   : > { %v1038_v52 = vrot.slane %v12934_v18, 1  ;;  %v1026_v53 = vrot.slane %v12936_v37, 1  ;;  %v881_v54 = vsel %vm855_vm1, %v598_v25, %v11612_v40  ;;  %v11620_v56 = vpop.permute.xlu0 %11619  ;;  %v998_v59 = vor.u32 %v997_v43, %v993_v24  ;;  %v615_v37 = vld [vmem:[%s12732_s20 + $0x210] sm:$0xff]  ;;  %v621_v18 = vld [vmem:[%s12732_s20 + $0x240] sm:$0xff] }
  0xf1   : > { %11222 = vmatmul.mubr.msk.bf16.gmra.mrb[4].mxu1 %vm1144_vm3, %v991_v34  ;;  %v880_v60 = vsel %vm855_vm1, %v597_v30, %v11611_v46  ;;  %v1009_v61 = vrot.slane %v1007_v38, 1  ;;  %v11616_v63 = vunpack.i.l.bf16 %v11615_v26  ;;  %v12950_v1 = vpack.c.bf16 %v878_v35, %v877_v39  ;;  %v616_v39 = vld [vmem:[%s12732_s20 + $0x218] sm:$0xff] }
  0xf2   : > { %v12952_v2 = vpack.c.bf16 %v881_v54, %v880_v60  ;;  %v11622_v3 = vunpack.i.h.bf16 %v11620_v56  ;;  %v11621_v4 = vunpack.i.l.bf16 %v11620_v56  ;;  %v1003_v5 = vsel %vm943_vm2, %v998_v59, %v1002_v27 }
  0xf3   : > { %v1010_v6 = vor.u32 %v1009_v61, %v1005_v47  ;;  %v884_v7 = vsel %vm855_vm1, %v604_v42, %v11617_v55  ;;  %v1017_v8 = vshrl.u32 %v12928_v33, 16  ;;  %11324 = vmatmul.mubr.msk.bf16.gmra.mrb[4].mxu0 %vm1144_vm3, %v1003_v5  ;;  %11225 = vmatprep.mubr.msk.bf16.mxu1 %vm1144_vm3, %v1003_v5  ;;  %v883_v10 = vsel %vm855_vm1, %v603_v48, %v11616_v63  ;;  %v11635_v17 = vpop.permute.xlu1 %11634 }
  0xf4   : > { %v885_v11 = vsel %vm855_vm1, %v605_v50, %v11622_v3  ;;  %v882_v12 = vsel %vm855_vm1, %v599_v49, %v11621_v4  ;;  %v1019_v13 = vshll.u32 %v12928_v33, 16  ;;  %v11630_v45 = vpop.permute.xlu0 %11629  ;;  %v11627_v22 = vunpack.i.h.bf16 %v11625_v51 }
  0xf5   : > { %v1015_v57 = vsel %vm943_vm2, %v1010_v6, %v1014_v16  ;;  %v926_v20 = vpack.c.bf16 %v885_v11, %v885_v11  ;;  %v924_v21 = vpack.c.bf16 %v882_v12, %v882_v12  ;;  %v11626_v25 = vunpack.i.l.bf16 %v11625_v51  ;;  %v622_v6 = vld [vmem:[%s12732_s20 + $0x248] sm:$0xff]  ;;  %v623_v11 = vld [vmem:[%s12732_s20 + $0x250] sm:$0x1]  ;;  %v629_v12 = vld [vmem:[%s12732_s20 + $0x280] sm:$0x1] }
  0xf6   : > { %11327 = vmatprep.mubr.msk.bf16.mxu0 %vm1144_vm3, %v1015_v57  ;;  %v1021_v24 = vrot.slane %v1019_v13, 1  ;;  %v1029_v26 = vshrl.u32 %v12950_v1, 16  ;;  %v1031_v27 = vshll.u32 %v12950_v1, 16  ;;  %v12971_v28 = vpack.c.bf16 %v884_v7, %v883_v10  ;;  %v628_v10 = vld [vmem:[%s12732_s20 + $0x278] sm:$0xff] }
  0xf7   : > { %v12973_v29 = vshll.u32 %v926_v20, 16  ;;  %v1048_v30 = vshll.u32 %v924_v21, 16  ;;  %v11637_v16 = vunpack.i.h.bf16 %v11635_v17  ;;  %v887_v34 = vsel %vm855_vm1, %v610_v9, %v11627_v22  ;;  %v11645_v42 = vpop.permute.xlu1 %11644 }
  0xf8   : > { %v1022_v32 = vor.u32 %v1021_v24, %v1017_v8  ;;  %v1033_v35 = vrot.slane %v1031_v27, 1  ;;  %v11636_v36 = vunpack.i.l.bf16 %v11635_v17  ;;  %v11640_v40 = vpop.permute.xlu0 %11639  ;;  %v886_v47 = vsel %vm855_vm1, %v609_v14, %v11626_v25 }
  0xf9   : > { %v1062_v43 = vrot.slane %v12973_v29, 1  ;;  %v1050_v46 = vrot.slane %v1048_v30, 1  ;;  %11226 = vmatmul.mubr.msk.bf16.gmra.mrb[8].mxu1 %vm1144_vm3, %v1015_v57  ;;  %v891_v38 = vsel %vm855_vm1, %v617_v15, %v11637_v16  ;;  %v11632_v55 = vunpack.i.h.bf16 %v11630_v45  ;;  %v627_v57 = vld [vmem:[%s12732_s20 + $0x270] sm:$0xff]  ;;  %v634_v30 = vld [vmem:[%s12732_s20 + $0x2a8] sm:$0xff] }
  0xfa   : > { %v1027_v48 = vsel %vm943_vm2, %v1022_v32, %v1026_v53  ;;  %v1034_v49 = vor.u32 %v1033_v35, %v1029_v26  ;;  %v930_v50 = vpack.c.bf16 %v891_v38, %v891_v38  ;;  %v888_v51 = vsel %vm855_vm1, %v611_v23, %v11636_v36  ;;  %v633_v36 = vld [vmem:[%s12732_s20 + $0x2a0] sm:$0xff] }
  0xfb   : > { %11229 = vmatprep.mubr.msk.bf16.mxu1 %vm1144_vm3, %v1027_v48  ;;  %v928_v54 = vpack.c.bf16 %v888_v51, %v888_v51  ;;  %v11631_v56 = vunpack.i.l.bf16 %v11630_v45  ;;  %v1041_v59 = vshrl.u32 %v12952_v2, 16  ;;  %11328 = vmatmul.mubr.msk.bf16.gmra.mrb[8].mxu0 %vm1144_vm3, %v1027_v48  ;;  %v1043_v61 = vshll.u32 %v12952_v2, 16  ;;  %v11655_v14 = vpop.permute.xlu1 %11654 }
  0xfc   : > { %v1039_v53 = vsel %vm943_vm2, %v1034_v49, %v1038_v52  ;;  %v12990_v60 = vshll.u32 %v930_v50, 16  ;;  %v12993_v63 = vpack.c.bf16 %v887_v34, %v886_v47  ;;  %v890_v4 = vsel %vm855_vm1, %v616_v39, %v11632_v55  ;;  %v11650_v13 = vpop.permute.xlu0 %11649  ;;  %v635_v49 = vld [vmem:[%s12732_s20 + $0x2b0] sm:$0x1] }
  0xfd   : > { %11331 = vmatprep.mubr.msk.bf16.mxu0 %vm1144_vm3, %v1039_v53  ;;  %v12996_v3 = vshll.u32 %v928_v54, 16  ;;  %v889_v5 = vsel %vm855_vm1, %v615_v37, %v11631_v56  ;;  %v1045_v7 = vrot.slane %v1043_v61, 1  ;;  %v11642_v8 = vunpack.i.h.bf16 %v11640_v40 }
  0xfe   : > { %v1086_v52 = vrot.slane %v12990_v60, 1  ;;  %v11641_v9 = vunpack.i.l.bf16 %v11640_v40  ;;  %v1053_v17 = vshrl.u32 %v12971_v28, 16  ;;  %v1055_v45 = vshll.u32 %v12971_v28, 16 }
  0xff   : > { %v1074_v15 = vrot.slane %v12996_v3, 1  ;;  %v13010_v20 = vpack.c.bf16 %v890_v4, %v889_v5  ;;  %v1046_v21 = vor.u32 %v1045_v7, %v1041_v59  ;;  %v11647_v22 = vunpack.i.h.bf16 %v11645_v42  ;;  %v11665_v50 = vpop.permute.xlu1 %11664  ;;  %v641_v4 = vld [vmem:[%s12732_s20 + $0x2e0] sm:$0x1]  ;;  %v639_v7 = vld [vmem:[%s12732_s20 + $0x2d0] sm:$0xff] }
 0x100   : > { %v11646_v23 = vunpack.i.l.bf16 %v11645_v42  ;;  %v1057_v24 = vrot.slane %v1055_v45, 1  ;;  %v11652_v25 = vunpack.i.h.bf16 %v11650_v13  ;;  %v11651_v26 = vunpack.i.l.bf16 %v11650_v13  ;;  %v11660_v5 = vpop.permute.xlu0 %11659 }
 0x101   : > { %11230 = vmatmul.mubr.msk.bf16.gmra.mrb[12].mxu1 %vm1144_vm3, %v1039_v53  ;;  %v1065_v27 = vshrl.u32 %v12993_v63, 16  ;;  %v1051_v16 = vsel %vm943_vm2, %v1046_v21, %v1050_v46  ;;  %v893_v32 = vsel %vm855_vm1, %v622_v6, %v11642_v8  ;;  %v892_v34 = vsel %vm855_vm1, %v621_v18, %v11641_v9 }
 0x102   : > { %v1067_v35 = vshll.u32 %v12993_v63, 16  ;;  %11233 = vmatprep.mubr.msk.bf16.mxu1 %vm1144_vm3, %v1051_v16  ;;  %v1058_v37 = vor.u32 %v1057_v24, %v1053_v17  ;;  %v896_v39 = vsel %vm855_vm1, %v628_v10, %v11647_v22  ;;  %v897_v40 = vsel %vm855_vm1, %v629_v12, %v11652_v25  ;;  %v640_v12 = vld [vmem:[%s12732_s20 + $0x2d8] sm:$0xff] }
 0x103   : > { %v894_v42 = vsel %vm855_vm1, %v623_v11, %v11651_v26  ;;  %11332 = vmatmul.mubr.msk.bf16.gmra.mrb[12].mxu0 %vm1144_vm3, %v1051_v16  ;;  %v895_v46 = vsel %vm855_vm1, %v627_v57, %v11646_v23  ;;  %v11657_v48 = vunpack.i.h.bf16 %v11655_v14  ;;  %v11656_v54 = vunpack.i.l.bf16 %v11655_v14 }
 0x104   : > { %v932_v47 = vpack.c.bf16 %v894_v42, %v894_v42  ;;  %v1069_v38 = vrot.slane %v1067_v35, 1  ;;  %v1063_v51 = vsel %vm943_vm2, %v1058_v37, %v1062_v43  ;;  %v1077_v55 = vshrl.u32 %v13010_v20, 16 }
 0x105   : > { %v1079_v56 = vshll.u32 %v13010_v20, 16  ;;  %v13032_v59 = vpack.c.bf16 %v893_v32, %v892_v34  ;;  %11335 = vmatprep.mubr.msk.bf16.mxu0 %vm1144_vm3, %v1063_v51  ;;  %v934_v53 = vpack.c.bf16 %v897_v40, %v897_v40  ;;  %v899_v3 = vsel %vm855_vm1, %v634_v30, %v11657_v48 }
 0x106   : > { %v1070_v61 = vor.u32 %v1069_v38, %v1065_v27  ;;  %v898_v29 = vsel %vm855_vm1, %v633_v36, %v11656_v54  ;;  %v11667_v43 = vunpack.i.h.bf16 %v11665_v50  ;;  %v11666_v6 = vunpack.i.l.bf16 %v11665_v50 }
 0x107   : > { %v1081_v18 = vrot.slane %v1079_v56, 1  ;;  %v13039_v8 = vpack.c.bf16 %v896_v39, %v895_v46  ;;  %v1096_v9 = vshll.u32 %v932_v47, 16  ;;  %v13042_v11 = vpack.c.bf16 %v899_v3, %v898_v29  ;;  %v647_v56 = vld [vmem:[%s12732_s20 + $0x310] sm:$0x1]  ;;  %v646_v3 = vld [vmem:[%s12732_s20 + $0x308] sm:$0xff] }
 0x108   : > { %v1075_v10 = vsel %vm943_vm2, %v1070_v61, %v1074_v15  ;;  %v903_v14 = vsel %vm855_vm1, %v641_v4, %v11667_v43  ;;  %v900_v17 = vsel %vm855_vm1, %v635_v49, %v11666_v6  ;;  %v11662_v45 = vunpack.i.h.bf16 %v11660_v5  ;;  %v645_v61 = vld [vmem:[%s12732_s20 + $0x300] sm:$0xff]  ;;  %v11670_v4 = vpop.permute.xlu0 %11669  ;;  %s15079_s20 = scalar_lea.hbm %s15204_s26, %s10536_s15 }
 0x109   : > { %11234 = vmatmul.mubr.msk.bf16.gmra.mrb[16].mxu1 %vm1144_vm3, %v1063_v51  ;;  %v1082_v13 = vor.u32 %v1081_v18, %v1077_v55  ;;  %v1108_v57 = vshll.u32 %v934_v53, 16  ;;  %v938_v21 = vpack.c.bf16 %v903_v14, %v903_v14  ;;  %v936_v22 = vpack.c.bf16 %v900_v17, %v900_v17 }
 0x10a   : > { %11237 = vmatprep.mubr.msk.bf16.mxu1 %vm1144_vm3, %v1075_v10  ;;  %v11661_v23 = vunpack.i.l.bf16 %v11660_v5  ;;  %v902_v24 = vsel %vm855_vm1, %v640_v12, %v11662_v45  ;;  %v1089_v25 = vshrl.u32 %v13032_v59, 16  ;;  %v1091_v26 = vshll.u32 %v13032_v59, 16  ;;  %v803_v5 = vpop.permute.xlu1 %802 }
 0x10b   : > { %v1087_v15 = vsel %vm943_vm2, %v1082_v13, %v1086_v52  ;;  %v1098_v27 = vrot.slane %v1096_v9, 1  ;;  %11336 = vmatmul.mubr.msk.bf16.gmra.mrb[16].mxu0 %vm1144_vm3, %v1075_v10  ;;  %v1101_v16 = vshrl.u32 %v13039_v8, 16  ;;  %v1103_v32 = vshll.u32 %v13039_v8, 16 }
 0x10c   : > { %v901_v30 = vsel %vm855_vm1, %v639_v7, %v11661_v23  ;;  %11339 = vmatprep.mubr.msk.bf16.mxu0 %vm1144_vm3, %v1087_v15  ;;  %v1132_v60 = vshll.u32 %v938_v21, 16  ;;  %v1093_v52 = vrot.slane %v1091_v26, 1  ;;  %v1115_v35 = vshll.u32 %v13042_v11, 16  ;;  %v11686_v26 = vld [vmem:[#allocation4 + $0x120] sm:$0xff]  }
 0x10d   : > { %v13060_v34 = vpack.c.bf16 %v902_v24, %v901_v30  ;;  %v1110_v36 = vrot.slane %v1108_v57, 1  ;;  %v1120_v37 = vshll.u32 %v936_v22, 16  ;;  %v1105_v39 = vrot.slane %v1103_v32, 1  ;;  %v11684_v24 = vld [vmem:[#allocation4 + $0x118] sm:$0xff]   ;;  %v11687_v32 = vld [vmem:[#allocation4 + $0x168] sm:$0xff]  }
 0x10e   : > { %v1094_v40 = vor.u32 %v1093_v52, %v1089_v25  ;;  %v1113_v42 = vshrl.u32 %v13042_v11, 16  ;;  %v1117_v46 = vrot.slane %v1115_v35, 1  ;;  %v1134_v48 = vrot.slane %v1132_v60, 1  ;;  %v11685_v25 = vld [vmem:[#allocation4 + $0x160] sm:$0xff]   ;;  %v11689_v52 = vld [vmem:[#allocation4 + $0x170] sm:$0xff]  }
 0x10f   : > { %v1127_v47 = vshll.u32 %v13060_v34, 16  ;;  %v1106_v38 = vor.u32 %v1105_v39, %v1101_v16  ;;  %v1122_v50 = vrot.slane %v1120_v37, 1  ;;  %v1125_v54 = vshrl.u32 %v13060_v34, 16  ;;  %v11690_v35 = vld [vmem:[#allocation4 + $0x130] sm:$0xff]  }
 0x110   : > { %v1099_v49 = vsel %vm943_vm2, %v1094_v40, %v1098_v27  ;;  %v1118_v53 = vor.u32 %v1117_v46, %v1113_v42  ;;  %v11672_v18 = vunpack.i.h.bf16 %v11670_v4  ;;  %v11671_v43 = vunpack.i.l.bf16 %v11670_v4  ;;  %v11691_v40 = vld [vmem:[#allocation4 + $0x178] sm:$0xff]  }
 0x111   : > { %11238 = vmatmul.mubr.msk.bf16.gmra.mrb[20].mxu1 %vm1144_vm3, %v1087_v15  ;;  %v1111_v51 = vsel %vm943_vm2, %v1106_v38, %v1110_v36  ;;  %v1129_v55 = vrot.slane %v1127_v47, 1  ;;  %v906_v6 = vsel %vm855_vm1, %v647_v56, %v803_v5  ;;  %v11692_v46 = vld [vmem:[#allocation4 + $0x138] sm:$0xff]  }
 0x112   : > { %11241 = vmatprep.mubr.msk.bf16.mxu1 %vm1144_vm3, %v1099_v49  ;;  %v1123_v7 = vsel %vm943_vm2, %v1118_v53, %v1122_v50  ;;  %v940_v9 = vpack.c.bf16 %v906_v6, %v906_v6  ;;  %v905_v10 = vsel %vm855_vm1, %v646_v3, %v11672_v18  ;;  %v904_v12 = vsel %vm855_vm1, %v645_v61, %v11671_v43  ;;  %vm13337_vm1 = vmor %vm3028_vm12, %vm3029_vm13 }
 0x113   : > { %11340 = vmatmul.mubr.msk.bf16.gmra.mrb[20].mxu0 %vm1144_vm3, %v1099_v49  ;;  %v1130_v29 = vor.u32 %v1129_v55, %v1125_v54  ;;  %v939_v13 = vpack.c.bf16 %v905_v10, %v904_v12 }
 0x114   : > { %11343 = vmatprep.mubr.msk.bf16.mxu0 %vm1144_vm3, %v1111_v51  ;;  %v1773_v14 = vshll.u32 %v940_v9, 16 }
 0x115   : > { %v1135_v17 = vsel %vm943_vm2, %v1130_v29, %v1134_v48  ;;  %v1768_v57 = vshll.u32 %v939_v13, 16  ;;  %v1766_v21 = vshrl.u32 %v939_v13, 16  ;;  %v11693_v29 = vld [vmem:[#allocation4 + $0x1c0] sm:$0xff]  }
 0x116   : > { %v1775_v45 = vrot.slane %v1773_v14, 1 }
 0x117   : > { %v1770_v22 = vrot.slane %v1768_v57, 1 }
 0x119   : > { %11242 = vmatmul.mubr.msk.bf16.gmra.mrb[24].mxu1 %vm1144_vm3, %v1111_v51  ;;  %v1771_v23 = vor.u32 %v1770_v22, %v1766_v21 }
 0x11a   : > { %11245 = vmatprep.mubr.msk.bf16.mxu1 %vm1144_vm3, %v1123_v7 }
 0x11b   : > { %11344 = vmatmul.mubr.msk.bf16.gmra.mrb[24].mxu0 %vm1144_vm3, %v1123_v7  ;;  %v1776_v15 = vsel %vm943_vm2, %v1771_v23, %v1775_v45 }
 0x11c   : > { %11347 = vmatprep.mubr.msk.bf16.mxu0 %vm1144_vm3, %v1135_v17 }
 0x121   : > { %11246 = vmatmul.mubr.msk.bf16.gmra.mrb[28].mxu1 %vm1144_vm3, %v1135_v17 }
 0x122   : > { %11251 = vmatprep.mubr.msk.bf16.mxu1 %vm1144_vm3, %v12849_v41  ;;  %v11678_v41 = vld [vmem:[#allocation4 + $0x100] sm:$0xff]  }
 0x123   : > { %11348 = vmatmul.mubr.msk.bf16.gmra.mrb[28].mxu0 %vm1144_vm3, %v1776_v15 }
 0x129   : > { %11252 = vmatmul.mubr.msk.bf16.vlgmr.msra.gmra.mrb[0].mxu1 %vm1144_vm3, %v12866_v62 }
 0x12a   : > { %11284 = vmatpush3.bf16.msra.mxu1 %v12835_v19  ;;  %11255 = vmatprep.mubr.msk.bf16.mxu1 %vm1144_vm3, %v12862_v58  ;;  %v11677_v19 = vld [vmem:[#allocation4 + $0x140] sm:$0xff]  }
 0x12b   : > { %10675 = vmatprep.subr.bf16.mxu1 %v11677_v19 }
 0x131   : > { %11256 = vmatmul.mubr.msk.bf16.gmra.mrb[4].mxu1 %vm1144_vm3, %v12882_v31 }
 0x132   : > { %11259 = vmatprep.mubr.msk.bf16.mxu1 %vm1144_vm3, %v12893_v44 }
 0x139   : > { %11260 = vmatmul.mubr.msk.bf16.gmra.mrb[8].mxu1 %vm1144_vm3, %v12901_v0 }
 0x13a   : > { %11263 = vmatprep.mubr.msk.bf16.mxu1 %vm1144_vm3, %v12928_v33 }
 0x141   : > { %11264 = vmatmul.mubr.msk.bf16.gmra.mrb[12].mxu1 %vm1144_vm3, %v12950_v1 }
 0x142   : > { %11267 = vmatprep.mubr.msk.bf16.mxu1 %vm1144_vm3, %v12952_v2 }
 0x149   : > { %11268 = vmatmul.mubr.msk.bf16.gmra.mrb[16].mxu1 %vm1144_vm3, %v12971_v28 }
 0x14a   : > { %11271 = vmatprep.mubr.msk.bf16.mxu1 %vm1144_vm3, %v12993_v63 }
 0x151   : > { %11272 = vmatmul.mubr.msk.bf16.gmra.mrb[20].mxu1 %vm1144_vm3, %v13010_v20 }
 0x152   : > { %11275 = vmatprep.mubr.msk.bf16.mxu1 %vm1144_vm3, %v13032_v59 }
 0x159   : > { %11276 = vmatmul.mubr.msk.bf16.gmra.mrb[24].mxu1 %vm1144_vm3, %v13039_v8 }
 0x15a   : > { %11279 = vmatprep.mubr.msk.bf16.mxu1 %vm1144_vm3, %v13042_v11 }
 0x161   : > { %11280 = vmatmul.mubr.msk.bf16.gmra.mrb[28].mxu1 %vm1144_vm3, %v13060_v34 }
 0x162   : > { %11285 = vmatprep.mubr.msk.bf16.mxu1 %vm1144_vm3, %v12866_v62 }
 0x169   : > { %11286 = vmatmul.mubr.msk.bf16.vlgmr.msra.gmra.mrb[0].mxu1 %vm1144_vm3, %v12862_v58 }
 0x16a   : > { %11289 = vmatprep.mubr.msk.bf16.mxu1 %vm1144_vm3, %v12882_v31  ;;  %10676 = vmatpush3.bf16.msra.mxu1 %v11678_v41 }
 0x171   : > { %11290 = vmatmul.mubr.msk.bf16.gmra.mrb[4].mxu1 %vm1144_vm3, %v12893_v44 }
 0x172   : > { %11293 = vmatprep.mubr.msk.bf16.mxu1 %vm1144_vm3, %v12901_v0  ;;  %v11679_v0 = vld [vmem:[#allocation4 + $0x148] sm:$0xff]  }
 0x173   : > { %10677 = vmatprep.subr.bf16.mxu1 %v11679_v0 }
 0x179   : > { %11294 = vmatmul.mubr.msk.bf16.gmra.mrb[8].mxu1 %vm1144_vm3, %v12928_v33  ;;  %v13159_v33 = vld [vmem:[#allocation4 + $0x108] sm:$0xff]  }
 0x17a   : > { %11297 = vmatprep.mubr.msk.bf16.mxu1 %vm1144_vm3, %v12950_v1  ;;  %v12520_v1 = vmov 0.0   ;;  %10678 = vmatpush3.bf16.msra.mxu1 %v13159_v33 }
 0x17b   : > { %2125 = vst [vmem:[#allocation2 + $0x30] sm:$0xff] %v12520_v1  ;;  %2126 = vst [vmem:[#allocation2 + $0x38] sm:$0xff] %v12520_v1 }
 0x17c   : > { %2119 = vst [vmem:[#allocation2] sm:$0xff] %v12520_v1  ;;  %2120 = vst [vmem:[#allocation2 + $0x8] sm:$0xff] %v12520_v1 }
 0x17d   : > { %2121 = vst [vmem:[#allocation2 + $0x10] sm:$0x3] %v12520_v1  ;;  %2122 = vst [vmem:[#allocation2 + $0x18] sm:$0xff] %v12520_v1 }
 0x17e   : > { %2123 = vst [vmem:[#allocation2 + $0x20] sm:$0xff] %v12520_v1  ;;  %2124 = vst [vmem:[#allocation2 + $0x28] sm:$0x3] %v12520_v1 }
 0x17f   : > { %2127 = vst [vmem:[#allocation2 + $0x40] sm:$0x3] %v12520_v1  ;;  %2128 = vst [vmem:[#allocation2 + $0x48] sm:$0xff] %v12520_v1 }
 0x180   : > { %2129 = vst [vmem:[#allocation2 + $0x50] sm:$0xff] %v12520_v1  ;;  %2130 = vst [vmem:[#allocation2 + $0x58] sm:$0x3] %v12520_v1 }
 0x181   : > { %11298 = vmatmul.mubr.msk.bf16.gmra.mrb[12].mxu1 %vm1144_vm3, %v12952_v2  ;;  %2131 = vst [vmem:[#allocation2 + $0x60] sm:$0xff] %v12520_v1  ;;  %2132 = vst [vmem:[#allocation2 + $0x68] sm:$0xff] %v12520_v1  ;;  %v11681_v2 = vld [vmem:[#allocation4 + $0x150] sm:$0xff]  }
 0x182   : > { %11301 = vmatprep.mubr.msk.bf16.mxu1 %vm1144_vm3, %v12971_v28  ;;  %2133 = vst [vmem:[#allocation2 + $0x70] sm:$0x3] %v12520_v1  ;;  %2134 = vst [vmem:[#allocation2 + $0x78] sm:$0xff] %v12520_v1  ;;  %v11682_v28 = vld [vmem:[#allocation4 + $0x110] sm:$0xff]   ;;  %10679 = vmatprep.subr.bf16.mxu1 %v11681_v2 }
 0x183   : > { %2135 = vst [vmem:[#allocation2 + $0x80] sm:$0xff] %v12520_v1  ;;  %2136 = vst [vmem:[#allocation2 + $0x88] sm:$0x3] %v12520_v1  ;;  %10680 = vmatpush3.bf16.msra.mxu1 %v11682_v28  ;;  %v9773_v6 = vld.sshfl [vmem:[#allocation2] sm:$0xff pattern:$0x75316420] }
 0x184   : > { %2137 = vst [vmem:[#allocation2 + $0x90] sm:$0xff] %v12520_v1  ;;  %2138 = vst [vmem:[#allocation2 + $0x98] sm:$0xff] %v12520_v1  ;;  %v9774_v7 = vld.sshfl [vmem:[#allocation2 + $0x8] sm:$0xff pattern:$0x75316420] }
 0x185   : > { %2139 = vst [vmem:[#allocation2 + $0xa0] sm:$0x3] %v12520_v1  ;;  %2140 = vst [vmem:[#allocation2 + $0xa8] sm:$0xff] %v12520_v1  ;;  %v13292_v9 = vcombine.low %v9773_v6, %v9774_v7  ;;  %v13294_v10 = vcombine.high %v9773_v6, %v9774_v7 }
 0x186   : > { %2141 = vst [vmem:[#allocation2 + $0xb0] sm:$0xff] %v12520_v1  ;;  %2142 = vst [vmem:[#allocation2 + $0xb8] sm:$0x3] %v12520_v1 }
 0x187   : > { %2143 = vst [vmem:[#allocation2 + $0xc0] sm:$0xff] %v12520_v1  ;;  %2144 = vst [vmem:[#allocation2 + $0xc8] sm:$0xff] %v12520_v1  ;;  %v9775_v21 = vld.sshfl [vmem:[#allocation2 + $0x10] sm:$0x11 pattern:$0x75316420]  ;;  %v10539_v22 = vpack.c.bf16 %v13294_v10, %v13292_v9 }
 0x188   : > { %2145 = vst [vmem:[#allocation2 + $0xd0] sm:$0x3] %v12520_v1  ;;  %2146 = vst [vmem:[#allocation2 + $0xd8] sm:$0xff] %v12520_v1 }
 0x189   : > { %11302 = vmatmul.mubr.msk.bf16.gmra.mrb[16].mxu1 %vm1144_vm3, %v12993_v63  ;;  %2147 = vst [vmem:[#allocation2 + $0xe0] sm:$0xff] %v12520_v1  ;;  %2148 = vst [vmem:[#allocation2 + $0xe8] sm:$0x3] %v12520_v1  ;;  %v3032_v28 = vshrl.u32 %v10539_v22, 16 }
 0x18a   : > { %11305 = vmatprep.mubr.msk.bf16.mxu1 %vm1144_vm3, %v13010_v20  ;;  %2149 = vst [vmem:[#allocation2 + $0xf0] sm:$0xff] %v12520_v1  ;;  %2150 = vst [vmem:[#allocation2 + $0xf8] sm:$0xff] %v12520_v1 }
 0x18b   : > { %2151 = vst [vmem:[#allocation2 + $0x100] sm:$0x3] %v12520_v1  ;;  %2152 = vst [vmem:[#allocation2 + $0x108] sm:$0xff] %v12520_v1 }
 0x18c   : > { %2153 = vst [vmem:[#allocation2 + $0x110] sm:$0xff] %v12520_v1  ;;  %2154 = vst [vmem:[#allocation2 + $0x118] sm:$0x3] %v12520_v1 }
 0x18d   : > { %2155 = vst [vmem:[#allocation2 + $0x120] sm:$0xff] %v12520_v1  ;;  %2156 = vst [vmem:[#allocation2 + $0x128] sm:$0xff] %v12520_v1 }
 0x18e   : > { %2157 = vst [vmem:[#allocation2 + $0x130] sm:$0x3] %v12520_v1  ;;  %2158 = vst [vmem:[#allocation2 + $0x138] sm:$0xff] %v12520_v1 }
 0x18f   : > { %2159 = vst [vmem:[#allocation2 + $0x140] sm:$0xff] %v12520_v1  ;;  %2160 = vst [vmem:[#allocation2 + $0x148] sm:$0x3] %v12520_v1 }
 0x190   : > { %2161 = vst [vmem:[#allocation2 + $0x150] sm:$0xff] %v12520_v1  ;;  %2162 = vst [vmem:[#allocation2 + $0x158] sm:$0xff] %v12520_v1 }
 0x191   : > { %11306 = vmatmul.mubr.msk.bf16.gmra.mrb[20].mxu1 %vm1144_vm3, %v13032_v59  ;;  %2163 = vst [vmem:[#allocation2 + $0x160] sm:$0x3] %v12520_v1  ;;  %2164 = vst [vmem:[#allocation2 + $0x168] sm:$0xff] %v12520_v1 }
 0x192   : > { %11309 = vmatprep.mubr.msk.bf16.mxu1 %vm1144_vm3, %v13039_v8  ;;  %2165 = vst [vmem:[#allocation2 + $0x170] sm:$0xff] %v12520_v1  ;;  %2166 = vst [vmem:[#allocation2 + $0x178] sm:$0x3] %v12520_v1  ;;  %v11683_v8 = vld [vmem:[#allocation4 + $0x158] sm:$0xff]  }
 0x193   : > { %2167 = vst [vmem:[#allocation2 + $0x180] sm:$0xff] %v12520_v1  ;;  %2168 = vst [vmem:[#allocation2 + $0x188] sm:$0xff] %v12520_v1  ;;  %10681 = vmatprep.subr.bf16.mxu1 %v11683_v8 }
 0x194   : > { %2169 = vst [vmem:[#allocation2 + $0x190] sm:$0x3] %v12520_v1  ;;  %2170 = vst [vmem:[#allocation2 + $0x198] sm:$0xff] %v12520_v1  ;;  %10682 = vmatpush3.bf16.msra.mxu1 %v11684_v24 }
 0x195   : > { %2171 = vst [vmem:[#allocation2 + $0x1a0] sm:$0xff] %v12520_v1  ;;  %2172 = vst [vmem:[#allocation2 + $0x1a8] sm:$0x3] %v12520_v1  ;;  %10683 = vmatprep.subr.bf16.mxu1 %v11685_v25  ;;  %v3035_v25 = vshll.u32 %v10539_v22, 16 }
 0x196   : > { %5001 = vst [vmem:[#allocation3] sm:$0xff] %v12520_v1  ;;  %5002 = vst [vmem:[#allocation3 + $0x8] sm:$0x3] %v12520_v1 }
 0x197   : > { %5003 = vst [vmem:[#allocation3 + $0x10] sm:$0xff] %v12520_v1  ;;  %5004 = vst [vmem:[#allocation3 + $0x18] sm:$0x3] %v12520_v1 }
 0x198   : > { %5005 = vst [vmem:[#allocation3 + $0x20] sm:$0xff] %v12520_v1  ;;  %5006 = vst [vmem:[#allocation3 + $0x28] sm:$0x3] %v12520_v1  ;;  %10684 = vmatpush3.bf16.msra.mxu1 %v11686_v26 }
 0x199   : > { %11310 = vmatmul.mubr.msk.bf16.gmra.mrb[24].mxu1 %vm1144_vm3, %v13042_v11  ;;  %5007 = vst [vmem:[#allocation3 + $0x30] sm:$0xff] %v12520_v1  ;;  %5008 = vst [vmem:[#allocation3 + $0x38] sm:$0x3] %v12520_v1  ;;  %10685 = vmatprep.subr.bf16.mxu1 %v11687_v32 }
 0x19a   : > { %11313 = vmatprep.mubr.msk.bf16.mxu1 %vm1144_vm3, %v13060_v34  ;;  %5009 = vst [vmem:[#allocation3 + $0x40] sm:$0xff] %v12520_v1  ;;  %5010 = vst [vmem:[#allocation3 + $0x48] sm:$0x3] %v12520_v1  ;;  %v11688_v34 = vld [vmem:[#allocation4 + $0x128] sm:$0xff]  }
 0x19b   : > { %5011 = vst [vmem:[#allocation3 + $0x50] sm:$0xff] %v12520_v1  ;;  %5012 = vst [vmem:[#allocation3 + $0x58] sm:$0x3] %v12520_v1 }
 0x19c   : > { %5013 = vst [vmem:[#allocation3 + $0x60] sm:$0xff] %v12520_v1  ;;  %5014 = vst [vmem:[#allocation3 + $0x68] sm:$0x3] %v12520_v1  ;;  %10686 = vmatpush3.bf16.msra.mxu1 %v11688_v34 }
 0x19d   : > { %5015 = vst [vmem:[#allocation3 + $0x70] sm:$0xff] %v12520_v1  ;;  %5016 = vst [vmem:[#allocation3 + $0x78] sm:$0x3] %v12520_v1  ;;  %10687 = vmatprep.subr.bf16.mxu1 %v11689_v52 }
 0x19e   : > { %5017 = vst [vmem:[#allocation3 + $0x80] sm:$0xff] %v12520_v1  ;;  %5018 = vst [vmem:[#allocation3 + $0x88] sm:$0x3] %v12520_v1 }
 0x19f   : > { %5019 = vst [vmem:[#allocation3 + $0x90] sm:$0xff] %v12520_v1  ;;  %5020 = vst [vmem:[#allocation3 + $0x98] sm:$0x3] %v12520_v1  ;;  %v2667_v1 = vcombine.high %v9775_v21, %v9775_v21 }
 0x1a0   : > { %10688 = vmatpush3.bf16.msra.mxu1 %v11690_v35 }
 0x1a1   : > { %11314 = vmatmul.mubr.msk.bf16.gmra.mrb[28].mxu1 %vm1144_vm3, %v939_v13  ;;  %10689 = vmatprep.subr.bf16.mxu1 %v11691_v40  ;;  %v13299_v13 = vld [vmem:[%s15122_s3] ss:$0 sm:$0xff] }
 0x1a4   : > { %10690 = vmatpush3.bf16.msra.mxu1 %v11692_v46 }
 0x1a5   : > { %10715 = vmatprep.subr.bf16.mxu1 %v11693_v29  ;;  %v10541_v29 = vpack.c.bf16 %v2667_v1, %v9775_v21 }
 0x1bd   : > { %v13151_v58 = vpop.f32.mrb[0].mxu0 }
 0x1be   : > { %v13153_v62 = vpop.f32.mrb[1].mxu0 }
 0x1bf   : > { %v13155_v31 = vpop.f32.mrb[2].mxu0 }
 0x1c0   : > { %v13157_v44 = vpop.f32.mrb[3].mxu0 }
 0x1c6   : > { %v13236_v63 = vpop.f32.mrb[4].mxu0 }
 0x1c7   : > { %v13238_v20 = vpop.f32.mrb[5].mxu0 }
 0x1c8   : > { %v13240_v59 = vpop.f32.mrb[6].mxu0 }
 0x1c9   : > { %v13242_v11 = vpop.f32.mrb[7].mxu0 }
 0x1ce   : > { %v13244_v27 = vpop.f32.mrb[8].mxu0 }
 0x1cf   : > { %v13246_v30 = vpop.f32.mrb[9].mxu0 }
 0x1d0   : > { %v13248_v16 = vpop.f32.mrb[10].mxu0 }
 0x1d1   : > { %v13250_v60 = vpop.f32.mrb[11].mxu0 }
 0x1d6   : > { %v13252_v36 = vpop.f32.mrb[12].mxu0 }
 0x1d7   : > { %v13254_v37 = vpop.f32.mrb[13].mxu0 }
 0x1d8   : > { %v13256_v39 = vpop.f32.mrb[14].mxu0 }
 0x1d9   : > { %v13258_v42 = vpop.f32.mrb[15].mxu0 }
 0x1de   : > { %v13260_v47 = vpop.f32.mrb[16].mxu0 }
 0x1df   : > { %v13262_v38 = vpop.f32.mrb[17].mxu0 }
 0x1e0   : > { %v13264_v48 = vpop.f32.mrb[18].mxu0 }
 0x1e1   : > { %v13266_v49 = vpop.f32.mrb[19].mxu0 }
 0x1e6   : > { %v13268_v50 = vpop.f32.mrb[20].mxu0 }
 0x1e7   : > { %v13270_v51 = vpop.f32.mrb[21].mxu0 }
 0x1e8   : > { %v13272_v54 = vpop.f32.mrb[22].mxu0 }
 0x1e9   : > { %v13274_v55 = vpop.f32.mrb[23].mxu0 }
 0x1ee   : > { %v13276_v56 = vpop.f32.mrb[24].mxu0 }
 0x1ef   : > { %v13278_v53 = vpop.f32.mrb[25].mxu0 }
 0x1f0   : > { %v13280_v61 = vpop.f32.mrb[26].mxu0 }
 0x1f1   : > { %v13282_v3 = vpop.f32.mrb[27].mxu0 }
 0x1f6   : > { %v13284_v4 = vpop.f32.mrb[28].mxu0 }
 0x1f7   : > { %v13286_v5 = vpop.f32.mrb[29].mxu0 }
 0x1f8   : > { %v13288_v18 = vpop.f32.mrb[30].mxu0 }
 0x1f9   : > { %v13290_v43 = vpop.f32.mrb[31].mxu0 }
 0x23c   : > { %v11287_v12 = vpop.f32.mrb[0].mxu1 }
 0x23d   : > { %v11351_v14 = vadd.f32 %v13151_v58, %v11287_v12  ;;  %v1607_v17 = vpop.f32.mrb[1].mxu1 }
 0x23e   : > { %v11352_v45 = vadd.f32 %v13153_v62, %v1607_v17  ;;  %v11288_v57 = vpop.f32.mrb[2].mxu1  ;;  %v3037_v17 = vrot.slane %v3035_v25, 5 }
 0x23f   : > { %v1993_v23 = vadd.f32 %v11351_v14, %v13299_v13  ;;  %v11353_v15 = vadd.f32 %v13155_v31, %v11288_v57  ;;  %v1610_v19 = vpop.f32.mrb[3].mxu1  ;;  %v3034_v14 = vrot.slane %v3032_v28, 4 }
 0x240   : > { %v1991_v41 = vadd.f32 %v11352_v45, %v13299_v13  ;;  %v11354_v0 = vadd.f32 %v13157_v44, %v1610_v19 }
 0x241   : > { %vm2025_vm4 = vcmp.ge.f32.partialorder %v1993_v23, 0.0  ;;  %v2057_v33 = vmul.f32 0.2, %v1993_v23  ;;  %v1994_v58 = vadd.f32 %v11353_v15, %v13299_v13 }
 0x242   : > { %vm2023_vm5 = vcmp.ge.f32.partialorder %v1991_v41, 0.0  ;;  %v2055_v62 = vmul.f32 0.2, %v1991_v41  ;;  %v1992_v2 = vadd.f32 %v11354_v0, %v13299_v13 }
 0x243   : > { %v2089_v8 = vsel %vm2025_vm4, %v1993_v23, %v2057_v33  ;;  %vm2026_vm6 = vcmp.ge.f32.partialorder %v1994_v58, 0.0  ;;  %v2058_v24 = vmul.f32 0.2, %v1994_v58  ;;  %v3041_v23 = vshll.u32 %v10541_v29, 16 }
 0x244   : > { %2176 = vst [vmem:[#allocation2 + $0x31] sm:$0xff] %v2089_v8  ;;  %v2087_v31 = vsel %vm2023_vm5, %v1991_v41, %v2055_v62  ;;  %vm2024_vm7 = vcmp.ge.f32.partialorder %v1992_v2, 0.0  ;;  %v2056_v26 = vmul.f32 0.2, %v1992_v2  ;;  %v11291_v32 = vpop.f32.mrb[4].mxu1  ;;  %v3038_v41 = vor.u32 %v3037_v17, %v3034_v14 }
 0x245   : > { %2174 = vst [vmem:[#allocation2 + $0x19] sm:$0xff] %v2087_v31  ;;  %v2090_v44 = vsel %vm2026_vm6, %v1994_v58, %v2058_v24  ;;  %v11355_v34 = vadd.f32 %v13236_v63, %v11291_v32  ;;  %v1623_v52 = vpop.f32.mrb[5].mxu1 }
 0x246   : > { %2177 = vst [vmem:[#allocation2 + $0x39] sm:$0xff] %v2090_v44  ;;  %v2088_v35 = vsel %vm2024_vm7, %v1992_v2, %v2056_v26  ;;  %v11356_v40 = vadd.f32 %v13238_v20, %v1623_v52  ;;  %v11292_v46 = vpop.f32.mrb[6].mxu1  ;;  %v3039_v52 = vrot.slane %v3038_v41, 4 }
 0x247   : > { %2175 = vst [vmem:[#allocation2 + $0x21] sm:$0xff] %v2088_v35  ;;  %v1997_v6 = vadd.f32 %v11355_v34, %v13299_v13  ;;  %v11357_v7 = vadd.f32 %v13240_v59, %v11292_v46  ;;  %v1626_v12 = vpop.f32.mrb[7].mxu1  ;;  %v3043_v46 = vrot.slane %v3041_v23, 5 }
 0x248   : > { %v1995_v45 = vadd.f32 %v11356_v40, %v13299_v13  ;;  %v11358_v57 = vadd.f32 %v13242_v11, %v1626_v12 }
 0x249   : > { %vm2029_vm8 = vcmp.ge.f32.partialorder %v1997_v6, 0.0  ;;  %v2061_v63 = vmul.f32 0.2, %v1997_v6  ;;  %v1998_v22 = vadd.f32 %v11357_v7, %v13299_v13 }
 0x24a   : > { %vm2027_vm9 = vcmp.ge.f32.partialorder %v1995_v45, 0.0  ;;  %v2059_v20 = vmul.f32 0.2, %v1995_v45  ;;  %v1996_v21 = vadd.f32 %v11358_v57, %v13299_v13 }
 0x24b   : > { %v2093_v15 = vsel %vm2029_vm8, %v1997_v6, %v2061_v63  ;;  %vm2030_vm10 = vcmp.ge.f32.partialorder %v1998_v22, 0.0  ;;  %v2062_v19 = vmul.f32 0.2, %v1998_v22  ;;  %v9779_v59 = vld.sshfl [vmem:[#allocation2 + $0x30] sm:$0xff pattern:$0x75316420] }
 0x24c   : > { %2180 = vst [vmem:[#allocation2 + $0x61] sm:$0xff] %v2093_v15  ;;  %v2091_v0 = vsel %vm2027_vm9, %v1995_v45, %v2059_v20  ;;  %vm2028_vm11 = vcmp.ge.f32.partialorder %v1996_v21, 0.0  ;;  %v2060_v33 = vmul.f32 0.2, %v1996_v21  ;;  %v11295_v58 = vpop.f32.mrb[8].mxu1 }
 0x24d   : > { %2178 = vst [vmem:[#allocation2 + $0x49] sm:$0xff] %v2091_v0  ;;  %v2094_v11 = vsel %vm2030_vm10, %v1998_v22, %v2062_v19  ;;  %v11359_v1 = vadd.f32 %v13244_v27, %v11295_v58  ;;  %v1639_v62 = vpop.f32.mrb[9].mxu1  ;;  %v9780_v2 = vld.sshfl [vmem:[#allocation2 + $0x38] sm:$0xff pattern:$0x75316420] }
 0x24e   : > { %2181 = vst [vmem:[#allocation2 + $0x69] sm:$0xff] %v2094_v11  ;;  %v2092_v28 = vsel %vm2028_vm11, %v1996_v21, %v2060_v33  ;;  %v11360_v8 = vadd.f32 %v13246_v30, %v1639_v62  ;;  %v11296_v24 = vpop.f32.mrb[10].mxu1  ;;  %v9781_v25 = vld.sshfl [vmem:[#allocation2 + $0x40] sm:$0x11 pattern:$0x75316420]  ;;  %v13321_v31 = vcombine.low %v9779_v59, %v9780_v2  ;;  %v13323_v26 = vcombine.high %v9779_v59, %v9780_v2 }
 0x24f   : > { %2179 = vst [vmem:[#allocation2 + $0x51] sm:$0xff] %v2092_v28  ;;  %v2001_v32 = vadd.f32 %v11359_v1, %v13299_v13  ;;  %v11361_v44 = vadd.f32 %v13248_v16, %v11296_v24  ;;  %v1642_v34 = vpop.f32.mrb[11].mxu1  ;;  %v2670_v27 = vcombine.high %v9781_v25, %v9781_v25  ;;  %v13332_v12 = vld.sshfl [vmem:[#allocation2 + $0x20] sm:$0xff pattern:$0x75316420]  ;;  %v3044_v2 = vsel %vm13337_vm1, %v3039_v52, %v3043_v46 }
 0x250   : > { %v1999_v35 = vadd.f32 %v11360_v8, %v13299_v13  ;;  %v11362_v40 = vadd.f32 %v13250_v60, %v1642_v34  ;;  %v10543_v30 = vpack.c.bf16 %v13323_v26, %v13321_v31  ;;  %v13341_v22 = vld.sshfl [vmem:[#allocation2 + $0x18] sm:$0xff pattern:$0x75316420] }
 0x251   : > { %vm2033_vm14 = vcmp.ge.f32.partialorder %v2001_v32, 0.0  ;;  %v2065_v29 = vmul.f32 0.2, %v2001_v32  ;;  %v2002_v6 = vadd.f32 %v11361_v44, %v13299_v13  ;;  %v10545_v7 = vpack.c.bf16 %v2670_v27, %v9781_v25 }
 0x252   : > { %vm2031_vm15 = vcmp.ge.f32.partialorder %v1999_v35, 0.0  ;;  %v2063_v16 = vmul.f32 0.2, %v1999_v35  ;;  %v2000_v14 = vadd.f32 %v11362_v40, %v13299_v13  ;;  %v3060_v17 = vshrl.u32 %v10543_v30, 16 }
 0x253   : > { %v2097_v45 = vsel %vm2033_vm14, %v2001_v32, %v2065_v29  ;;  %vm2034_vm0 = vcmp.ge.f32.partialorder %v2002_v6, 0.0  ;;  %v2066_v57 = vmul.f32 0.2, %v2002_v6  ;;  %v3063_v63 = vshll.u32 %v10543_v30, 16 }
 0x254   : > { %2184 = vst [vmem:[#allocation2 + $0x91] sm:$0xff] %v2097_v45  ;;  %v2095_v20 = vsel %vm2031_vm15, %v1999_v35, %v2063_v16  ;;  %vm2032_vm2 = vcmp.ge.f32.partialorder %v2000_v14, 0.0  ;;  %v2064_v21 = vmul.f32 0.2, %v2000_v14  ;;  %v11299_v23 = vpop.f32.mrb[12].mxu1  ;;  %v3062_v15 = vrot.slane %v3060_v17, 4 }
 0x255   : > { %2182 = vst [vmem:[#allocation2 + $0x79] sm:$0xff] %v2095_v20  ;;  %v2098_v19 = vsel %vm2034_vm0, %v2002_v6, %v2066_v57  ;;  %v11363_v59 = vadd.f32 %v13252_v36, %v11299_v23  ;;  %v1655_v41 = vpop.f32.mrb[13].mxu1  ;;  %v3065_v0 = vrot.slane %v3063_v63, 5  ;;  %v3069_v33 = vshll.u32 %v10545_v7, 16 }
 0x256   : > { %v9785_v58 = vld.sshfl [vmem:[#allocation2 + $0x60] sm:$0xff pattern:$0x75316420]  ;;  %2185 = vst [vmem:[#allocation2 + $0x99] sm:$0xff] %v2098_v19  ;;  %v2096_v11 = vsel %vm2032_vm2, %v2000_v14, %v2064_v21  ;;  %v11364_v1 = vadd.f32 %v13254_v37, %v1655_v41  ;;  %v11300_v62 = vpop.f32.mrb[14].mxu1  ;;  %v13349_v8 = vcombine.low %v13341_v22, %v13332_v12  ;;  %v11694_v41 = vld [vmem:[#allocation4 + $0x180] sm:$0xff]  }
 0x257   : > { %v9786_v28 = vld.sshfl [vmem:[#allocation2 + $0x68] sm:$0xff pattern:$0x75316420]  ;;  %2183 = vst [vmem:[#allocation2 + $0x81] sm:$0xff] %v2096_v11  ;;  %v2005_v36 = vadd.f32 %v11363_v59, %v13299_v13  ;;  %v11365_v24 = vadd.f32 %v13256_v39, %v11300_v62  ;;  %v1658_v25 = vpop.f32.mrb[15].mxu1  ;;  %v3066_v32 = vor.u32 %v3065_v0, %v3062_v15  ;;  %v3071_v44 = vrot.slane %v3069_v33, 5 }
 0x258   : > { %v9787_v34 = vld.sshfl [vmem:[#allocation2 + $0x70] sm:$0x11 pattern:$0x75316420]  ;;  %v2003_v37 = vadd.f32 %v11364_v1, %v13299_v13  ;;  %v11366_v27 = vadd.f32 %v13258_v42, %v1658_v25  ;;  %v13355_v35 = vcombine.low %v9785_v58, %v9786_v28  ;;  %v13357_v52 = vcombine.high %v9785_v58, %v9786_v28  ;;  %v11695_v28 = vld [vmem:[#allocation4 + $0x1c8] sm:$0xff]  }
 0x259   : > { %vm2037_vm3 = vcmp.ge.f32.partialorder %v2005_v36, 0.0  ;;  %v2069_v40 = vmul.f32 0.2, %v2005_v36  ;;  %v2006_v30 = vadd.f32 %v11365_v24, %v13299_v13  ;;  %v3067_v46 = vrot.slane %v3066_v32, 4 }
 0x25a   : > { %vm2035_vm4 = vcmp.ge.f32.partialorder %v2003_v37, 0.0  ;;  %v2067_v29 = vmul.f32 0.2, %v2003_v37  ;;  %v2004_v39 = vadd.f32 %v11366_v27, %v13299_v13  ;;  %v2673_v6 = vcombine.high %v9787_v34, %v9787_v34 }
 0x25b   : > { %v2101_v7 = vsel %vm2037_vm3, %v2005_v36, %v2069_v40  ;;  %vm2038_vm5 = vcmp.ge.f32.partialorder %v2006_v30, 0.0  ;;  %v2070_v16 = vmul.f32 0.2, %v2006_v30  ;;  %v13363_v42 = vsel %vm13337_vm1, %v3067_v46, %v3071_v44  ;;  %v9791_v14 = vld.sshfl [vmem:[#allocation2 + $0x90] sm:$0xff pattern:$0x75316420] }
 0x25c   : > { %15175 = vst [vmem:[#allocation20_spill] sm:$0xff] %v13363_v42  ;;  %2188 = vst [vmem:[#allocation2 + $0xc1] sm:$0xff] %v2101_v7  ;;  %v2099_v17 = vsel %vm2035_vm4, %v2003_v37, %v2067_v29  ;;  %vm2036_vm6 = vcmp.ge.f32.partialorder %v2004_v39, 0.0  ;;  %v2068_v45 = vmul.f32 0.2, %v2004_v39  ;;  %v11303_v57 = vpop.f32.mrb[16].mxu1  ;;  %v9859_v63 = vcombine.low %v3044_v2, %v13363_v42 }
 0x25d   : > { %2186 = vst [vmem:[#allocation2 + $0xa9] sm:$0xff] %v2099_v17  ;;  %v2102_v20 = vsel %vm2038_vm5, %v2006_v30, %v2070_v16  ;;  %v11367_v21 = vadd.f32 %v13260_v47, %v11303_v57  ;;  %v1671_v23 = vpop.f32.mrb[17].mxu1  ;;  %v9860_v15 = vcombine.high %v3044_v2, %v13363_v42  ;;  %v9792_v19 = vld.sshfl [vmem:[#allocation2 + $0x98] sm:$0xff pattern:$0x75316420]  ;;  %v10547_v59 = vpack.c.bf16 %v13357_v52, %v13355_v35 }
 0x25e   : > { %2189 = vst [vmem:[#allocation2 + $0xc9] sm:$0xff] %v2102_v20  ;;  %v2100_v0 = vsel %vm2036_vm6, %v2004_v39, %v2068_v45  ;;  %v11368_v33 = vadd.f32 %v13262_v38, %v1671_v23  ;;  %v11304_v58 = vpop.f32.mrb[18].mxu1  ;;  %v9793_v11 = vld.sshfl [vmem:[#allocation2 + $0xa0] sm:$0x11 pattern:$0x75316420]  ;;  %v13371_v1 = vcombine.low %v9791_v14, %v9792_v19  ;;  %v13373_v62 = vcombine.high %v9791_v14, %v9792_v19 }
 0x25f   : > { %2187 = vst [vmem:[#allocation2 + $0xb1] sm:$0xff] %v2100_v0  ;;  %v2009_v47 = vadd.f32 %v11367_v21, %v13299_v13  ;;  %3608 = vmatprep.mubr.bf16.mxu1 %v9860_v15  ;;  %v11369_v2 = vadd.f32 %v13264_v48, %v11304_v58  ;;  %v1674_v36 = vpop.f32.mrb[19].mxu1  ;;  %v2676_v24 = vcombine.high %v9793_v11, %v9793_v11  ;;  %v3088_v37 = vshrl.u32 %v10547_v59, 16  ;;  %v11696_v48 = vld [vmem:[#allocation4 + $0x188] sm:$0xff]   ;;  %v11697_v39 = vld [vmem:[#allocation4 + $0x1d0] sm:$0xff]   ;;  %v11699_v58 = vld [vmem:[#allocation4 + $0x1d8] sm:$0xff]  }
 0x260   : > { %15176 = vst [vmem:[#allocation21_spill] sm:$0xff] %v13371_v1  ;;  %v10549_v25 = vpack.c.bf16 %v2673_v6, %v9787_v34  ;;  %v2007_v32 = vadd.f32 %v11368_v33, %v13299_v13  ;;  %3609 = vmatmul.mubr.bf16.vlgmr.msra.gmra.mrb[32].mxu1 %v9859_v63  ;;  %v11370_v38 = vadd.f32 %v13266_v49, %v1674_v36  ;;  %v3091_v7 = vshll.u32 %v10547_v59, 16  ;;  %v11698_v15 = vld [vmem:[#allocation4 + $0x190] sm:$0xff]  }
 0x261   : > { %v10551_v44 = vpack.c.bf16 %v13373_v62, %v13371_v1  ;;  %vm2041_vm7 = vcmp.ge.f32.partialorder %v2009_v47, 0.0  ;;  %v2073_v27 = vmul.f32 0.2, %v2009_v47  ;;  %v2010_v40 = vadd.f32 %v11369_v2, %v13299_v13  ;;  %10716 = vmatpush3.bf16.msra.mxu1 %v11694_v41 }
 0x262   : > { %v13382_v30 = vpack.c.bf16 %v2676_v24, %v9793_v11  ;;  %vm2039_vm8 = vcmp.ge.f32.partialorder %v2007_v32, 0.0  ;;  %v2071_v46 = vmul.f32 0.2, %v2007_v32  ;;  %v2008_v34 = vadd.f32 %v11370_v38, %v13299_v13  ;;  %10717 = vmatprep.subr.bf16.mxu1 %v11695_v28 }
 0x263   : > { %v3090_v29 = vrot.slane %v3088_v37, 4  ;;  %v2105_v49 = vsel %vm2041_vm7, %v2009_v47, %v2073_v27  ;;  %vm2042_vm9 = vcmp.ge.f32.partialorder %v2010_v40, 0.0  ;;  %v2074_v6 = vmul.f32 0.2, %v2010_v40  ;;  %v11700_v27 = vld [vmem:[#allocation4 + $0x198] sm:$0xff]  }
 0x264   : > { %2192 = vst [vmem:[#allocation2 + $0xf1] sm:$0xff] %v2105_v49  ;;  %v2103_v16 = vsel %vm2039_vm8, %v2007_v32, %v2071_v46  ;;  %vm2040_vm10 = vcmp.ge.f32.partialorder %v2008_v34, 0.0  ;;  %v2072_v14 = vmul.f32 0.2, %v2008_v34  ;;  %v11307_v17 = vpop.f32.mrb[20].mxu1  ;;  %v3097_v45 = vshll.u32 %v10549_v25, 16 }
 0x265   : > { %2190 = vst [vmem:[#allocation2 + $0xd9] sm:$0xff] %v2103_v16  ;;  %v2106_v57 = vsel %vm2042_vm9, %v2010_v40, %v2074_v6  ;;  %v11371_v63 = vadd.f32 %v13268_v50, %v11307_v17  ;;  %v1687_v20 = vpop.f32.mrb[21].mxu1  ;;  %v3093_v21 = vrot.slane %v3091_v7, 5  ;;  %v3116_v23 = vshrl.u32 %v10551_v44, 16  ;;  %10718 = vmatpush3.bf16.msra.mxu1 %v11696_v48 }
 0x266   : > { %2193 = vst [vmem:[#allocation2 + $0xf9] sm:$0xff] %v2106_v57  ;;  %v2104_v19 = vsel %vm2040_vm10, %v2008_v34, %v2072_v14  ;;  %v11372_v41 = vadd.f32 %v13270_v51, %v1687_v20  ;;  %v11308_v59 = vpop.f32.mrb[22].mxu1  ;;  %v3099_v0 = vrot.slane %v3097_v45, 5  ;;  %v3119_v33 = vshll.u32 %v10551_v44, 16  ;;  %10719 = vmatprep.subr.bf16.mxu1 %v11697_v39 }
 0x267   : > { %2191 = vst [vmem:[#allocation2 + $0xe1] sm:$0xff] %v2104_v19  ;;  %v2013_v11 = vadd.f32 %v11371_v63, %v13299_v13  ;;  %v11373_v28 = vadd.f32 %v13272_v54, %v11308_v59  ;;  %v1690_v50 = vpop.f32.mrb[23].mxu1  ;;  %v3094_v47 = vor.u32 %v3093_v21, %v3090_v29  ;;  %v3118_v2 = vrot.slane %v3116_v23, 4  ;;  %v11701_v54 = vld [vmem:[#allocation4 + $0x1e0] sm:$0xff]  }
 0x268   : > { %v2011_v36 = vadd.f32 %v11372_v41, %v13299_v13  ;;  %v11374_v24 = vadd.f32 %v13274_v55, %v1690_v50  ;;  %v3121_v25 = vrot.slane %v3119_v33, 5  ;;  %v3125_v51 = vshll.u32 %v13382_v30, 16  ;;  %v13393_v37 = vld.sshfl [vmem:[#allocation2 + $0xd0] sm:$0x11 pattern:$0x75316420] }
 0x269   : > { %vm2045_vm11 = vcmp.ge.f32.partialorder %v2013_v11, 0.0  ;;  %v2077_v32 = vmul.f32 0.2, %v2013_v11  ;;  %v2014_v38 = vadd.f32 %v11373_v28, %v13299_v13  ;;  %v3095_v44 = vrot.slane %v3094_v47, 4  ;;  %10720 = vmatpush3.bf16.msra.mxu1 %v11698_v15  ;;  %v11702_v21 = vld [vmem:[#allocation4 + $0x1a0] sm:$0xff]  }
 0x26a   : > { %vm2043_vm12 = vcmp.ge.f32.partialorder %v2011_v36, 0.0  ;;  %v2075_v40 = vmul.f32 0.2, %v2011_v36  ;;  %v2012_v48 = vadd.f32 %v11374_v24, %v13299_v13  ;;  %v3122_v46 = vor.u32 %v3121_v25, %v3118_v2  ;;  %v9798_v34 = vld.sshfl [vmem:[#allocation2 + $0xc8] sm:$0xff pattern:$0x75316420]  ;;  %10721 = vmatprep.subr.bf16.mxu1 %v11699_v58 }
 0x26b   : > { %v2109_v55 = vsel %vm2045_vm11, %v2013_v11, %v2077_v32  ;;  %vm2046_vm13 = vcmp.ge.f32.partialorder %v2014_v38, 0.0  ;;  %v2078_v30 = vmul.f32 0.2, %v2014_v38  ;;  %v13398_v29 = vsel %vm13337_vm1, %v3095_v44, %v3099_v0  ;;  %v9797_v39 = vld.sshfl [vmem:[#allocation2 + $0xc0] sm:$0xff pattern:$0x75316420] }
 0x26c   : > { %15177 = vst [vmem:[#allocation22_spill] sm:$0xff] %v13398_v29  ;;  %2196 = vst [vmem:[#allocation2 + $0x121] sm:$0xff] %v2109_v55  ;;  %v2107_v49 = vsel %vm2043_vm12, %v2011_v36, %v2075_v40  ;;  %vm2044_vm14 = vcmp.ge.f32.partialorder %v2012_v48, 0.0  ;;  %v2076_v6 = vmul.f32 0.2, %v2012_v48  ;;  %v11311_v7 = vpop.f32.mrb[24].mxu1  ;;  %v13401_v20 = vcombine.low %v9797_v39, %v9798_v34 }
 0x26d   : > { %v3123_v16 = vrot.slane %v3122_v46, 4  ;;  %2194 = vst [vmem:[#allocation2 + $0x109] sm:$0xff] %v2107_v49  ;;  %v2110_v14 = vsel %vm2046_vm13, %v2014_v38, %v2078_v30  ;;  %v11375_v17 = vadd.f32 %v13276_v56, %v11311_v7  ;;  %v1703_v45 = vpop.f32.mrb[25].mxu1  ;;  %v3127_v57 = vrot.slane %v3125_v51, 5  ;;  %10722 = vmatpush3.bf16.msra.mxu1 %v11700_v27  ;;  %v11703_v56 = vld [vmem:[#allocation4 + $0x1e8] sm:$0xff]  }
 0x26e   : > { %v9804_v63 = vld.sshfl [vmem:[#allocation2 + $0xf8] sm:$0xff pattern:$0x75316420]  ;;  %2197 = vst [vmem:[#allocation2 + $0x129] sm:$0xff] %v2110_v14  ;;  %v2108_v23 = vsel %vm2044_vm14, %v2012_v48, %v2076_v6  ;;  %v11376_v15 = vadd.f32 %v13278_v53, %v1703_v45  ;;  %v11312_v19 = vpop.f32.mrb[26].mxu1  ;;  %v13404_v59 = vcombine.high %v9797_v39, %v9798_v34  ;;  %v2679_v0 = vcombine.high %v13393_v37, %v13393_v37  ;;  %v11706_v14 = vld [vmem:[#allocation4 + $0x1b0] sm:$0xff]  }
 0x26f   : > { %v9803_v41 = vld.sshfl [vmem:[#allocation2 + $0xf0] sm:$0xff pattern:$0x75316420]  ;;  %10723 = vmatprep.subr.bf16.mxu1 %v11701_v54  ;;  %2195 = vst [vmem:[#allocation2 + $0x111] sm:$0xff] %v2108_v23  ;;  %v2017_v33 = vadd.f32 %v11375_v17, %v13299_v13  ;;  %v13411_v58 = vsel %vm13337_vm1, %v3123_v16, %v3127_v57  ;;  %v11377_v11 = vadd.f32 %v13280_v61, %v11312_v19  ;;  %v1706_v28 = vpop.f32.mrb[27].mxu1  ;;  %v11704_v61 = vld [vmem:[#allocation4 + $0x1a8] sm:$0xff]  }
 0x270   : > { %v9805_v53 = vld.sshfl [vmem:[#allocation2 + $0x100] sm:$0x11 pattern:$0x75316420]  ;;  %v13414_v50 = vcombine.low %v9803_v41, %v9804_v63  ;;  %v2015_v47 = vadd.f32 %v11376_v15, %v13299_v13  ;;  %v9864_v2 = vcombine.high %v13398_v29, %v13411_v58  ;;  %v9863_v36 = vcombine.low %v13398_v29, %v13411_v58 }
 0x271   : > { %v11378_v24 = vadd.f32 %v13282_v3, %v1706_v28  ;;  %vm2049_vm15 = vcmp.ge.f32.partialorder %v2017_v33, 0.0  ;;  %v2081_v25 = vmul.f32 0.2, %v2017_v33  ;;  %v2018_v51 = vadd.f32 %v11377_v11, %v13299_v13  ;;  %10724 = vmatpush3.bf16.msra.mxu1 %v11702_v21  ;;  %v11705_v54 = vld [vmem:[#allocation4 + $0x1f0] sm:$0xff]   ;;  %v11707_v21 = vld [vmem:[#allocation4 + $0x1f8] sm:$0xff]  }
 0x272   : > { %v13423_v32 = vcombine.high %v9803_v41, %v9804_v63  ;;  %vm2047_vm0 = vcmp.ge.f32.partialorder %v2015_v47, 0.0  ;;  %v2079_v38 = vmul.f32 0.2, %v2015_v47  ;;  %3616 = vmatprep.mubr.bf16.mxu1 %v9864_v2  ;;  %v2682_v27 = vcombine.high %v9805_v53, %v9805_v53  ;;  %10725 = vmatprep.subr.bf16.mxu1 %v11703_v56  ;;  %v11708_v2 = vld [vmem:[#allocation4 + $0x1b8] sm:$0xff]  }
 0x273   : > { %v2016_v44 = vadd.f32 %v11378_v24, %v13299_v13  ;;  %v2113_v40 = vsel %vm2049_vm15, %v2017_v33, %v2081_v25  ;;  %vm2050_vm2 = vcmp.ge.f32.partialorder %v2018_v51, 0.0  ;;  %v2082_v48 = vmul.f32 0.2, %v2018_v51  ;;  %3617 = vmatmul.mubr.bf16.gmra.mrb[36].mxu1 %v9863_v36  ;;  %v11709_v36 = vld [vmem:[#allocation4 + $0x40] sm:$0xff]  }
 0x274   : > { %v10555_v3 = vpack.c.bf16 %v13404_v59, %v13401_v20  ;;  %2200 = vst [vmem:[#allocation2 + $0x151] sm:$0xff] %v2113_v40  ;;  %v2111_v46 = vsel %vm2047_vm0, %v2015_v47, %v2079_v38  ;;  %v11315_v55 = vpop.f32.mrb[28].mxu1  ;;  %v10557_v30 = vpack.c.bf16 %v2679_v0, %v13393_v37  ;;  %v13432_v7 = vpack.c.bf16 %v13423_v32, %v13414_v50 }
 0x275   : > { %vm2048_vm3 = vcmp.ge.f32.partialorder %v2016_v44, 0.0  ;;  %v2080_v34 = vmul.f32 0.2, %v2016_v44  ;;  %2198 = vst [vmem:[#allocation2 + $0x139] sm:$0xff] %v2111_v46  ;;  %v2114_v39 = vsel %vm2050_vm2, %v2018_v51, %v2082_v48  ;;  %v11379_v49 = vadd.f32 %v13284_v4, %v11315_v55  ;;  %v1719_v6 = vpop.f32.mrb[29].mxu1  ;;  %10726 = vmatpush3.bf16.msra.mxu1 %v11704_v61 }
 0x276   : > { %v13434_v16 = vpack.c.bf16 %v2682_v27, %v9805_v53  ;;  %2201 = vst [vmem:[#allocation2 + $0x159] sm:$0xff] %v2114_v39  ;;  %v11380_v45 = vadd.f32 %v13286_v5, %v1719_v6  ;;  %v11316_v57 = vpop.f32.mrb[30].mxu1  ;;  %v3144_v63 = vshrl.u32 %v10555_v3, 16  ;;  %v3147_v37 = vshll.u32 %v10555_v3, 16  ;;  %10727 = vmatprep.subr.bf16.mxu1 %v11705_v54 }
 0x277   : > { %v2112_v17 = vsel %vm2048_vm3, %v2016_v44, %v2080_v34  ;;  %v2021_v4 = vadd.f32 %v11379_v49, %v13299_v13  ;;  %v11381_v23 = vadd.f32 %v13288_v18, %v11316_v57  ;;  %v1722_v15 = vpop.f32.mrb[31].mxu1  ;;  %v3153_v19 = vshll.u32 %v10557_v30, 16  ;;  %v9811_v47 = vld.sshfl [vmem:[#allocation2 + $0x130] sm:$0x11 pattern:$0x75316420] }
 0x278   : > { %2199 = vst [vmem:[#allocation2 + $0x141] sm:$0xff] %v2112_v17  ;;  %v3172_v41 = vshrl.u32 %v13432_v7, 16  ;;  %v2019_v0 = vadd.f32 %v11380_v45, %v13299_v13  ;;  %v11382_v56 = vadd.f32 %v13290_v43, %v1722_v15  ;;  %v3146_v33 = vrot.slane %v3144_v63, 4  ;;  %v9809_v51 = vld.sshfl [vmem:[#allocation2 + $0x120] sm:$0xff pattern:$0x75316420] }
 0x279   : > { %v3149_v5 = vrot.slane %v3147_v37, 5  ;;  %vm2053_vm4 = vcmp.ge.f32.partialorder %v2021_v4, 0.0  ;;  %v2085_v11 = vmul.f32 0.2, %v2021_v4  ;;  %v2022_v28 = vadd.f32 %v11381_v23, %v13299_v13  ;;  %10728 = vmatpush3.bf16.msra.mxu1 %v11706_v14 }
 0x27a   : > { %v3155_v53 = vrot.slane %v3153_v19, 5  ;;  %vm2051_vm5 = vcmp.ge.f32.partialorder %v2019_v0, 0.0  ;;  %v2083_v18 = vmul.f32 0.2, %v2019_v0  ;;  %v2020_v24 = vadd.f32 %v11382_v56, %v13299_v13  ;;  %10729 = vmatprep.subr.bf16.mxu1 %v11707_v21 }
 0x27b   : > { %v3150_v25 = vor.u32 %v3149_v5, %v3146_v33  ;;  %v9810_v61 = vld.sshfl [vmem:[#allocation2 + $0x128] sm:$0xff pattern:$0x75316420]  ;;  %v2117_v43 = vsel %vm2053_vm4, %v2021_v4, %v2085_v11  ;;  %vm2054_vm6 = vcmp.ge.f32.partialorder %v2022_v28, 0.0  ;;  %v2086_v38 = vmul.f32 0.2, %v2022_v28 }
 0x27c   : > { %v3174_v44 = vrot.slane %v3172_v41, 4  ;;  %v9778_v27 = vld.sshfl [vmem:[#allocation2 + $0x28] sm:$0x11 pattern:$0x75316420]  ;;  %2204 = vst [vmem:[#allocation2 + $0x181] sm:$0xff] %v2117_v43  ;;  %v2115_v54 = vsel %vm2051_vm5, %v2019_v0, %v2083_v18  ;;  %v13446_v34 = vcombine.low %v9809_v51, %v9810_v61  ;;  %v13448_v6 = vcombine.high %v9809_v51, %v9810_v61 }
 0x27d   : > { %vm2052_vm7 = vcmp.ge.f32.partialorder %v2020_v24, 0.0  ;;  %v2084_v40 = vmul.f32 0.2, %v2020_v24  ;;  %v3151_v48 = vrot.slane %v3150_v25, 4  ;;  %2202 = vst [vmem:[#allocation2 + $0x169] sm:$0xff] %v2115_v54  ;;  %v2118_v3 = vsel %vm2054_vm6, %v2022_v28, %v2086_v38  ;;  %10730 = vmatpush3.bf16.msra.mxu1 %v11708_v2 }
 0x27e   : > { %v3175_v46 = vshll.u32 %v13432_v7, 16  ;;  %v3181_v13 = vshll.u32 %v13434_v16, 16  ;;  %v9783_v55 = vld.sshfl [vmem:[#allocation2 + $0x50] sm:$0xff pattern:$0x75316420]  ;;  %2205 = vst [vmem:[#allocation2 + $0x189] sm:$0xff] %v2118_v3  ;;  %v2685_v14 = vcombine.high %v9811_v47, %v9811_v47  ;;  %v13452_v45 = vcombine.high %v13341_v22, %v13332_v12  ;;  %10755 = vmatprep.subr.bf16.mxu1 %v11709_v36 }
 0x27f   : > { %v2116_v30 = vsel %vm2052_vm7, %v2020_v24, %v2084_v40  ;;  %v9815_v39 = vld.sshfl [vmem:[#allocation2 + $0x150] sm:$0xff pattern:$0x75316420]  ;;  %v9816_v49 = vld.sshfl [vmem:[#allocation2 + $0x158] sm:$0xff pattern:$0x75316420]  ;;  %v10563_v4 = vpack.c.bf16 %v13448_v6, %v13446_v34  ;;  %v2748_v19 = vcombine.high %v9778_v27, %v9778_v27 }
 0x280   : > { %v9782_v17 = vld.sshfl [vmem:[#allocation2 + $0x48] sm:$0xff pattern:$0x75316420]  ;;  %2203 = vst [vmem:[#allocation2 + $0x171] sm:$0xff] %v2116_v30  ;;  %v3177_v7 = vrot.slane %v3175_v46, 5  ;;  %v3183_v16 = vrot.slane %v3181_v13, 5  ;;  %v13454_v63 = vcombine.low %v9815_v39, %v9816_v49  ;;  %v13456_v37 = vcombine.high %v9815_v39, %v9816_v49 }
 0x281   : > { %v9817_v57 = vld.sshfl [vmem:[#allocation2 + $0x160] sm:$0x11 pattern:$0x75316420]  ;;  %v10565_v23 = vpack.c.bf16 %v2685_v14, %v9811_v47  ;;  %v13462_v22 = vcombine.low %v9782_v17, %v9783_v55  ;;  %v13464_v0 = vcombine.high %v9782_v17, %v9783_v55  ;;  %v3200_v33 = vshrl.u32 %v10563_v4, 16 }
 0x282   : > { %v2688_v21 = vcombine.high %v9817_v57, %v9817_v57  ;;  %v9784_v15 = vld.sshfl [vmem:[#allocation2 + $0x58] sm:$0x11 pattern:$0x75316420]  ;;  %v3178_v41 = vor.u32 %v3177_v7, %v3174_v44  ;;  %v10567_v12 = vpack.c.bf16 %v13456_v37, %v13454_v63  ;;  %v3203_v5 = vshll.u32 %v10563_v4, 16 }
 0x283   : > { %v3209_v11 = vshll.u32 %v10565_v23, 16  ;;  %v2751_v18 = vcombine.high %v9784_v15, %v9784_v15  ;;  %v13468_v47 = vsel %vm13337_vm1, %v3151_v48, %v3155_v53  ;;  %v3202_v24 = vrot.slane %v3200_v33, 4  ;;  %v9788_v30 = vld.sshfl [vmem:[#allocation2 + $0x78] sm:$0xff pattern:$0x75316420] }
 0x284   : > { %v10569_v56 = vpack.c.bf16 %v2688_v21, %v9817_v57  ;;  %v3179_v28 = vrot.slane %v3178_v41, 4  ;;  %v3228_v2 = vshrl.u32 %v10567_v12, 16  ;;  %v3231_v36 = vshll.u32 %v10567_v12, 16  ;;  %v9789_v39 = vld.sshfl [vmem:[#allocation2 + $0x80] sm:$0xff pattern:$0x75316420] }
 0x285   : > { %v3205_v25 = vrot.slane %v3203_v5, 5  ;;  %v10540_v44 = vpack.c.bf16 %v13452_v45, %v13349_v8  ;;  %v3211_v48 = vrot.slane %v3209_v11, 5  ;;  %v10542_v46 = vpack.c.bf16 %v2748_v19, %v9778_v27  ;;  %v9794_v19 = vld.sshfl [vmem:[#allocation2 + $0xa8] sm:$0xff pattern:$0x75316420] }
 0x286   : > { %v3237_v51 = vshll.u32 %v10569_v56, 16  ;;  %v13472_v61 = vsel %vm13337_vm1, %v3179_v28, %v3183_v16  ;;  %v3230_v43 = vrot.slane %v3228_v2, 4  ;;  %v3233_v38 = vrot.slane %v3231_v36, 5  ;;  %v9795_v56 = vld.sshfl [vmem:[#allocation2 + $0xb0] sm:$0xff pattern:$0x75316420] }
 0x287   : > { %v9868_v54 = vcombine.high %v13468_v47, %v13472_v61  ;;  %v9867_v40 = vcombine.low %v13468_v47, %v13472_v61  ;;  %v3206_v53 = vor.u32 %v3205_v25, %v3202_v24  ;;  %v10544_v13 = vpack.c.bf16 %v13464_v0, %v13462_v22  ;;  %v9790_v16 = vld.sshfl [vmem:[#allocation2 + $0x88] sm:$0x11 pattern:$0x75316420] }
 0x288   : > { %v3234_v3 = vor.u32 %v3233_v38, %v3230_v43  ;;  %v10546_v55 = vpack.c.bf16 %v2751_v18, %v9784_v15  ;;  %v3239_v14 = vrot.slane %v3237_v51, 5  ;;  %v3046_v17 = vshrl.u32 %v10540_v44, 16  ;;  %v9796_v2 = vld.sshfl [vmem:[#allocation2 + $0xb8] sm:$0x11 pattern:$0x75316420] }
 0x289   : > { %3624 = vmatprep.mubr.bf16.mxu1 %v9868_v54  ;;  %v3207_v49 = vrot.slane %v3206_v53, 4  ;;  %v3049_v7 = vshll.u32 %v10540_v44, 16  ;;  %v3055_v21 = vshll.u32 %v10542_v46, 16  ;;  %v3074_v4 = vshrl.u32 %v10544_v13, 16 }
 0x28a   : > { %3625 = vmatmul.mubr.bf16.gmra.mrb[40].mxu1 %v9867_v40  ;;  %v3235_v57 = vrot.slane %v3234_v3, 4  ;;  %v3077_v23 = vshll.u32 %v10544_v13, 16  ;;  %v3048_v41 = vrot.slane %v3046_v17, 4  ;;  %v3083_v27 = vshll.u32 %v10546_v55, 16 }
 0x28b   : > { %v3051_v12 = vrot.slane %v3049_v7, 5  ;;  %v13482_v33 = vcombine.low %v9788_v30, %v9789_v39  ;;  %v13486_v15 = vsel %vm13337_vm1, %v3207_v49, %v3211_v48  ;;  %v3076_v11 = vrot.slane %v3074_v4, 4  ;;  %v9801_v51 = vld.sshfl [vmem:[#allocation2 + $0xe0] sm:$0xff pattern:$0x75316420] }
 0x28c   : > { %v13490_v5 = vsel %vm13337_vm1, %v3235_v57, %v3239_v14  ;;  %v3079_v28 = vrot.slane %v3077_v23, 5  ;;  %v3057_v25 = vrot.slane %v3055_v21, 5  ;;  %v13496_v38 = vcombine.high %v9788_v30, %v9789_v39  ;;  %v9800_v46 = vld.sshfl [vmem:[#allocation2 + $0xd8] sm:$0xff pattern:$0x75316420] }
 0x28d   : > { %15178 = vst [vmem:[#allocation23_spill] sm:$0xff] %v13490_v5  ;;  %v9872_v36 = vcombine.high %v13486_v15, %v13490_v5  ;;  %v9871_v18 = vcombine.low %v13486_v15, %v13490_v5  ;;  %v3052_v24 = vor.u32 %v3051_v12, %v3048_v41  ;;  %v2754_v44 = vcombine.high %v9790_v16, %v9790_v16  ;;  %v9802_v14 = vld.sshfl [vmem:[#allocation2 + $0xe8] sm:$0x11 pattern:$0x75316420] }
 0x28e   : > { %v3080_v43 = vor.u32 %v3079_v28, %v3076_v11  ;;  %v13498_v54 = vcombine.low %v9794_v19, %v9795_v56  ;;  %v3085_v53 = vrot.slane %v3083_v27, 5  ;;  %v13500_v48 = vcombine.high %v9794_v19, %v9795_v56  ;;  %v9807_v41 = vld.sshfl [vmem:[#allocation2 + $0x110] sm:$0xff pattern:$0x75316420] }
 0x28f   : > { %3632 = vmatprep.mubr.bf16.mxu1 %v9872_v36  ;;  %v3053_v40 = vrot.slane %v3052_v24, 4  ;;  %v2757_v3 = vcombine.high %v9796_v2, %v9796_v2  ;;  %v10548_v55 = vpack.c.bf16 %v13496_v38, %v13482_v33  ;;  %v10550_v49 = vpack.c.bf16 %v2754_v44, %v9790_v16  ;;  %v9808_v56 = vld.sshfl [vmem:[#allocation2 + $0x118] sm:$0x11 pattern:$0x75316420] }
 0x290   : > { %v3081_v13 = vrot.slane %v3080_v43, 4  ;;  %v13504_v17 = vcombine.low %v9800_v46, %v9801_v51  ;;  %v10552_v39 = vpack.c.bf16 %v13500_v48, %v13498_v54  ;;  %v13510_v57 = vcombine.high %v9800_v46, %v9801_v51  ;;  %v9820_v5 = vld.sshfl [vmem:[#allocation2 + $0x178] sm:$0x11 pattern:$0x75316420] }
 0x291   : > { %v3058_v30 = vsel %vm13337_vm1, %v3053_v40, %v3057_v25  ;;  %v10554_v7 = vpack.c.bf16 %v2757_v3, %v9796_v2  ;;  %v3102_v4 = vshrl.u32 %v10548_v55, 16  ;;  %v3105_v23 = vshll.u32 %v10548_v55, 16  ;;  %v11710_v55 = vld [vmem:[#allocation4] sm:$0xff]  }
 0x292   : > { %3633 = vmatmul.mubr.bf16.gmra.mrb[44].mxu1 %v9871_v18  ;;  %v13514_v21 = vsel %vm13337_vm1, %v3081_v13, %v3085_v53  ;;  %v3111_v16 = vshll.u32 %v10550_v49, 16  ;;  %v3130_v27 = vshrl.u32 %v10552_v39, 16  ;;  %v3133_v19 = vshll.u32 %v10552_v39, 16  ;;  %v9806_v18 = vld.sshfl [vmem:[#allocation2 + $0x108] sm:$0xff pattern:$0x75316420] }
 0x293   : > { %v9862_v12 = vcombine.high %v3058_v30, %v13514_v21  ;;  %v2760_v11 = vcombine.high %v9802_v14, %v9802_v14  ;;  %v9861_v28 = vcombine.low %v3058_v30, %v13514_v21  ;;  %v3104_v2 = vrot.slane %v3102_v4, 4  ;;  %v9813_v13 = vld.sshfl [vmem:[#allocation2 + $0x140] sm:$0xff pattern:$0x75316420]  ;;  %v11711_v39 = vld [vmem:[#allocation4 + $0x48] sm:$0xff]  }
 0x294   : > { %v3107_v36 = vrot.slane %v3105_v23, 5  ;;  %v3139_v24 = vshll.u32 %v10554_v7, 16  ;;  %v3132_v25 = vrot.slane %v3130_v27, 4  ;;  %v3135_v51 = vrot.slane %v3133_v19, 5 }
 0x295   : > { %3673 = vmatprep.mubr.bf16.mxu1 %v9862_v12  ;;  %v13518_v43 = vcombine.low %v9806_v18, %v9807_v41  ;;  %v13520_v44 = vcombine.high %v9806_v18, %v9807_v41  ;;  %v3113_v53 = vrot.slane %v3111_v16, 5  ;;  %v2763_v3 = vcombine.high %v9808_v56, %v9808_v56  ;;  %v9812_v19 = vld.sshfl [vmem:[#allocation2 + $0x138] sm:$0xff pattern:$0x75316420] }
 0x296   : > { %v3108_v40 = vor.u32 %v3107_v36, %v3104_v2  ;;  %v10556_v46 = vpack.c.bf16 %v13510_v57, %v13504_v17  ;;  %v3136_v49 = vor.u32 %v3135_v51, %v3132_v25  ;;  %v3141_v30 = vrot.slane %v3139_v24, 5  ;;  %v9814_v2 = vld.sshfl [vmem:[#allocation2 + $0x148] sm:$0x11 pattern:$0x75316420] }
 0x297   : > { %v10558_v7 = vpack.c.bf16 %v2760_v11, %v9802_v14  ;;  %v10560_v4 = vpack.c.bf16 %v13520_v44, %v13518_v43  ;;  %v10562_v12 = vpack.c.bf16 %v2763_v3, %v9808_v56  ;;  %v13526_v42 = vcombine.low %v9812_v19, %v9813_v13  ;;  %v9819_v51 = vld.sshfl [vmem:[#allocation2 + $0x170] sm:$0xff pattern:$0x75316420] }
 0x298   : > { %v3109_v23 = vrot.slane %v3108_v40, 4  ;;  %v3158_v27 = vshrl.u32 %v10556_v46, 16  ;;  %v3161_v41 = vshll.u32 %v10556_v46, 16  ;;  %v3137_v16 = vrot.slane %v3136_v49, 4  ;;  %v11712_v40 = vld [vmem:[#allocation4 + $0x8] sm:$0xff]  }
 0x299   : > { %v3186_v36 = vshrl.u32 %v10560_v4, 16  ;;  %v3189_v18 = vshll.u32 %v10560_v4, 16  ;;  %v3167_v25 = vshll.u32 %v10558_v7, 16  ;;  %v3195_v49 = vshll.u32 %v10562_v12, 16  ;;  %v11713_v4 = vld [vmem:[#allocation4 + $0x50] sm:$0xff]  }
 0x29a   : > { %3674 = vmatmul.mubr.bf16.vlgmr.msra.gmra.mrb[48].mxu1 %v9861_v28  ;;  %v13530_v24 = vsel %vm13337_vm1, %v3109_v23, %v3113_v53  ;;  %v3160_v14 = vrot.slane %v3158_v27, 4  ;;  %v3163_v11 = vrot.slane %v3161_v41, 5  ;;  %v13534_v56 = vsel %vm13337_vm1, %v3137_v16, %v3141_v30  ;;  %v9818_v23 = vld.sshfl [vmem:[#allocation2 + $0x168] sm:$0xff pattern:$0x75316420]  ;;  %v11714_v12 = vld [vmem:[#allocation4 + $0x10] sm:$0xff]  }
 0x29b   : > { %10756 = vmatpush3.bf16.msra.mxu1 %v11710_v55  ;;  %v3188_v3 = vrot.slane %v3186_v36, 4  ;;  %v3191_v46 = vrot.slane %v3189_v18, 5  ;;  %v9866_v28 = vcombine.high %v13530_v24, %v13534_v56  ;;  %v13538_v41 = vcombine.high %v9812_v19, %v9813_v13 }
 0x29c   : > { %10757 = vmatprep.subr.bf16.mxu1 %v11711_v39  ;;  %v3164_v53 = vor.u32 %v3163_v11, %v3160_v14  ;;  %v2766_v7 = vcombine.high %v9814_v2, %v9814_v2  ;;  %v13540_v55 = vcombine.low %v9818_v23, %v9819_v51  ;;  %v3169_v16 = vrot.slane %v3167_v25, 5  ;;  %v11715_v11 = vld [vmem:[#allocation4 + $0x58] sm:$0xff]  }
 0x29d   : > { %v3192_v27 = vor.u32 %v3191_v46, %v3188_v3  ;;  %3681 = vmatprep.mubr.bf16.mxu1 %v9866_v28  ;;  %v13542_v29 = vcombine.high %v9818_v23, %v9819_v51  ;;  %v2769_v36 = vcombine.high %v9820_v5, %v9820_v5  ;;  %v3197_v1 = vrot.slane %v3195_v49, 5 }
 0x29e   : > { %v3165_v30 = vrot.slane %v3164_v53, 4  ;;  %v10564_v39 = vpack.c.bf16 %v13538_v41, %v13526_v42  ;;  %v10566_v14 = vpack.c.bf16 %v2766_v7, %v9814_v2  ;;  %v9865_v13 = vcombine.low %v13530_v24, %v13534_v56  ;;  %v11716_v53 = vld [vmem:[#allocation4 + $0x18] sm:$0xff]  }
 0x29f   : > { %10758 = vmatpush3.bf16.msra.mxu1 %v11712_v40  ;;  %v3193_v18 = vrot.slane %v3192_v27, 4  ;;  %v10568_v25 = vpack.c.bf16 %v13542_v29, %v13540_v55  ;;  %v10570_v51 = vpack.c.bf16 %v2769_v36, %v9820_v5  ;;  %v10580_v36 = vpack.c.bf16 %v13423_v32, %v13404_v59 }
 0x2a0   : > { %10759 = vmatprep.subr.bf16.mxu1 %v11713_v4  ;;  %v13550_v19 = vsel %vm13337_vm1, %v3165_v30, %v3169_v16  ;;  %v3214_v3 = vshrl.u32 %v10564_v39, 16  ;;  %v3217_v46 = vshll.u32 %v10564_v39, 16  ;;  %v3223_v2 = vshll.u32 %v10566_v14, 16 }
 0x2a1   : > { %v13556_v40 = vsel %vm13337_vm1, %v3193_v18, %v3197_v1  ;;  %v3242_v28 = vshrl.u32 %v10568_v25, 16  ;;  %v3245_v4 = vshll.u32 %v10568_v25, 16  ;;  %v3251_v7 = vshll.u32 %v10570_v51, 16  ;;  %v11717_v1 = vld [vmem:[#allocation4 + $0x60] sm:$0xff]  }
 0x2a2   : > { %3682 = vmatmul.mubr.bf16.gmra.mrb[52].mxu1 %v9865_v13  ;;  %v9870_v49 = vcombine.high %v13550_v19, %v13556_v40  ;;  %v9869_v23 = vcombine.low %v13550_v19, %v13556_v40  ;;  %v3216_v27 = vrot.slane %v3214_v3, 4  ;;  %v3219_v5 = vrot.slane %v3217_v46, 5  ;;  %v11718_v46 = vld [vmem:[#allocation4 + $0x20] sm:$0xff]  }
 0x2a3   : > { %10760 = vmatpush3.bf16.msra.mxu1 %v11714_v12  ;;  %v3244_v30 = vrot.slane %v3242_v28, 4  ;;  %v3247_v16 = vrot.slane %v3245_v4, 5  ;;  %v10579_v18 = vpack.c.bf16 %v13414_v50, %v13401_v20  ;;  %v3225_v12 = vrot.slane %v3223_v2, 5 }
 0x2a4   : > { %3689 = vmatprep.mubr.bf16.mxu1 %v9870_v49  ;;  %10761 = vmatprep.subr.bf16.mxu1 %v11715_v11  ;;  %v3220_v39 = vor.u32 %v3219_v5, %v3216_v27  ;;  %v10584_v14 = vpack.c.bf16 %v13456_v37, %v13448_v6  ;;  %v10583_v13 = vpack.c.bf16 %v13454_v63, %v13446_v34  ;;  %v3253_v5 = vrot.slane %v3251_v7, 5  ;;  %v11729_v7 = vld [vmem:[#allocation4 + $0xd0] sm:$0xff]  }
 0x2a5   : > { %v3248_v25 = vor.u32 %v3247_v16, %v3244_v30  ;;  %v10574_v11 = vpack.c.bf16 %v13464_v0, %v13452_v45  ;;  %v10573_v51 = vpack.c.bf16 %v13462_v22, %v13349_v8  ;;  %v10578_v3 = vpack.c.bf16 %v13500_v48, %v13496_v38  ;;  %v11719_v30 = vld [vmem:[#allocation4 + $0x68] sm:$0xff]   ;;  %v11745_v45 = vld [vmem:[#allocation4 + $0x250] sm:$0xff]  }
 0x2a6   : > { %v3221_v49 = vrot.slane %v3220_v39, 4  ;;  %v10577_v2 = vpack.c.bf16 %v13498_v54, %v13482_v33  ;;  %v10581_v4 = vpack.c.bf16 %v13518_v43, %v13504_v17  ;;  %v10586_v16 = vpack.c.bf16 %v13542_v29, %v13538_v41 }
 0x2a7   : > { %10762 = vmatpush3.bf16.msra.mxu1 %v11716_v53  ;;  %v3249_v27 = vrot.slane %v3248_v25, 4  ;;  %v11720_v53 = vld [vmem:[#allocation4 + $0x28] sm:$0xff]   ;;  %v15180_v8 = vpack.c.bf16 %v13520_v44, %v13510_v57  ;;  %vm5422_vm15 = vsmask.f32 1280  ;;  %vm5423_vm0 = vsmask.f32 3336 }
 0x2a8   : > { %10763 = vmatprep.subr.bf16.mxu1 %v11717_v1  ;;  %v13588_v39 = vsel %vm13337_vm1, %v3221_v49, %v3225_v12  ;;  %v10596_v1 = vpack.c.bf16 %v13448_v6, %v13423_v32  ;;  %v11721_v12 = vld [vmem:[#allocation4 + $0x70] sm:$0xff]   ;;  %v11724_v49 = vld [vmem:[#allocation4 + $0x38] sm:$0xff]   ;;  %v11768_v32 = vld [vmem:[#allocation4 + $0x2a8] sm:$0xff]   ;;  %vm5425_vm3 = vsmask.f32 5392 }
 0x2a9   : > { %v13592_v28 = vsel %vm13337_vm1, %v3249_v27, %v3253_v5  ;;  %v11723_v5 = vld [vmem:[#allocation4 + $0x78] sm:$0xff]   ;;  %v11769_v6 = vld [vmem:[#allocation4 + $0x2f0] sm:$0xff]   ;;  %vm5424_vm2 = vmor %vm5422_vm15, %vm5423_vm0  ;;  %vm5427_vm4 = vsmask.f32 7448 }
 0x2aa   : > { %3690 = vmatmul.mubr.bf16.gmra.mrb[56].mxu1 %v9869_v23  ;;  %v9874_v25 = vcombine.high %v13588_v39, %v13592_v28  ;;  %v11722_v23 = vld [vmem:[#allocation4 + $0x30] sm:$0xff]   ;;  %v9873_v27 = vcombine.low %v13588_v39, %v13592_v28  ;;  %vm5426_vm5 = vmor %vm5424_vm2, %vm5425_vm3 }
 0x2ab   : > { %10764 = vmatpush3.bf16.msra.mxu1 %v11718_v46  ;;  %v10572_v46 = vpack.c.bf16 %v13323_v26, %v13294_v10  ;;  %v11728_v10 = vld [vmem:[#allocation4 + $0x88] sm:$0xff]   ;;  %vm13912_vm6 = vmor %vm5426_vm5, %vm5427_vm4 }
 0x2ac   : > { %10765 = vmatprep.subr.bf16.mxu1 %v11719_v30  ;;  %3697 = vmatprep.mubr.bf16.mxu1 %v9874_v25  ;;  %v11725_v25 = vld [vmem:[#allocation4 + $0xc0] sm:$0xff]  }
 0x2af   : > { %10766 = vmatpush3.bf16.msra.mxu1 %v11720_v53  ;;  %v11726_v53 = vld [vmem:[#allocation4 + $0x80] sm:$0xff]  }
 0x2b0   : > { %10767 = vmatprep.subr.bf16.mxu1 %v11721_v12  ;;  %v10009_v12 = vcombine.low %v13514_v21, %v13530_v24 }
 0x2b2   : > { %3698 = vmatmul.mubr.bf16.gmra.mrb[60].mxu1 %v9873_v27  ;;  %v11730_v27 = vld [vmem:[#allocation4 + $0x90] sm:$0xff]  }
 0x2b3   : > { %10768 = vmatpush3.bf16.msra.mxu1 %v11722_v23  ;;  %3962 = vmatprep.mubr.bf16.mxu1 %v10572_v46  ;;  %v10571_v23 = vpack.c.bf16 %v13321_v31, %v13292_v9  ;;  %v11727_v46 = vld [vmem:[#allocation4 + $0xc8] sm:$0xff]   ;;  %v11732_v9 = vld [vmem:[#allocation4 + $0x98] sm:$0xff]  }
 0x2b4   : > { %10769 = vmatprep.subr.bf16.mxu1 %v11723_v5  ;;  %v10576_v5 = vpack.c.bf16 %v13373_v62, %v13357_v52 }
 0x2b7   : > { %10770 = vmatpush3.bf16.msra.mxu1 %v11724_v49  ;;  %v15179_v49 = vld [vmem:[#allocation21_spill] sm:$0xff] }
 0x2b8   : > { %10795 = vmatprep.subr.bf16.mxu1 %v11725_v25  ;;  %v10575_v30 = vpack.c.bf16 %v15179_v49, %v13355_v35  ;;  %v11731_v25 = vld [vmem:[#allocation4 + $0xd8] sm:$0xff]  }
 0x2ba   : > { %3963 = vmatmul.mubr.bf16.vlgmr.msra.gmra.mrb[64].mxu1 %v10571_v23  ;;  %v11734_v23 = vld [vmem:[#allocation4 + $0xa0] sm:$0xff]  }
 0x2bb   : > { %10796 = vmatpush3.bf16.msra.mxu1 %v11726_v53  ;;  %3970 = vmatprep.mubr.bf16.mxu1 %v10576_v5  ;;  %v11733_v53 = vld [vmem:[#allocation4 + $0xe0] sm:$0xff]   ;;  %v11743_v5 = vld [vmem:[#allocation4 + $0x248] sm:$0xff]  }
 0x2bc   : > { %10797 = vmatprep.subr.bf16.mxu1 %v11727_v46  ;;  %v11735_v46 = vld [vmem:[#allocation4 + $0xe8] sm:$0xff]  }
 0x2bf   : > { %10798 = vmatpush3.bf16.msra.mxu1 %v11728_v10  ;;  %v11739_v10 = vld [vmem:[#allocation4 + $0xf8] sm:$0xff]  }
 0x2c0   : > { %10799 = vmatprep.subr.bf16.mxu1 %v11729_v7  ;;  %v11736_v7 = vld [vmem:[#allocation4 + $0xa8] sm:$0xff]  }
 0x2c2   : > { %3971 = vmatmul.mubr.bf16.gmra.mrb[68].mxu1 %v10575_v30  ;;  %v11737_v30 = vld [vmem:[#allocation4 + $0xf0] sm:$0xff]  }
 0x2c3   : > { %10800 = vmatpush3.bf16.msra.mxu1 %v11730_v27  ;;  %3978 = vmatprep.mubr.bf16.mxu1 %v10580_v36  ;;  %v11738_v36 = vld [vmem:[#allocation4 + $0xb0] sm:$0xff]   ;;  %v11741_v27 = vld [vmem:[#allocation4 + $0x240] sm:$0xff]  }
 0x2c4   : > { %10801 = vmatprep.subr.bf16.mxu1 %v11731_v25  ;;  %v11747_v25 = vld [vmem:[#allocation4 + $0x258] sm:$0xff]  }
 0x2c7   : > { %10802 = vmatpush3.bf16.msra.mxu1 %v11732_v9  ;;  %v11749_v9 = vld [vmem:[#allocation4 + $0x260] sm:$0xff]  }
 0x2c8   : > { %10803 = vmatprep.subr.bf16.mxu1 %v11733_v53  ;;  %v11751_v53 = vld [vmem:[#allocation4 + $0x268] sm:$0xff]  }
 0x2ca   : > { %3979 = vmatmul.mubr.bf16.gmra.mrb[72].mxu1 %v10579_v18  ;;  %v11740_v18 = vld [vmem:[#allocation4 + $0xb8] sm:$0xff]  }
 0x2cb   : > { %10804 = vmatpush3.bf16.msra.mxu1 %v11734_v23  ;;  %3986 = vmatprep.mubr.bf16.mxu1 %v10584_v14  ;;  %v11742_v14 = vld [vmem:[#allocation4 + $0x200] sm:$0xff]   ;;  %v11753_v23 = vld [vmem:[#allocation4 + $0x270] sm:$0xff]  }
 0x2cc   : > { %10805 = vmatprep.subr.bf16.mxu1 %v11735_v46  ;;  %v11754_v46 = vld [vmem:[#allocation4 + $0x230] sm:$0xff]  }
 0x2cf   : > { %10806 = vmatpush3.bf16.msra.mxu1 %v11736_v7  ;;  %v11755_v7 = vld [vmem:[#allocation4 + $0x278] sm:$0xff]  }
 0x2d0   : > { %10807 = vmatprep.subr.bf16.mxu1 %v11737_v30  ;;  %v10588_v30 = vpack.c.bf16 %v13357_v52, %v13323_v26  ;;  %v11760_v26 = vld [vmem:[#allocation4 + $0x288] sm:$0xff]   ;;  %v11761_v52 = vld [vmem:[#allocation4 + $0x2d0] sm:$0xff]  }
 0x2d2   : > { %3987 = vmatmul.mubr.bf16.gmra.mrb[76].mxu1 %v10583_v13  ;;  %v11744_v13 = vld [vmem:[#allocation4 + $0x208] sm:$0xff]  }
 0x2d3   : > { %10808 = vmatpush3.bf16.msra.mxu1 %v11738_v36  ;;  %4027 = vmatprep.mubr.bf16.mxu1 %v10574_v11  ;;  %v11746_v11 = vld [vmem:[#allocation4 + $0x210] sm:$0xff]   ;;  %v15181_v36 = vpack.c.bf16 %v13540_v55, %v13526_v42 }
 0x2d4   : > { %10809 = vmatprep.subr.bf16.mxu1 %v11739_v10  ;;  %v11757_v10 = vld [vmem:[#allocation4 + $0x2c0] sm:$0xff]  }
 0x2d7   : > { %10810 = vmatpush3.bf16.msra.mxu1 %v11740_v18  ;;  %v10587_v18 = vpack.c.bf16 %v13355_v35, %v13321_v31  ;;  %v11764_v31 = vld [vmem:[#allocation4 + $0x298] sm:$0xff]   ;;  %v11765_v35 = vld [vmem:[#allocation4 + $0x2e0] sm:$0xff]  }
 0x2d8   : > { %10835 = vmatprep.subr.bf16.mxu1 %v11741_v27  ;;  %v11759_v27 = vld [vmem:[#allocation4 + $0x2c8] sm:$0xff]  }
 0x2da   : > { %4028 = vmatmul.mubr.bf16.vlgmr.msra.gmra.mrb[80].mxu1 %v10573_v51  ;;  %v11748_v51 = vld [vmem:[#allocation4 + $0x218] sm:$0xff]  }
 0x2db   : > { %10836 = vmatpush3.bf16.msra.mxu1 %v11742_v14  ;;  %4035 = vmatprep.mubr.bf16.mxu1 %v10578_v3  ;;  %v11750_v3 = vld [vmem:[#allocation4 + $0x220] sm:$0xff]   ;;  %v10592_v14 = vpack.c.bf16 %v13404_v59, %v13373_v62  ;;  %v9821_v62 = vld.sshfl [vmem:[#allocation2 + $0x180] sm:$0xff pattern:$0x75316420] }
 0x2dc   : > { %10837 = vmatprep.subr.bf16.mxu1 %v11743_v5  ;;  %v11762_v5 = vld [vmem:[#allocation4 + $0x290] sm:$0xff]  }
 0x2df   : > { %10838 = vmatpush3.bf16.msra.mxu1 %v11744_v13  ;;  %v10591_v13 = vpack.c.bf16 %v13401_v20, %v15179_v49  ;;  %v15182_v49 = vpack.c.bf16 %v13446_v34, %v13414_v50  ;;  %v11772_v50 = vld [vmem:[#allocation4 + $0x2b8] sm:$0xff]   ;;  %v11773_v34 = vld [vmem:[#allocation4 + $0x340] sm:$0xff]  }
 0x2e0   : > { %10839 = vmatprep.subr.bf16.mxu1 %v11745_v45  ;;  %v11763_v45 = vld [vmem:[#allocation4 + $0x2d8] sm:$0xff]  }
 0x2e2   : > { %4036 = vmatmul.mubr.bf16.gmra.mrb[84].mxu1 %v10577_v2  ;;  %v11752_v2 = vld [vmem:[#allocation4 + $0x228] sm:$0xff]  }
 0x2e3   : > { %10840 = vmatpush3.bf16.msra.mxu1 %v11746_v11  ;;  %4043 = vmatprep.mubr.bf16.mxu1 %v15180_v8  ;;  %v9822_v11 = vld.sshfl [vmem:[#allocation2 + $0x188] sm:$0xff pattern:$0x75316420]  ;;  %v11767_v8 = vld [vmem:[#allocation4 + $0x2e8] sm:$0xff]  }
 0x2e4   : > { %10841 = vmatprep.subr.bf16.mxu1 %v11747_v25  ;;  %v13689_v59 = vcombine.high %v9821_v62, %v9822_v11  ;;  %v11766_v25 = vld [vmem:[#allocation4 + $0x2a0] sm:$0xff]  }
 0x2e6   : > { %v10600_v20 = vpack.c.bf16 %v13689_v59, %v13456_v37  ;;  %v15183_v37 = vpack.c.bf16 %v13496_v38, %v13464_v0  ;;  %v11777_v0 = vld [vmem:[#allocation4 + $0x350] sm:$0xff]  }
 0x2e7   : > { %10842 = vmatpush3.bf16.msra.mxu1 %v11748_v51  ;;  %v11770_v51 = vld [vmem:[#allocation4 + $0x2b0] sm:$0xff]  }
 0x2e8   : > { %10843 = vmatprep.subr.bf16.mxu1 %v11749_v9  ;;  %v11778_v38 = vld [vmem:[#allocation4 + $0x310] sm:$0xff]  }
 0x2ea   : > { %4044 = vmatmul.mubr.bf16.gmra.mrb[88].mxu1 %v10581_v4  ;;  %v11756_v4 = vld [vmem:[#allocation4 + $0x238] sm:$0xff]  }
 0x2eb   : > { %10844 = vmatpush3.bf16.msra.mxu1 %v11750_v3  ;;  %4051 = vmatprep.mubr.bf16.mxu1 %v10586_v16  ;;  %v11758_v16 = vld [vmem:[#allocation4 + $0x280] sm:$0xff]   ;;  %v11771_v3 = vld [vmem:[#allocation4 + $0x2f8] sm:$0xff]  }
 0x2ec   : > { %10845 = vmatprep.subr.bf16.mxu1 %v11751_v53  ;;  %v11774_v53 = vld [vmem:[#allocation4 + $0x300] sm:$0xff]  }
 0x2ef   : > { %10846 = vmatpush3.bf16.msra.mxu1 %v11752_v2  ;;  %v11775_v2 = vld [vmem:[#allocation4 + $0x348] sm:$0xff]  }
 0x2f0   : > { %10847 = vmatprep.subr.bf16.mxu1 %v11753_v23  ;;  %v15184_v23 = vpack.c.bf16 %v13482_v33, %v13462_v22  ;;  %v15187_v22 = vpack.c.bf16 %v13538_v41, %v13520_v44  ;;  %v11780_v33 = vld [vmem:[#allocation4 + $0x318] sm:$0xff]   ;;  %v11784_v44 = vld [vmem:[#allocation4 + $0x328] sm:$0xff]   ;;  %v11785_v41 = vld [vmem:[#allocation4 + $0x370] sm:$0xff]  }
 0x2f2   : > { %4052 = vmatmul.mubr.bf16.gmra.mrb[92].mxu1 %v15181_v36  ;;  %v9824_v36 = vld.sshfl [vmem:[#allocation2 + $0x198] sm:$0xff pattern:$0x75316420] }
 0x2f3   : > { %10848 = vmatpush3.bf16.msra.mxu1 %v11754_v46  ;;  %4389 = vmatprep.mubr.bf16.mxu1 %v10588_v30  ;;  %v11776_v46 = vld [vmem:[#allocation4 + $0x308] sm:$0xff]   ;;  %v15186_v30 = vpack.c.bf16 %v13504_v17, %v13498_v54  ;;  %v15188_v17 = vpack.c.bf16 %v13526_v42, %v13518_v43  ;;  %v11788_v43 = vld [vmem:[#allocation4 + $0x338] sm:$0xff]  }
 0x2f4   : > { %10849 = vmatprep.subr.bf16.mxu1 %v11755_v7  ;;  %v11779_v7 = vld [vmem:[#allocation4 + $0x358] sm:$0xff]  }
 0x2f7   : > { %10850 = vmatpush3.bf16.msra.mxu1 %v11756_v4  ;;  %v9825_v4 = vld.sshfl [vmem:[#allocation2 + $0x1a0] sm:$0xff pattern:$0x75316420] }
 0x2f8   : > { %10875 = vmatprep.subr.bf16.mxu1 %v11757_v10  ;;  %v11782_v10 = vld [vmem:[#allocation4 + $0x320] sm:$0xff]  }
 0x2fa   : > { %4390 = vmatmul.mubr.bf16.vlgmr.msra.gmra.mrb[96].mxu1 %v10587_v18  ;;  %v13719_v18 = vcombine.low %v9824_v36, %v9825_v4 }
 0x2fb   : > { %10876 = vmatpush3.bf16.msra.mxu1 %v11758_v16  ;;  %4397 = vmatprep.mubr.bf16.mxu1 %v10592_v14  ;;  %v11783_v16 = vld [vmem:[#allocation4 + $0x368] sm:$0xff]  }
 0x2fc   : > { %10877 = vmatprep.subr.bf16.mxu1 %v11759_v27  ;;  %v11786_v27 = vld [vmem:[#allocation4 + $0x330] sm:$0xff]   ;;  %v10601_v14 = vpack.c.bf16 %v13719_v18, %v13540_v55 }
 0x2ff   : > { %10878 = vmatpush3.bf16.msra.mxu1 %v11760_v26  ;;  %v11787_v26 = vld [vmem:[#allocation4 + $0x378] sm:$0xff]  }
 0x300   : > { %10879 = vmatprep.subr.bf16.mxu1 %v11761_v52  ;;  %v15189_v52 = vld [vmem:[#allocation22_spill] sm:$0xff] }
 0x302   : > { %4398 = vmatmul.mubr.bf16.gmra.mrb[100].mxu1 %v10591_v13 }
 0x303   : > { %10880 = vmatpush3.bf16.msra.mxu1 %v11762_v5  ;;  %4405 = vmatprep.mubr.bf16.mxu1 %v10596_v1  ;;  %v2689_v1 = vcombine.low %v9821_v62, %v9822_v11 }
 0x304   : > { %10881 = vmatprep.subr.bf16.mxu1 %v11763_v45  ;;  %v11789_v45 = vld [vmem:[#allocation4 + $0x3c0] sm:$0xff]  }
 0x305   : > { %v10599_v9 = vpack.c.bf16 %v2689_v1, %v13454_v63  ;;  %v15185_v63 = vpack.c.bf16 %v13510_v57, %v13500_v48  ;;  %v11781_v48 = vld [vmem:[#allocation4 + $0x360] sm:$0xff]   ;;  %v13712_v57 = vcombine.high %v9824_v36, %v9825_v4  ;;  %v10603_v42 = vpack.c.bf16 %v13689_v59, %v2689_v1 }
 0x307   : > { %10882 = vmatpush3.bf16.msra.mxu1 %v11764_v31  ;;  %v10602_v54 = vpack.c.bf16 %v13712_v57, %v13542_v29  ;;  %v15190_v29 = vld [vmem:[#allocation20_spill] sm:$0xff]  ;;  %v9823_v31 = vld.sshfl [vmem:[#allocation2 + $0x190] sm:$0x11 pattern:$0x75316420]  ;;  %v4507_v62 = vshll.u32 %v10603_v42, 16 }
 0x308   : > { %10883 = vmatprep.subr.bf16.mxu1 %v11765_v35  ;;  %v10008_v5 = vcombine.high %v15190_v29, %v15189_v52  ;;  %v4504_v35 = vshrl.u32 %v10603_v42, 16  ;;  %v10007_v59 = vcombine.low %v15190_v29, %v15189_v52  ;;  %v11803_v52 = vld [vmem:[#allocation4 + $0x3f8] sm:$0xff]   ;;  %v10604_v29 = vpack.c.bf16 %v13712_v57, %v13719_v18 }
 0x309   : > { %v15197_v18 = vcombine.high %v13534_v56, %v13550_v19 }
 0x30a   : > { %4406 = vmatmul.mubr.bf16.gmra.mrb[104].mxu1 %v15182_v49  ;;  %v4506_v1 = vrot.slane %v4504_v35, 4  ;;  %v4518_v42 = vshrl.u32 %v10604_v29, 16 }
 0x30b   : > { %10884 = vmatpush3.bf16.msra.mxu1 %v11766_v25  ;;  %4413 = vmatprep.mubr.bf16.mxu1 %v10600_v20  ;;  %v11790_v20 = vld [vmem:[#allocation4 + $0x380] sm:$0xff]  }
 0x30c   : > { %10885 = vmatprep.subr.bf16.mxu1 %v11767_v8 }
 0x30f   : > { %10886 = vmatpush3.bf16.msra.mxu1 %v11768_v32  ;;  %v11791_v32 = vld [vmem:[#allocation4 + $0x3c8] sm:$0xff]  }
 0x310   : > { %10887 = vmatprep.subr.bf16.mxu1 %v11769_v6  ;;  %v2691_v6 = vcombine.high %v9823_v31, %v9823_v31 }
 0x312   : > { %4414 = vmatmul.mubr.bf16.gmra.mrb[108].mxu1 %v10599_v9  ;;  %v15191_v9 = vcombine.high %v13411_v58, %v13468_v47 }
 0x313   : > { %10888 = vmatpush3.bf16.msra.mxu1 %v11770_v51  ;;  %4454 = vmatprep.mubr.bf16.mxu1 %v15183_v37  ;;  %v4509_v51 = vrot.slane %v4507_v62, 5  ;;  %v11793_v37 = vld [vmem:[#allocation4 + $0x3d0] sm:$0xff]  }
 0x314   : > { %10889 = vmatprep.subr.bf16.mxu1 %v11771_v3  ;;  %v11792_v3 = vld [vmem:[#allocation4 + $0x388] sm:$0xff]  }
 0x317   : > { %10890 = vmatpush3.bf16.msra.mxu1 %v11772_v50  ;;  %v10605_v50 = vpack.c.bf16 %v2691_v6, %v9823_v31  ;;  %v15198_v6 = vcombine.low %v13534_v56, %v13550_v19  ;;  %v15200_v56 = vcombine.low %v13556_v40, %v13588_v39 }
 0x318   : > { %10915 = vmatprep.subr.bf16.mxu1 %v11773_v34  ;;  %v4510_v34 = vor.u32 %v4509_v51, %v4506_v1 }
 0x31a   : > { %4455 = vmatmul.mubr.bf16.vlgmr.msra.gmra.mrb[112].mxu1 %v15184_v23  ;;  %v4513_v23 = vshll.u32 %v10605_v50, 16 }
 0x31b   : > { %10916 = vmatpush3.bf16.msra.mxu1 %v11774_v53  ;;  %4462 = vmatprep.mubr.bf16.mxu1 %v15185_v63  ;;  %v11794_v53 = vld [vmem:[#allocation4 + $0x390] sm:$0xff]   ;;  %v15192_v63 = vcombine.low %v13411_v58, %v13468_v47  ;;  %v11799_v58 = vld [vmem:[#allocation4 + $0x3e8] sm:$0xff]  }
 0x31c   : > { %10917 = vmatprep.subr.bf16.mxu1 %v11775_v2  ;;  %v11795_v2 = vld [vmem:[#allocation4 + $0x3d8] sm:$0xff]  }
 0x31f   : > { %10918 = vmatpush3.bf16.msra.mxu1 %v11776_v46  ;;  %v4511_v46 = vrot.slane %v4510_v34, 4 }
 0x320   : > { %10919 = vmatprep.subr.bf16.mxu1 %v11777_v0  ;;  %v15193_v0 = vcombine.high %v13472_v61, %v13486_v15 }
 0x322   : > { %4463 = vmatmul.mubr.bf16.gmra.mrb[116].mxu1 %v15186_v30  ;;  %v4515_v30 = vrot.slane %v4513_v23, 5 }
 0x323   : > { %10920 = vmatpush3.bf16.msra.mxu1 %v11778_v38  ;;  %4470 = vmatprep.mubr.bf16.mxu1 %v15187_v22  ;;  %v11796_v38 = vld [vmem:[#allocation4 + $0x398] sm:$0xff]   ;;  %v11798_v22 = vld [vmem:[#allocation4 + $0x3a0] sm:$0xff]  }
 0x324   : > { %10921 = vmatprep.subr.bf16.mxu1 %v11779_v7  ;;  %v11797_v7 = vld [vmem:[#allocation4 + $0x3e0] sm:$0xff]   ;;  %v4516_v36 = vsel %vm13337_vm1, %v4511_v46, %v4515_v30 }
 0x327   : > { %10922 = vmatpush3.bf16.msra.mxu1 %v11780_v33 }
 0x328   : > { %10923 = vmatprep.subr.bf16.mxu1 %v11781_v48 }
 0x32a   : > { %4471 = vmatmul.mubr.bf16.gmra.mrb[120].mxu1 %v15188_v17  ;;  %v15195_v17 = vcombine.low %v13472_v61, %v13486_v15  ;;  %v15196_v61 = vcombine.high %v13514_v21, %v13530_v24  ;;  %v11804_v15 = vld [vmem:[#allocation4 + $0x3b8] sm:$0xff]   ;;  %v15199_v24 = vcombine.high %v13556_v40, %v13588_v39 }
 0x32b   : > { %10924 = vmatpush3.bf16.msra.mxu1 %v11782_v10  ;;  %4478 = vmatprep.mubr.bf16.mxu1 %v10602_v54  ;;  %v15194_v10 = vld [vmem:[#allocation23_spill] sm:$0xff] }
 0x32c   : > { %10925 = vmatprep.subr.bf16.mxu1 %v11783_v16  ;;  %v10020_v16 = vcombine.high %v15194_v10, %v4516_v36 }
 0x32f   : > { %10926 = vmatpush3.bf16.msra.mxu1 %v11784_v44 }
 0x330   : > { %10927 = vmatprep.subr.bf16.mxu1 %v11785_v41  ;;  %v11800_v41 = vld [vmem:[#allocation4 + $0x3a8] sm:$0xff]  }
 0x332   : > { %4479 = vmatmul.mubr.bf16.gmra.mrb[124].mxu1 %v10601_v14  ;;  %v11802_v14 = vld [vmem:[#allocation4 + $0x3b0] sm:$0xff]  }
 0x333   : > { %10928 = vmatpush3.bf16.msra.mxu1 %v11786_v27  ;;  %4856 = vmatprep.mubr.bf16.mxu1 %v10008_v5  ;;  %v10691_v13 = vpop.f32.mrb[32].mxu1  ;;  %v11801_v27 = vld [vmem:[#allocation4 + $0x3f0] sm:$0xff]   ;;  %v9826_v5 = vld.sshfl [vmem:[#allocation2 + $0x1a8] sm:$0x11 pattern:$0x75316420] }
 0x334   : > { %10929 = vmatprep.subr.bf16.mxu1 %v11787_v26  ;;  %v10692_v11 = vpop.f32.mrb[33].mxu1  ;;  %v10019_v26 = vcombine.low %v15194_v10, %v4516_v36 }
 0x335   : > { %v13726_v25 = vadd.f32 %v10692_v11, %v10691_v13  ;;  %v10694_v55 = vpop.f32.mrb[34].mxu1  ;;  %v2772_v13 = vcombine.high %v9826_v5, %v9826_v5 }
 0x336   : > { %v10695_v8 = vpop.f32.mrb[35].mxu1 }
 0x337   : > { %10930 = vmatpush3.bf16.msra.mxu1 %v11788_v43  ;;  %v13728_v49 = vadd.f32 %v10695_v8, %v10694_v55  ;;  %v4521_v43 = vshll.u32 %v10604_v29, 16  ;;  %v10606_v57 = vpack.c.bf16 %v2772_v13, %v9826_v5 }
 0x338   : > { %10955 = vmatprep.subr.bf16.mxu1 %v11789_v45  ;;  %v4520_v45 = vrot.slane %v4518_v42, 4 }
 0x339   : > { %v4523_v11 = vrot.slane %v4521_v43, 5  ;;  %v4527_v55 = vshll.u32 %v10606_v57, 16 }
 0x33a   : > { %4857 = vmatmul.mubr.bf16.vlgmr.msra.gmra.mrb[128].mxu1 %v10007_v59 }
 0x33b   : > { %10956 = vmatpush3.bf16.msra.mxu1 %v11790_v20  ;;  %4864 = vmatprep.mubr.bf16.mxu1 %v15191_v9  ;;  %v4524_v62 = vor.u32 %v4523_v11, %v4520_v45  ;;  %v4529_v21 = vrot.slane %v4527_v55, 5 }
 0x33c   : > { %10957 = vmatprep.subr.bf16.mxu1 %v11791_v32 }
 0x33d   : > { %v4525_v1 = vrot.slane %v4524_v62, 4 }
 0x33f   : > { %10958 = vmatpush3.bf16.msra.mxu1 %v11792_v3  ;;  %v4530_v9 = vsel %vm13337_vm1, %v4525_v1, %v4529_v21 }
 0x340   : > { %10959 = vmatprep.subr.bf16.mxu1 %v11793_v37 }
 0x342   : > { %4865 = vmatmul.mubr.bf16.gmra.mrb[132].mxu1 %v15192_v63 }
 0x343   : > { %10960 = vmatpush3.bf16.msra.mxu1 %v11794_v53  ;;  %4872 = vmatprep.mubr.bf16.mxu1 %v15193_v0  ;;  %v10022_v53 = vcombine.high %v13592_v28, %v4530_v9  ;;  %v10021_v0 = vcombine.low %v13592_v28, %v4530_v9 }
 0x344   : > { %10961 = vmatprep.subr.bf16.mxu1 %v11795_v2 }
 0x346   : > { %v10697_v4 = vpop.f32.mrb[36].mxu1 }
 0x347   : > { %10962 = vmatpush3.bf16.msra.mxu1 %v11796_v38  ;;  %v10698_v33 = vpop.f32.mrb[37].mxu1 }
 0x348   : > { %10963 = vmatprep.subr.bf16.mxu1 %v11797_v7  ;;  %v13743_v47 = vadd.f32 %v10698_v33, %v10697_v4  ;;  %v10700_v48 = vpop.f32.mrb[38].mxu1 }
 0x349   : > { %v10701_v54 = vpop.f32.mrb[39].mxu1 }
 0x34a   : > { %4873 = vmatmul.mubr.bf16.gmra.mrb[136].mxu1 %v15195_v17  ;;  %v13749_v44 = vadd.f32 %v10701_v54, %v10700_v48 }
 0x34b   : > { %10964 = vmatpush3.bf16.msra.mxu1 %v11798_v22  ;;  %4880 = vmatprep.mubr.bf16.mxu1 %v10020_v16 }
 0x34c   : > { %10965 = vmatprep.subr.bf16.mxu1 %v11799_v58 }
 0x34f   : > { %10966 = vmatpush3.bf16.msra.mxu1 %v11800_v41 }
 0x350   : > { %10967 = vmatprep.subr.bf16.mxu1 %v11801_v27 }
 0x352   : > { %4881 = vmatmul.mubr.bf16.gmra.mrb[140].mxu1 %v10019_v26 }
 0x353   : > { %10968 = vmatpush3.bf16.msra.mxu1 %v11802_v14  ;;  %4921 = vmatprep.mubr.bf16.mxu1 %v15196_v61 }
 0x354   : > { %10969 = vmatprep.subr.bf16.mxu1 %v11803_v52 }
 0x357   : > { %10970 = vmatpush3.bf16.msra.mxu1 %v11804_v15 }
 0x35a   : > { %4922 = vmatmul.mubr.bf16.vlgmr.msra.gmra.mrb[144].mxu1 %v10009_v12 }
 0x35b   : > { %4929 = vmatprep.mubr.bf16.mxu1 %v15197_v18 }
 0x35d   : > { %v10703_v31 = vpop.f32.mrb[40].mxu1 }
 0x35e   : > { %v10704_v35 = vpop.f32.mrb[41].mxu1 }
 0x35f   : > { %v10705_v8 = vadd.f32 %v10704_v35, %v10703_v31  ;;  %v10706_v20 = vpop.f32.mrb[42].mxu1 }
 0x360   : > { %v10707_v59 = vpop.f32.mrb[43].mxu1 }
 0x361   : > { %v10708_v32 = vadd.f32 %v10707_v59, %v10706_v20 }
 0x362   : > { %4930 = vmatmul.mubr.bf16.gmra.mrb[148].mxu1 %v15198_v6 }
 0x363   : > { %4937 = vmatprep.mubr.bf16.mxu1 %v15199_v24 }
 0x365   : > { %v10709_v12 = vpop.f32.mrb[44].mxu1 }
 0x366   : > { %v10710_v51 = vpop.f32.mrb[45].mxu1 }
 0x367   : > { %v10711_v3 = vadd.f32 %v10710_v51, %v10709_v12  ;;  %v10712_v37 = vpop.f32.mrb[46].mxu1 }
 0x368   : > { %v10713_v50 = vpop.f32.mrb[47].mxu1 }
 0x369   : > { %v10714_v34 = vadd.f32 %v10713_v50, %v10712_v37 }
 0x36a   : > { %4938 = vmatmul.mubr.bf16.gmra.mrb[152].mxu1 %v15200_v56 }
 0x36b   : > { %4945 = vmatprep.mubr.bf16.mxu1 %v10022_v53 }
 0x36d   : > { %v10731_v19 = vpop.f32.mrb[48].mxu1 }
 0x36e   : > { %v10732_v2 = vpop.f32.mrb[49].mxu1 }
 0x36f   : > { %v10733_v23 = vadd.f32 %v10732_v2, %v10731_v19  ;;  %v10734_v63 = vpop.f32.mrb[50].mxu1 }
 0x370   : > { %v10735_v46 = vpop.f32.mrb[51].mxu1 }
 0x371   : > { %v3676_v60 = vadd.f32 %v10733_v23, %v13726_v25  ;;  %v10736_v38 = vadd.f32 %v10735_v46, %v10734_v63 }
 0x372   : > { %4946 = vmatmul.mubr.bf16.gmra.mrb[156].mxu1 %v10021_v0 }
 0x373   : > { %v3679_v7 = vadd.f32 %v10736_v38, %v13728_v49 }
 0x375   : > { %v10737_v30 = vpop.f32.mrb[52].mxu1 }
 0x376   : > { %v10738_v36 = vpop.f32.mrb[53].mxu1 }
 0x377   : > { %v10739_v4 = vadd.f32 %v10738_v36, %v10737_v30  ;;  %v10740_v22 = vpop.f32.mrb[54].mxu1 }
 0x378   : > { %v10741_v40 = vpop.f32.mrb[55].mxu1 }
 0x379   : > { %v3684_v39 = vadd.f32 %v10739_v4, %v13743_v47  ;;  %v10742_v33 = vadd.f32 %v10741_v40, %v10740_v22 }
 0x37b   : > { %v3687_v58 = vadd.f32 %v10742_v33, %v13749_v44 }
 0x37d   : > { %v10743_v48 = vpop.f32.mrb[56].mxu1 }
 0x37e   : > { %v10744_v10 = vpop.f32.mrb[57].mxu1 }
 0x37f   : > { %v10745_v16 = vadd.f32 %v10744_v10, %v10743_v48  ;;  %v10746_v28 = vpop.f32.mrb[58].mxu1  ;;  %v11805_v48 = vld [vmem:[#allocation7 + $0x140] sm:$0xff]  }
 0x380   : > { %v10747_v54 = vpop.f32.mrb[59].mxu1  ;;  %v11806_v10 = vld [vmem:[#allocation7 + $0x100] sm:$0xff]   ;;  %10995 = vmatprep.subr.bf16.mxu0 %v11805_v48 }
 0x381   : > { %v3692_v25 = vadd.f32 %v10745_v16, %v10705_v8  ;;  %v10748_v17 = vadd.f32 %v10747_v54, %v10746_v28  ;;  %10996 = vmatpush3.bf16.msra.mxu0 %v11806_v10  ;;  %v11828_v48 = vld [vmem:[#allocation7 + $0x1a0] sm:$0xff]  }
 0x383   : > { %v3695_v41 = vadd.f32 %v10748_v17, %v10708_v32 }
 0x385   : > { %v10749_v27 = vpop.f32.mrb[60].mxu1 }
 0x386   : > { %v10750_v49 = vpop.f32.mrb[61].mxu1 }
 0x387   : > { %v10751_v14 = vadd.f32 %v10750_v49, %v10749_v27  ;;  %v10752_v26 = vpop.f32.mrb[62].mxu1 }
 0x388   : > { %v10753_v52 = vpop.f32.mrb[63].mxu1 }
 0x389   : > { %v3700_v29 = vadd.f32 %v10751_v14, %v10711_v3  ;;  %v10754_v61 = vadd.f32 %v10753_v52, %v10752_v26  ;;  %v11807_v26 = vld [vmem:[#allocation7 + $0x148] sm:$0xff]  }
 0x38a   : > { %v11808_v52 = vld [vmem:[#allocation7 + $0x108] sm:$0xff]   ;;  %10997 = vmatprep.subr.bf16.mxu0 %v11807_v26 }
 0x38b   : > { %v3703_v15 = vadd.f32 %v10754_v61, %v10714_v34  ;;  %10998 = vmatpush3.bf16.msra.mxu0 %v11808_v52  ;;  %v11834_v52 = vld [vmem:[#allocation7 + $0x1b0] sm:$0xff]  }
 0x38d   : > { %v10771_v47 = vpop.f32.mrb[64].mxu1 }
 0x38e   : > { %v10772_v5 = vpop.f32.mrb[65].mxu1 }
 0x38f   : > { %v10773_v42 = vadd.f32 %v10772_v5, %v10771_v47  ;;  %v10774_v44 = vpop.f32.mrb[66].mxu1 }
 0x390   : > { %v10775_v43 = vpop.f32.mrb[67].mxu1 }
 0x391   : > { %v3965_v13 = vadd.f32 %v10773_v42, %v3676_v60  ;;  %v10776_v45 = vadd.f32 %v10775_v43, %v10774_v44  ;;  %v11809_v43 = vld [vmem:[#allocation7 + $0x150] sm:$0xff]  }
 0x392   : > { %10999 = vmatprep.subr.bf16.mxu0 %v11809_v43 }
 0x393   : > { %v3968_v11 = vadd.f32 %v10776_v45, %v3679_v7 }
 0x395   : > { %v10777_v57 = vpop.f32.mrb[68].mxu1 }
 0x396   : > { %v10778_v18 = vpop.f32.mrb[69].mxu1 }
 0x397   : > { %v10779_v31 = vadd.f32 %v10778_v18, %v10777_v57  ;;  %v10780_v35 = vpop.f32.mrb[70].mxu1 }
 0x398   : > { %v10781_v62 = vpop.f32.mrb[71].mxu1 }
 0x399   : > { %v3973_v55 = vadd.f32 %v10779_v31, %v3684_v39  ;;  %v10782_v8 = vadd.f32 %v10781_v62, %v10780_v35 }
 0x39b   : > { %v3976_v20 = vadd.f32 %v10782_v8, %v3687_v58  ;;  %v11812_v8 = vld [vmem:[#allocation7 + $0x118] sm:$0xff]  }
 0x39d   : > { %v10783_v59 = vpop.f32.mrb[72].mxu1 }
 0x39e   : > { %v10784_v32 = vpop.f32.mrb[73].mxu1 }
 0x39f   : > { %v10785_v6 = vadd.f32 %v10784_v32, %v10783_v59  ;;  %v10786_v1 = vpop.f32.mrb[74].mxu1  ;;  %v11814_v32 = vld [vmem:[#allocation7 + $0x1c0] sm:$0xff]  }
 0x3a0   : > { %v10787_v21 = vpop.f32.mrb[75].mxu1  ;;  %11017 = vmatprep.subr.bf16.mxu1 %v11814_v32 }
 0x3a1   : > { %v3981_v24 = vadd.f32 %v10785_v6, %v3692_v25  ;;  %v10788_v12 = vadd.f32 %v10787_v21, %v10786_v1  ;;  %v11816_v6 = vld [vmem:[#allocation7 + $0x180] sm:$0xff]  }
 0x3a2   : > { %11018 = vmatpush3.bf16.msra.mxu1 %v11816_v6 }
 0x3a3   : > { %v3984_v51 = vadd.f32 %v10788_v12, %v3695_v41 }
 0x3a5   : > { %v10789_v9 = vpop.f32.mrb[76].mxu1 }
 0x3a6   : > { %v10790_v3 = vpop.f32.mrb[77].mxu1 }
 0x3a7   : > { %v10791_v37 = vadd.f32 %v10790_v3, %v10789_v9  ;;  %v10792_v50 = vpop.f32.mrb[78].mxu1  ;;  %v11818_v3 = vld [vmem:[#allocation7 + $0x188] sm:$0xff]  }
 0x3a8   : > { %v10793_v34 = vpop.f32.mrb[79].mxu1 }
 0x3a9   : > { %v3989_v53 = vadd.f32 %v10791_v37, %v3700_v29  ;;  %v10794_v56 = vadd.f32 %v10793_v34, %v10792_v50  ;;  %v11819_v37 = vld [vmem:[#allocation7 + $0x168] sm:$0xff]   ;;  %v11820_v50 = vld [vmem:[#allocation7 + $0x1d0] sm:$0xff]  }
 0x3aa   : > { %v11821_v34 = vld [vmem:[#allocation7 + $0x128] sm:$0xff]  }
 0x3ab   : > { %v3992_v19 = vadd.f32 %v10794_v56, %v3703_v15  ;;  %v11822_v56 = vld [vmem:[#allocation7 + $0x190] sm:$0xff]  }
 0x3ad   : > { %v10811_v2 = vpop.f32.mrb[80].mxu1 }
 0x3ae   : > { %v10812_v23 = vpop.f32.mrb[81].mxu1 }
 0x3af   : > { %v10813_v63 = vadd.f32 %v10812_v23, %v10811_v2  ;;  %v10814_v46 = vpop.f32.mrb[82].mxu1  ;;  %v11823_v23 = vld [vmem:[#allocation7 + $0x1d8] sm:$0xff]  }
 0x3b0   : > { %v10815_v0 = vpop.f32.mrb[83].mxu1 }
 0x3b1   : > { %v13780_v60 = vadd.f32 %v10813_v63, %v3965_v13  ;;  %v10816_v38 = vadd.f32 %v10815_v0, %v10814_v46  ;;  %v11810_v13 = vld [vmem:[#allocation7 + $0x110] sm:$0xff]  }
 0x3b2   : > { %11000 = vmatpush3.bf16.msra.mxu0 %v11810_v13 }
 0x3b3   : > { %v13782_v7 = vadd.f32 %v10816_v38, %v3968_v11  ;;  %v11827_v38 = vld [vmem:[#allocation7 + $0x130] sm:$0xff]  }
 0x3b5   : > { %v10817_v30 = vpop.f32.mrb[84].mxu1 }
 0x3b6   : > { %v10818_v36 = vpop.f32.mrb[85].mxu1 }
 0x3b7   : > { %v10819_v4 = vadd.f32 %v10818_v36, %v10817_v30  ;;  %v10820_v22 = vpop.f32.mrb[86].mxu1  ;;  %v11824_v36 = vld [vmem:[#allocation7 + $0x198] sm:$0xff]  }
 0x3b8   : > { %v10821_v40 = vpop.f32.mrb[87].mxu1 }
 0x3b9   : > { %v13784_v39 = vadd.f32 %v10819_v4, %v3973_v55  ;;  %v10822_v33 = vadd.f32 %v10821_v40, %v10820_v22  ;;  %v11811_v55 = vld [vmem:[#allocation7 + $0x158] sm:$0xff]   ;;  %v11826_v22 = vld [vmem:[#allocation7 + $0x1e0] sm:$0xff]  }
 0x3ba   : > { %11001 = vmatprep.subr.bf16.mxu0 %v11811_v55  ;;  %v11831_v4 = vld [vmem:[#allocation7 + $0x178] sm:$0xff]  }
 0x3bb   : > { %v13786_v58 = vadd.f32 %v10822_v33, %v3976_v20  ;;  %v11813_v20 = vld [vmem:[#allocation7 + $0x160] sm:$0xff]   ;;  %11002 = vmatpush3.bf16.msra.mxu0 %v11812_v8  ;;  %v11833_v40 = vld [vmem:[#allocation7 + $0x138] sm:$0xff]  }
 0x3bc   : > { %11003 = vmatprep.subr.bf16.mxu0 %v11813_v20 }
 0x3bd   : > { %v10823_v16 = vpop.f32.mrb[88].mxu1 }
 0x3be   : > { %v10824_v28 = vpop.f32.mrb[89].mxu1 }
 0x3bf   : > { %v10825_v54 = vadd.f32 %v10824_v28, %v10823_v16  ;;  %v10826_v25 = vpop.f32.mrb[90].mxu1  ;;  %v11829_v16 = vld [vmem:[#allocation7 + $0x1e8] sm:$0xff]  }
 0x3c0   : > { %v10827_v17 = vpop.f32.mrb[91].mxu1 }
 0x3c1   : > { %v13788_v41 = vadd.f32 %v10825_v54, %v3981_v24  ;;  %v10828_v27 = vadd.f32 %v10827_v17, %v10826_v25  ;;  %v11817_v24 = vld [vmem:[#allocation7 + $0x1c8] sm:$0xff]  }
 0x3c2   : > { %11019 = vmatprep.subr.bf16.mxu1 %v11817_v24 }
 0x3c3   : > { %v13790_v49 = vadd.f32 %v10828_v27, %v3984_v51  ;;  %v11815_v51 = vld [vmem:[#allocation7 + $0x120] sm:$0xff]   ;;  %11020 = vmatpush3.bf16.msra.mxu1 %v11818_v3  ;;  %v11830_v27 = vld [vmem:[#allocation7 + $0x1a8] sm:$0xff]  }
 0x3c4   : > { %11004 = vmatpush3.bf16.msra.mxu0 %v11815_v51  ;;  %11021 = vmatprep.subr.bf16.mxu1 %v11820_v50 }
 0x3c5   : > { %v10829_v14 = vpop.f32.mrb[92].mxu1  ;;  %11005 = vmatprep.subr.bf16.mxu0 %v11819_v37 }
 0x3c6   : > { %v10830_v29 = vpop.f32.mrb[93].mxu1 }
 0x3c7   : > { %v10831_v61 = vadd.f32 %v10830_v29, %v10829_v14  ;;  %v10832_v15 = vpop.f32.mrb[94].mxu1  ;;  %11022 = vmatpush3.bf16.msra.mxu1 %v11822_v56  ;;  %v11832_v14 = vld [vmem:[#allocation7 + $0x1f0] sm:$0xff]  }
 0x3c8   : > { %v10833_v47 = vpop.f32.mrb[95].mxu1  ;;  %11006 = vmatpush3.bf16.msra.mxu0 %v11821_v34  ;;  %11023 = vmatprep.subr.bf16.mxu1 %v11823_v23 }
 0x3c9   : > { %v13792_v5 = vadd.f32 %v10831_v61, %v3989_v53  ;;  %v10834_v42 = vadd.f32 %v10833_v47, %v10832_v15  ;;  %v11835_v61 = vld [vmem:[#allocation7 + $0x1f8] sm:$0xff]  }
 0x3cb   : > { %v13794_v44 = vadd.f32 %v10834_v42, %v3992_v19  ;;  %v11825_v19 = vld [vmem:[#allocation7 + $0x170] sm:$0xff]   ;;  %11024 = vmatpush3.bf16.msra.mxu1 %v11824_v36 }
 0x3cc   : > { %11007 = vmatprep.subr.bf16.mxu0 %v11825_v19  ;;  %11025 = vmatprep.subr.bf16.mxu1 %v11826_v22 }
 0x3cd   : > { %v10851_v45 = vpop.f32.mrb[96].mxu1  ;;  %11008 = vmatpush3.bf16.msra.mxu0 %v11827_v38 }
 0x3ce   : > { %v10852_v11 = vpop.f32.mrb[97].mxu1  ;;  %11009 = vmatprep.subr.bf16.mxu0 %v11831_v4 }
 0x3cf   : > { %v13796_v57 = vadd.f32 %v10852_v11, %v10851_v45  ;;  %v10854_v18 = vpop.f32.mrb[98].mxu1  ;;  %11026 = vmatpush3.bf16.msra.mxu1 %v11828_v48  ;;  %v11836_v45 = vld [vmem:[#allocation7 + $0x1b8] sm:$0xff]   ;;  %v11837_v11 = vld [vmem:[#allocation7 + $0x40] sm:$0xff]  }
 0x3d0   : > { %v10855_v31 = vpop.f32.mrb[99].mxu1  ;;  %11027 = vmatprep.subr.bf16.mxu1 %v11829_v16 }
 0x3d1   : > { %v13798_v35 = vadd.f32 %v10855_v31, %v10854_v18  ;;  %11010 = vmatpush3.bf16.msra.mxu0 %v11833_v40  ;;  %v11838_v18 = vld [vmem:[#allocation7 + $0xc0] sm:$0xff]  }
 0x3d2   : > { %11039 = vmatprep.subr.bf16.mxu0 %v11837_v11 }
 0x3d3   : > { %11028 = vmatpush3.bf16.msra.mxu1 %v11830_v27 }
 0x3d4   : > { %11029 = vmatprep.subr.bf16.mxu1 %v11832_v14 }
 0x3d5   : > { %v10857_v62 = vpop.f32.mrb[100].mxu1 }
 0x3d6   : > { %v10858_v59 = vpop.f32.mrb[101].mxu1 }
 0x3d7   : > { %v13800_v1 = vadd.f32 %v10858_v59, %v10857_v62  ;;  %v10860_v21 = vpop.f32.mrb[102].mxu1  ;;  %11030 = vmatpush3.bf16.msra.mxu1 %v11834_v52 }
 0x3d8   : > { %v10861_v12 = vpop.f32.mrb[103].mxu1  ;;  %11031 = vmatprep.subr.bf16.mxu1 %v11835_v61 }
 0x3d9   : > { %v13802_v9 = vadd.f32 %v10861_v12, %v10860_v21 }
 0x3db   : > { %11032 = vmatpush3.bf16.msra.mxu1 %v11836_v45 }
 0x3dc   : > { %11061 = vmatprep.subr.bf16.mxu1 %v11838_v18 }
 0x3dd   : > { %v10863_v53 = vpop.f32.mrb[104].mxu1 }
 0x3de   : > { %v10864_v2 = vpop.f32.mrb[105].mxu1 }
 0x3df   : > { %v13804_v63 = vadd.f32 %v10864_v2, %v10863_v53  ;;  %v10866_v46 = vpop.f32.mrb[106].mxu1 }
 0x3e0   : > { %v10867_v0 = vpop.f32.mrb[107].mxu1 }
 0x3e1   : > { %v13806_v30 = vadd.f32 %v10867_v0, %v10866_v46 }
 0x3e5   : > { %v10869_v33 = vpop.f32.mrb[108].mxu1 }
 0x3e6   : > { %v10870_v10 = vpop.f32.mrb[109].mxu1 }
 0x3e7   : > { %v10871_v28 = vadd.f32 %v10870_v10, %v10869_v33  ;;  %v10872_v54 = vpop.f32.mrb[110].mxu1 }
 0x3e8   : > { %v10873_v25 = vpop.f32.mrb[111].mxu1 }
 0x3e9   : > { %v10874_v17 = vadd.f32 %v10873_v25, %v10872_v54 }
 0x3ed   : > { %v10891_v26 = vpop.f32.mrb[112].mxu1 }
 0x3ee   : > { %v10892_v29 = vpop.f32.mrb[113].mxu1 }
 0x3ef   : > { %v10893_v15 = vadd.f32 %v10892_v29, %v10891_v26  ;;  %v10894_v47 = vpop.f32.mrb[114].mxu1 }
 0x3f0   : > { %v10895_v42 = vpop.f32.mrb[115].mxu1 }
 0x3f1   : > { %v4457_v43 = vadd.f32 %v10893_v15, %v13796_v57  ;;  %v10896_v13 = vadd.f32 %v10895_v42, %v10894_v47 }
 0x3f3   : > { %v13810_v31 = vadd.f32 %v4457_v43, %v13780_v60  ;;  %v4460_v62 = vadd.f32 %v10896_v13, %v13798_v35 }
 0x3f5   : > { %v13814_v55 = vadd.f32 %v4460_v62, %v13782_v7  ;;  %v10897_v8 = vpop.f32.mrb[116].mxu1  ;;  %v13845_v62 = vld [vmem:[%s15124_s5] ss:$0 sm:$0xff] }
 0x3f6   : > { %v10898_v20 = vpop.f32.mrb[117].mxu1 }
 0x3f7   : > { %v10899_v57 = vadd.f32 %v10898_v20, %v10897_v8  ;;  %v10900_v59 = vpop.f32.mrb[118].mxu1 }
 0x3f8   : > { %v10901_v32 = vpop.f32.mrb[119].mxu1 }
 0x3f9   : > { %v4465_v6 = vadd.f32 %v10899_v57, %v13800_v1  ;;  %v10902_v21 = vadd.f32 %v10901_v32, %v10900_v59 }
 0x3fb   : > { %v13818_v24 = vadd.f32 %v4465_v6, %v13784_v39  ;;  %v4468_v60 = vadd.f32 %v10902_v21, %v13802_v9 }
 0x3fd   : > { %v13822_v35 = vadd.f32 %v4468_v60, %v13786_v58  ;;  %v10903_v7 = vpop.f32.mrb[120].mxu1 }
 0x3fe   : > { %v10904_v12 = vpop.f32.mrb[121].mxu1 }
 0x3ff   : > { %v10905_v51 = vadd.f32 %v10904_v12, %v10903_v7  ;;  %v10906_v3 = vpop.f32.mrb[122].mxu1 }
 0x400   : > { %v10907_v37 = vpop.f32.mrb[123].mxu1 }
 0x401   : > { %v4473_v50 = vadd.f32 %v10905_v51, %v13804_v63  ;;  %v10908_v34 = vadd.f32 %v10907_v37, %v10906_v3 }
 0x403   : > { %v13826_v53 = vadd.f32 %v4473_v50, %v13788_v41  ;;  %v4476_v1 = vadd.f32 %v10908_v34, %v13806_v30 }
 0x405   : > { %v13830_v39 = vadd.f32 %v4476_v1, %v13790_v49  ;;  %v10909_v9 = vpop.f32.mrb[124].mxu1 }
 0x406   : > { %v10910_v56 = vpop.f32.mrb[125].mxu1 }
 0x407   : > { %v10911_v58 = vadd.f32 %v10910_v56, %v10909_v9  ;;  %v10912_v19 = vpop.f32.mrb[126].mxu1 }
 0x408   : > { %v10913_v2 = vpop.f32.mrb[127].mxu1 }
 0x409   : > { %v4481_v23 = vadd.f32 %v10911_v58, %v10871_v28  ;;  %v10914_v46 = vadd.f32 %v10913_v2, %v10912_v19 }
 0x40b   : > { %v13833_v0 = vadd.f32 %v4481_v23, %v13792_v5  ;;  %v4484_v63 = vadd.f32 %v10914_v46, %v10874_v17 }
 0x40d   : > { %v13836_v38 = vadd.f32 %v4484_v63, %v13794_v44  ;;  %v10931_v41 = vpop.f32.mrb[128].mxu1 }
 0x40e   : > { %v10932_v36 = vpop.f32.mrb[129].mxu1 }
 0x40f   : > { %v10933_v30 = vadd.f32 %v10932_v36, %v10931_v41  ;;  %v10934_v4 = vpop.f32.mrb[130].mxu1  ;;  %v10056_v36 = vld.sshfl [vmem:[#allocation3] sm:$0xff pattern:$0x75316420] }
 0x410   : > { %v10935_v49 = vpop.f32.mrb[131].mxu1 }
 0x411   : > { %v10936_v22 = vadd.f32 %v10935_v49, %v10934_v4  ;;  %v5291_v49 = vlaneseq }
 0x415   : > { %v10937_v40 = vpop.f32.mrb[132].mxu1 }
 0x416   : > { %v10938_v33 = vpop.f32.mrb[133].mxu1 }
 0x417   : > { %v10939_v48 = vadd.f32 %v10938_v33, %v10937_v40  ;;  %v10940_v10 = vpop.f32.mrb[134].mxu1  ;;  %v10057_v33 = vld.sshfl [vmem:[#allocation3 + $0x8] sm:$0x11 pattern:$0x75316420] }
 0x418   : > { %v10941_v16 = vpop.f32.mrb[135].mxu1 }
 0x419   : > { %v10942_v28 = vadd.f32 %v10941_v16, %v10940_v10 }
 0x41d   : > { %v10943_v54 = vpop.f32.mrb[136].mxu1 }
 0x41e   : > { %v10944_v25 = vpop.f32.mrb[137].mxu1 }
 0x41f   : > { %v10945_v5 = vadd.f32 %v10944_v25, %v10943_v54  ;;  %v10946_v27 = vpop.f32.mrb[138].mxu1 }
 0x420   : > { %v10947_v17 = vpop.f32.mrb[139].mxu1 }
 0x421   : > { %v10948_v14 = vadd.f32 %v10947_v17, %v10946_v27  ;;  %v13856_v17 = vshrl.u32 %v5291_v49, 7 }
 0x425   : > { %v10949_v44 = vpop.f32.mrb[140].mxu1 }
 0x426   : > { %v10950_v26 = vpop.f32.mrb[141].mxu1 }
 0x427   : > { %v13838_v52 = vadd.f32 %v10950_v26, %v10949_v44  ;;  %v10952_v29 = vpop.f32.mrb[142].mxu1 }
 0x428   : > { %v10953_v61 = vpop.f32.mrb[143].mxu1 }
 0x429   : > { %v13840_v15 = vadd.f32 %v10953_v61, %v10952_v29  ;;  %v5200_v61 = vcombine.low %v10056_v36, %v10057_v33 }
 0x42d   : > { %v10971_v47 = vpop.f32.mrb[144].mxu1 }
 0x42e   : > { %v10972_v42 = vpop.f32.mrb[145].mxu1 }
 0x42f   : > { %v10973_v43 = vadd.f32 %v10972_v42, %v10971_v47  ;;  %v10974_v13 = vpop.f32.mrb[146].mxu1  ;;  %v5201_v47 = vcombine.high %v10056_v36, %v10057_v33 }
 0x430   : > { %v10975_v45 = vpop.f32.mrb[147].mxu1 }
 0x431   : > { %v4924_v11 = vadd.f32 %v10973_v43, %v10933_v30  ;;  %v10976_v18 = vadd.f32 %v10975_v45, %v10974_v13  ;;  %v12521_v30 = vmov 1983009808  }
 0x432   : > { %v5289_v4 = vunpack.c.l.s4 %v12521_v30 }
 0x433   : > { %v4954_v8 = vadd.f32 %v4924_v11, %v13810_v31  ;;  %v4927_v20 = vadd.f32 %v10976_v18, %v10936_v22 }
 0x434   : > { %v5290_v27 = vunpack.c.0.s8 %v5289_v4 }
 0x435   : > { %v4969_v57 = vadd.f32 %v13845_v62, %v4954_v8  ;;  %v4955_v59 = vadd.f32 %v4927_v20, %v13814_v55  ;;  %v10977_v32 = vpop.f32.mrb[148].mxu1 }
 0x436   : > { %v10978_v6 = vpop.f32.mrb[149].mxu1 }
 0x437   : > { %vm4977_vm1 = vcmp.ge.f32.partialorder %v4969_v57, 0.0  ;;  %v4985_v21 = vmul.f32 0.2, %v4969_v57  ;;  %v4970_v60 = vadd.f32 %v13845_v62, %v4955_v59  ;;  %v10979_v7 = vadd.f32 %v10978_v6, %v10977_v32  ;;  %v10980_v12 = vpop.f32.mrb[150].mxu1 }
 0x438   : > { %v10981_v51 = vpop.f32.mrb[151].mxu1 }
 0x439   : > { %v4993_v3 = vsel %vm4977_vm1, %v4969_v57, %v4985_v21  ;;  %vm4978_vm8 = vcmp.ge.f32.partialorder %v4970_v60, 0.0  ;;  %v4986_v37 = vmul.f32 0.2, %v4970_v60  ;;  %v4932_v50 = vadd.f32 %v10979_v7, %v10939_v48 }
 0x43a   : > { %5022 = vst [vmem:[#allocation3 + $0x11] sm:$0xff] %v4993_v3  ;;  %v10982_v31 = vadd.f32 %v10981_v51, %v10980_v12  ;;  %v13862_v57 = vsub.s32 %v5290_v27, %v13856_v17  ;;  %v10076_v7 = vpack.c.bf16 %v5201_v47, %v5200_v61 }
 0x43b   : > { %v4994_v34 = vsel %vm4978_vm8, %v4970_v60, %v4986_v37  ;;  %v4956_v1 = vadd.f32 %v4932_v50, %v13818_v24  ;;  %vm9141_vm8 = vcmask 523264  }
 0x43c   : > { %5023 = vst [vmem:[#allocation3 + $0x21] sm:$0xff] %v4994_v34  ;;  %v4935_v55 = vadd.f32 %v10982_v31, %v10942_v28 }
 0x43d   : > { %v4971_v9 = vadd.f32 %v13845_v62, %v4956_v1  ;;  %v10983_v56 = vpop.f32.mrb[152].mxu1 }
 0x43e   : > { %v4957_v58 = vadd.f32 %v4935_v55, %v13822_v35  ;;  %v10984_v19 = vpop.f32.mrb[153].mxu1 }
 0x43f   : > { %vm4979_vm9 = vcmp.ge.f32.partialorder %v4971_v9, 0.0  ;;  %v4987_v2 = vmul.f32 0.2, %v4971_v9  ;;  %v10985_v23 = vadd.f32 %v10984_v19, %v10983_v56  ;;  %v10986_v46 = vpop.f32.mrb[154].mxu1 }
 0x440   : > { %v4972_v63 = vadd.f32 %v13845_v62, %v4957_v58  ;;  %v10987_v41 = vpop.f32.mrb[155].mxu1  ;;  %v13870_v58 = vrot.slane %v10076_v7, %v13862_v57 }
 0x441   : > { %v4995_v24 = vsel %vm4979_vm9, %v4971_v9, %v4987_v2  ;;  %v4940_v22 = vadd.f32 %v10985_v23, %v10945_v5  ;;  %v10988_v40 = vadd.f32 %v10987_v41, %v10986_v46  ;;  %v10058_v35 = vld.sshfl [vmem:[#allocation3 + $0x10] sm:$0xff pattern:$0x75316420] }
 0x442   : > { %5024 = vst [vmem:[#allocation3 + $0x31] sm:$0xff] %v4995_v24  ;;  %vm4980_vm10 = vcmp.ge.f32.partialorder %v4972_v63, 0.0  ;;  %v4988_v48 = vmul.f32 0.2, %v4972_v63 }
 0x443   : > { %v4958_v10 = vadd.f32 %v4940_v22, %v13826_v53  ;;  %v4943_v16 = vadd.f32 %v10988_v40, %v10948_v14  ;;  %v10059_v28 = vld.sshfl [vmem:[#allocation3 + $0x18] sm:$0x11 pattern:$0x75316420] }
 0x444   : > { %v4996_v54 = vsel %vm4980_vm10, %v4972_v63, %v4988_v48  ;;  %v10060_v25 = vld.sshfl [vmem:[#allocation3 + $0x20] sm:$0xff pattern:$0x75316420]  ;;  %v5230_v53 = vcombine.low %v10058_v35, %v10059_v28  ;;  %v5231_v14 = vcombine.high %v10058_v35, %v10059_v28  ;;  %v10074_v28 = vld.sshfl [vmem:[#allocation3 + $0x90] sm:$0xff pattern:$0x75316420] }
 0x445   : > { %5025 = vst [vmem:[#allocation3 + $0x41] sm:$0xff] %v4996_v54  ;;  %v4973_v44 = vadd.f32 %v13845_v62, %v4958_v10  ;;  %v4959_v5 = vadd.f32 %v4943_v16, %v13830_v39  ;;  %v10989_v26 = vpop.f32.mrb[156].mxu1  ;;  %v10061_v29 = vld.sshfl [vmem:[#allocation3 + $0x28] sm:$0x11 pattern:$0x75316420] }
 0x446   : > { %v10990_v42 = vpop.f32.mrb[157].mxu1  ;;  %v5202_v43 = vcombine.low %v10060_v25, %v10061_v29  ;;  %v5203_v13 = vcombine.high %v10060_v25, %v10061_v29  ;;  %v10077_v12 = vpack.c.bf16 %v5231_v14, %v5230_v53 }
 0x447   : > { %vm4981_vm11 = vcmp.ge.f32.partialorder %v4973_v44, 0.0  ;;  %v4989_v45 = vmul.f32 0.2, %v4973_v44  ;;  %v4974_v11 = vadd.f32 %v13845_v62, %v4959_v5  ;;  %v10991_v18 = vadd.f32 %v10990_v42, %v10989_v26  ;;  %v10992_v8 = vpop.f32.mrb[158].mxu1 }
 0x448   : > { %v10993_v20 = vpop.f32.mrb[159].mxu1  ;;  %v10078_v51 = vpack.c.bf16 %v5203_v13, %v5202_v43  ;;  %v13873_v19 = vrot.slane %v10077_v12, %v13862_v57 }
 0x449   : > { %v4997_v39 = vsel %vm4981_vm11, %v4973_v44, %v4989_v45  ;;  %vm4982_vm12 = vcmp.ge.f32.partialorder %v4974_v11, 0.0  ;;  %v4990_v59 = vmul.f32 0.2, %v4974_v11  ;;  %v4948_v32 = vadd.f32 %v10991_v18, %v13838_v52  ;;  %v10062_v6 = vld.sshfl [vmem:[#allocation3 + $0x30] sm:$0xff pattern:$0x75316420] }
 0x44a   : > { %5026 = vst [vmem:[#allocation3 + $0x51] sm:$0xff] %v4997_v39  ;;  %v10994_v21 = vadd.f32 %v10993_v20, %v10992_v8  ;;  %v10063_v60 = vld.sshfl [vmem:[#allocation3 + $0x38] sm:$0x11 pattern:$0x75316420]  ;;  %v13876_v2 = vrot.slane %v10078_v51, %v13862_v57  ;;  %v5302_v49 = vcombine.low %v13870_v58, %v13873_v19  ;;  %v5418_v7 = vcombine.high %v13870_v58, %v13873_v19 }
 0x44b   : > { %v4998_v3 = vsel %vm4982_vm12, %v4974_v11, %v4990_v59  ;;  %v4960_v37 = vadd.f32 %v4948_v32, %v13833_v0  ;;  %v5232_v50 = vcombine.low %v10062_v6, %v10063_v60  ;;  %v5233_v31 = vcombine.high %v10062_v6, %v10063_v60  ;;  %v10075_v44 = vld.sshfl [vmem:[#allocation3 + $0x98] sm:$0x11 pattern:$0x75316420] }
 0x44c   : > { %5027 = vst [vmem:[#allocation3 + $0x61] sm:$0xff] %v4998_v3  ;;  %v4951_v34 = vadd.f32 %v10994_v21, %v13840_v15  ;;  %v10064_v1 = vld.sshfl [vmem:[#allocation3 + $0x40] sm:$0xff pattern:$0x75316420]  ;;  %v5430_v27 = vshrl.u32 %v5302_v49, 16  ;;  %v5433_v29 = vshll.u32 %v5302_v49, 16  ;;  %v5238_v14 = vcombine.low %v10074_v28, %v10075_v44 }
 0x44d   : > { %v4975_v55 = vadd.f32 %v13845_v62, %v4960_v37  ;;  %v10065_v9 = vld.sshfl [vmem:[#allocation3 + $0x48] sm:$0x11 pattern:$0x75316420]  ;;  %v10079_v52 = vpack.c.bf16 %v5233_v31, %v5232_v50  ;;  %v5239_v45 = vcombine.high %v10074_v28, %v10075_v44 }
 0x44e   : > { %v4961_v56 = vadd.f32 %v4951_v34, %v13836_v38  ;;  %v5204_v46 = vcombine.low %v10064_v1, %v10065_v9  ;;  %v5205_v63 = vcombine.high %v10064_v1, %v10065_v9  ;;  %v5432_v20 = vrot.slane %v5430_v27, 6 }
 0x44f   : > { %vm4983_vm13 = vcmp.ge.f32.partialorder %v4975_v55, 0.0  ;;  %v4991_v0 = vmul.f32 0.2, %v4975_v55  ;;  %v13879_v15 = vrot.slane %v10079_v52, %v13862_v57  ;;  %v5435_v59 = vrot.slane %v5433_v29, 7 }
 0x450   : > { %v4976_v23 = vadd.f32 %v13845_v62, %v4961_v56  ;;  %v10080_v48 = vpack.c.bf16 %v5205_v63, %v5204_v46  ;;  %v5439_v63 = vshll.u32 %v5418_v7, 16  ;;  %v10116_v7 = vcombine.low %v13870_v58, %v13876_v2 }
 0x451   : > { %v4999_v41 = vsel %vm4983_vm13, %v4975_v55, %v4991_v0  ;;  %v10066_v38 = vld.sshfl [vmem:[#allocation3 + $0x50] sm:$0xff pattern:$0x75316420]  ;;  %v5319_v36 = vcombine.low %v13876_v2, %v13879_v15  ;;  %v5419_v39 = vcombine.high %v13876_v2, %v13879_v15  ;;  %v10153_v55 = vpack.c.bf16 %v5239_v45, %v5238_v14 }
 0x452   : > { %5028 = vst [vmem:[#allocation3 + $0x71] sm:$0xff] %v4999_v41  ;;  %vm4984_vm14 = vcmp.ge.f32.partialorder %v4976_v23, 0.0  ;;  %v4992_v30 = vmul.f32 0.2, %v4976_v23  ;;  %v13887_v5 = vrot.slane %v10080_v48, %v13862_v57  ;;  %v5436_v9 = vor.u32 %v5435_v59, %v5432_v20 }
 0x453   : > { %v10067_v4 = vld.sshfl [vmem:[#allocation3 + $0x58] sm:$0x11 pattern:$0x75316420]  ;;  %v5444_v35 = vshrl.u32 %v5319_v36, 16  ;;  %v5447_v10 = vshll.u32 %v5319_v36, 16 }
 0x454   : > { %v5000_v24 = vsel %vm4984_vm14, %v4976_v23, %v4992_v30  ;;  %v10068_v22 = vld.sshfl [vmem:[#allocation3 + $0x60] sm:$0xff pattern:$0x75316420]  ;;  %v5234_v40 = vcombine.low %v10066_v38, %v10067_v4  ;;  %v5235_v33 = vcombine.high %v10066_v38, %v10067_v4  ;;  %v5453_v52 = vshll.u32 %v5419_v39, 16  ;;  %v11843_v4 = vld [vmem:[#allocation7 + $0x8] sm:$0xff]  }
 0x455   : > { %5029 = vst [vmem:[#allocation3 + $0x81] sm:$0xff] %v5000_v24  ;;  %v10069_v62 = vld.sshfl [vmem:[#allocation3 + $0x68] sm:$0x11 pattern:$0x75316420]  ;;  %v5446_v47 = vrot.slane %v5444_v35, 6 }
 0x456   : > { %v10081_v16 = vpack.c.bf16 %v5235_v33, %v5234_v40  ;;  %v5206_v54 = vcombine.low %v10068_v22, %v10069_v62  ;;  %v5207_v25 = vcombine.high %v10068_v22, %v10069_v62  ;;  %v5449_v42 = vrot.slane %v5447_v10, 7 }
 0x457   : > { %v13917_v22 = vrot.slane %v10153_v55, %v13862_v57  ;;  %v5437_v40 = vrot.slane %v5436_v9, 2  ;;  %v5455_v33 = vrot.slane %v5453_v52, 7  ;;  %v5441_v28 = vrot.slane %v5439_v63, 7 }
 0x458   : > { %v13890_v26 = vrot.slane %v10081_v16, %v13862_v57  ;;  %v10082_v8 = vpack.c.bf16 %v5207_v25, %v5206_v54  ;;  %v5450_v12 = vor.u32 %v5449_v42, %v5446_v47  ;;  %vm9535_vm13 = vcmask 516096  }
 0x459   : > { %v10070_v61 = vld.sshfl [vmem:[#allocation3 + $0x70] sm:$0xff pattern:$0x75316420] }
 0x45a   : > { %v10071_v43 = vld.sshfl [vmem:[#allocation3 + $0x78] sm:$0x11 pattern:$0x75316420]  ;;  %v5336_v13 = vcombine.low %v13887_v5, %v13890_v26  ;;  %v5420_v53 = vcombine.high %v13887_v5, %v13890_v26  ;;  %v13903_v34 = vrot.slane %v10082_v8, %v13862_v57  ;;  %v5451_v41 = vrot.slane %v5450_v12, 2 }
 0x45b   : > { %v5236_v11 = vcombine.low %v10070_v61, %v10071_v43  ;;  %v5237_v18 = vcombine.high %v10070_v61, %v10071_v43  ;;  %v5442_v61 = vsel %vm13912_vm6, %v5437_v40, %v5441_v28  ;;  %v10117_v12 = vcombine.low %v13873_v19, %v13879_v15  ;;  %v11840_v19 = vld [vmem:[#allocation7 + $0x80] sm:$0xff]   ;;  %v11845_v28 = vld [vmem:[#allocation7 + $0x50] sm:$0xff]  }
 0x45c   : > { %v5458_v32 = vshrl.u32 %v5336_v13, 16  ;;  %v5461_v6 = vshll.u32 %v5336_v13, 16  ;;  %v10072_v21 = vld.sshfl [vmem:[#allocation3 + $0x80] sm:$0xff pattern:$0x75316420]  ;;  %v5467_v50 = vshll.u32 %v5420_v53, 16  ;;  %v5456_v54 = vsel %vm13912_vm6, %v5451_v41, %v5455_v33 }
 0x45d   : > { %v10083_v60 = vpack.c.bf16 %v5237_v18, %v5236_v11  ;;  %v10073_v51 = vld.sshfl [vmem:[#allocation3 + $0x88] sm:$0x11 pattern:$0x75316420]  ;;  %v5550_v14 = vcombine.low %v5442_v61, %v5456_v54  ;;  %v5551_v45 = vcombine.high %v5442_v61, %v5456_v54  ;;  %v10118_v20 = vcombine.low %v13887_v5, %v13903_v34  ;;  %v11847_v61 = vld [vmem:[#allocation7 + $0x10] sm:$0xff]  }
 0x45e   : > { %v5460_v3 = vrot.slane %v5458_v32, 6  ;;  %v5463_v37 = vrot.slane %v5461_v6, 7  ;;  %v5208_v31 = vcombine.low %v10072_v21, %v10073_v51  ;;  %v5209_v0 = vcombine.high %v10072_v21, %v10073_v51 }
 0x45f   : > { %v13906_v1 = vrot.slane %v10083_v60, %v13862_v57  ;;  %v5469_v36 = vrot.slane %v5467_v50, 7  ;;  %v5560_v60 = vrot.slane %v5550_v14, %v13862_v57  ;;  %v13962_v63 = vrot.slane %v10117_v12, %v13862_v57  ;;  %v11853_v14 = vld [vmem:[#allocation7 + $0x60] sm:$0xff]   ;;  %v11866_v12 = vld [vmem:[#allocation7 + $0xf8] sm:$0xff]  }
 0x460   : > { %v5464_v56 = vor.u32 %v5463_v37, %v5460_v3  ;;  %v10152_v30 = vpack.c.bf16 %v5209_v0, %v5208_v31  ;;  %v5567_v3 = vrot.slane %v5551_v45, %v13862_v57  ;;  %v13953_v31 = vrot.slane %v10118_v20, %v13862_v57  ;;  %v11854_v45 = vld [vmem:[#allocation7 + $0xe0] sm:$0xff]   ;;  %v11858_v20 = vld [vmem:[#allocation7 + $0xe8] sm:$0xff]  }
 0x461   : > { %v5353_v23 = vcombine.low %v13903_v34, %v13906_v1  ;;  %v5421_v46 = vcombine.high %v13903_v34, %v13906_v1  ;;  %v10119_v39 = vcombine.low %v13890_v26, %v13906_v1 }
 0x462   : > { %v5465_v38 = vrot.slane %v5464_v56, 2  ;;  %v13924_v62 = vrot.slane %v10152_v30, %v13862_v57 }
 0x463   : > { %v5472_v49 = vshrl.u32 %v5353_v23, 16  ;;  %v5475_v24 = vshll.u32 %v5353_v23, 16  ;;  %v5481_v16 = vshll.u32 %v5421_v46, 16  ;;  %v13956_v55 = vrot.slane %v10119_v39, %v13862_v57  ;;  %v11839_v23 = vld [vmem:[#allocation7] sm:$0xff]   ;;  %v11859_v39 = vld [vmem:[#allocation7 + $0x28] sm:$0xff]  }
 0x464   : > { %v13921_v48 = vsel %vm13912_vm6, %v5465_v38, %v5469_v36  ;;  %v6198_v25 = vcombine.low %v13924_v62, %v13917_v22  ;;  %v6580_v44 = vcombine.high %v13924_v62, %v13917_v22  ;;  %v13959_v46 = vrot.slane %v10116_v7, %v13862_v57  ;;  %v11841_v38 = vld [vmem:[#allocation7 + $0x48] sm:$0xff]   ;;  %v11865_v7 = vld [vmem:[#allocation7 + $0x78] sm:$0xff]  }
 0x465   : > { %v5474_v35 = vrot.slane %v5472_v49, 6  ;;  %v5477_v10 = vrot.slane %v5475_v24, 7  ;;  %v6660_v29 = vcombine.low %v5456_v54, %v13921_v48  ;;  %v6661_v43 = vcombine.high %v5456_v54, %v13921_v48  ;;  %v11842_v36 = vld [vmem:[#allocation7 + $0xc8] sm:$0xff]   ;;  %v11846_v54 = vld [vmem:[#allocation7 + $0xd0] sm:$0xff]  }
 0x466   : > { %v6582_v47 = vshrl.u32 %v6198_v25, 16  ;;  %v6585_v42 = vshll.u32 %v6198_v25, 16  ;;  %v5483_v53 = vrot.slane %v5481_v16, 7  ;;  %v6591_v59 = vshll.u32 %v6580_v44, 16 }
 0x467   : > { %v5478_v27 = vor.u32 %v5477_v10, %v5474_v35  ;;  %v5897_v24 = vcombine.high %v13959_v46, %v13953_v31  ;;  %v5899_v40 = vcombine.high %v13962_v63, %v13956_v55  ;;  %v13971_v33 = vrot.slane %v6660_v29, %v13862_v57 }
 0x468   : > { %v6584_v11 = vrot.slane %v6582_v47, 6  ;;  %v6587_v18 = vrot.slane %v6585_v42, 7  ;;  %v6593_v9 = vrot.slane %v6591_v59, 7  ;;  %v13977_v10 = vrot.slane %v6661_v43, %v13862_v57  ;;  %v11848_v47 = vld [vmem:[#allocation7 + $0x90] sm:$0xff]   ;;  %v11849_v42 = vld [vmem:[#allocation7 + $0x58] sm:$0xff]   ;;  %v11860_v59 = vld [vmem:[#allocation7 + $0xa8] sm:$0xff]  }
 0x469   : > { %v5479_v13 = vrot.slane %v5478_v27, 2  ;;  %v11850_v43 = vld [vmem:[#allocation7 + $0xd8] sm:$0xff]  }
 0x46a   : > { %v6588_v21 = vor.u32 %v6587_v18, %v6584_v11  ;;  %v11855_v11 = vld [vmem:[#allocation7 + $0x20] sm:$0xff]  }
 0x46b   : > { %v5484_v8 = vsel %vm13912_vm6, %v5479_v13, %v5483_v53  ;;  %v11851_v13 = vld [vmem:[#allocation7 + $0x18] sm:$0xff]   ;;  %v11856_v18 = vld [vmem:[#allocation7 + $0xa0] sm:$0xff]  }
 0x46c   : > { %v5552_v32 = vcombine.low %v13921_v48, %v5484_v8  ;;  %v5553_v6 = vcombine.high %v13921_v48, %v5484_v8  ;;  %v6589_v50 = vrot.slane %v6588_v21, 2  ;;  %v11844_v48 = vld [vmem:[#allocation7 + $0x88] sm:$0xff]   ;;  %v11852_v53 = vld [vmem:[#allocation7 + $0x98] sm:$0xff]   ;;  %v11863_v21 = vld [vmem:[#allocation7 + $0x30] sm:$0xff]  }
 0x46e   : > { %v5574_v51 = vrot.slane %v5552_v32, %v13862_v57  ;;  %v5581_v37 = vrot.slane %v5553_v6, %v13862_v57  ;;  %v6594_v41 = vsel %vm13912_vm6, %v6589_v50, %v6593_v9  ;;  %v11861_v32 = vld [vmem:[#allocation7 + $0x70] sm:$0xff]   ;;  %v11868_v50 = vld [vmem:[#allocation7 + $0xb8] sm:$0xff]   ;;  %v10154_v9 = vcombine.low %v13876_v2, %v13887_v5 }
 0x46f   : > { %v6662_v30 = vcombine.low %v5484_v8, %v6594_v41  ;;  %v6663_v49 = vcombine.high %v5484_v8, %v6594_v41  ;;  %v11857_v8 = vld [vmem:[#allocation7 + $0x68] sm:$0xff]   ;;  %v11862_v6 = vld [vmem:[#allocation7 + $0xf0] sm:$0xff]   ;;  %v5896_v2 = vcombine.low %v13959_v46, %v13953_v31  ;;  %v5898_v5 = vcombine.low %v13962_v63, %v13956_v55 }
 0x470   : > { %v5582_v52 = vcombine.low %v5560_v60, %v5574_v51  ;;  %v5583_v56 = vcombine.high %v5560_v60, %v5574_v51  ;;  %v5584_v58 = vcombine.low %v5567_v3, %v5581_v37  ;;  %v5585_v0 = vcombine.high %v5567_v3, %v5581_v37  ;;  %v11864_v60 = vld [vmem:[#allocation7 + $0xb0] sm:$0xff]   ;;  %v11867_v37 = vld [vmem:[#allocation7 + $0x38] sm:$0xff]   ;;  %v11875_v31 = vld [vmem:[#allocation7 + $0x208] sm:$0xff]  }
 0x471   : > { %v13974_v35 = vrot.slane %v6662_v30, %v13862_v57  ;;  %v13980_v16 = vrot.slane %v6663_v49, %v13862_v57  ;;  %v10156_v51 = vcombine.low %v13903_v34, %v13924_v62  ;;  %v10157_v3 = vcombine.low %v13906_v1, %v13917_v22  ;;  %v11871_v1 = vld [vmem:[#allocation7 + $0x200] sm:$0xff]   ;;  %v11876_v55 = vld [vmem:[#allocation7 + $0x288] sm:$0xff]   ;;  %v11877_v46 = vld [vmem:[#allocation7 + $0x250] sm:$0xff]  }
 0x472   : > { %5814 = vmatprep.mubr.bf16.mxu0 %v5583_v56  ;;  %5855 = vmatprep.mubr.bf16.mxu1 %v5585_v0  ;;  %v11870_v56 = vld [vmem:[#allocation7 + $0x2c0] sm:$0xff]   ;;  %v14005_v22 = vrot.slane %v10154_v9, %v13862_v57  ;;  %v11879_v63 = vld [vmem:[#allocation7 + $0x210] sm:$0xff]   ;;  %v11882_v30 = vld [vmem:[#allocation7 + $0x2d8] sm:$0xff]  }
 0x473   : > { %5815 = vmatmul.mubr.bf16.vlgmr.msra.gmra.mrb[32].mxu0 %v5582_v52  ;;  %5856 = vmatmul.mubr.bf16.vlgmr.msra.gmra.mrb[160].mxu1 %v5584_v58  ;;  %v6693_v25 = vcombine.high %v13971_v33, %v13974_v35  ;;  %v6695_v27 = vcombine.high %v13977_v10, %v13980_v16  ;;  %v6692_v44 = vcombine.low %v13971_v33, %v13974_v35  ;;  %v11869_v52 = vld [vmem:[#allocation7 + $0x240] sm:$0xff]   ;;  %v11883_v49 = vld [vmem:[#allocation7 + $0x218] sm:$0xff]   ;;  %v11912_v9 = vld [vmem:[#allocation7 + $0x390] sm:$0xff]  }
 0x474   : > { %11040 = vmatpush3.bf16.msra.mxu0 %v11839_v23  ;;  %11062 = vmatpush3.bf16.msra.mxu1 %v11840_v19  ;;  %v6694_v29 = vcombine.low %v13977_v10, %v13980_v16  ;;  %v10155_v58 = vcombine.low %v13879_v15, %v13890_v26  ;;  %v13999_v0 = vrot.slane %v10156_v51, %v13862_v57  ;;  %v11872_v15 = vld [vmem:[#allocation7 + $0x280] sm:$0xff]   ;;  %v11873_v23 = vld [vmem:[#allocation7 + $0x248] sm:$0xff]   ;;  %v11941_v35 = vld [vmem:[%s15129_s10 + $0x24] ss:$8 sps:$4 sm:$0xff]  }
 0x475   : > { %6128 = vmatprep.mubr.bf16.mxu0 %v5897_v24  ;;  %6169 = vmatprep.mubr.bf16.mxu1 %v5899_v40  ;;  %v14002_v34 = vrot.slane %v10157_v3, %v13862_v57  ;;  %v11874_v19 = vld [vmem:[#allocation7 + $0x2c8] sm:$0xff]   ;;  %v11884_v24 = vld [vmem:[#allocation7 + $0x298] sm:$0xff]   ;;  %v11885_v40 = vld [vmem:[#allocation7 + $0x260] sm:$0xff]  }
 0x476   : > { %11041 = vmatprep.subr.bf16.mxu0 %v11841_v38  ;;  %11063 = vmatprep.subr.bf16.mxu1 %v11842_v36  ;;  %v14012_v26 = vrot.slane %v10155_v58, %v13862_v57  ;;  %v6297_v62 = vcombine.high %v14005_v22, %v13999_v0  ;;  %v11878_v57 = vld [vmem:[#allocation7 + $0x2d0] sm:$0xff]   ;;  %v11881_v36 = vld [vmem:[#allocation7 + $0x258] sm:$0xff]   ;;  %v11908_v51 = vld [vmem:[#allocation7 + $0x388] sm:$0xff]  }
 0x477   : > { %v11880_v38 = vld [vmem:[#allocation7 + $0x290] sm:$0xff]   ;;  %v11916_v58 = vld [vmem:[#allocation7 + $0x398] sm:$0xff]   ;;  %v11936_v33 = vld [vmem:[%s15129_s10 + $0x10] ss:$8 sps:$4 sm:$0xff]  }
 0x478   : > { %11042 = vmatpush3.bf16.msra.mxu0 %v11843_v4  ;;  %11064 = vmatpush3.bf16.msra.mxu1 %v11844_v48  ;;  %v6299_v41 = vcombine.high %v14012_v26, %v14002_v34  ;;  %v11886_v4 = vld [vmem:[#allocation7 + $0x2e0] sm:$0xff]   ;;  %v11909_v3 = vld [vmem:[#allocation7 + $0x350] sm:$0xff]  }
 0x479   : > { %11043 = vmatprep.subr.bf16.mxu0 %v11845_v28  ;;  %11065 = vmatprep.subr.bf16.mxu1 %v11846_v54  ;;  %v11887_v48 = vld [vmem:[#allocation7 + $0x220] sm:$0xff]   ;;  %v11889_v54 = vld [vmem:[#allocation7 + $0x268] sm:$0xff]   ;;  %v11939_v10 = vld [vmem:[%s15129_s10 + $0x20] ss:$8 sps:$4 sm:$0xff]  }
 0x47a   : > { %v11888_v28 = vld [vmem:[#allocation7 + $0x2a0] sm:$0xff]  }
 0x47b   : > { %v11944_v16 = vld [vmem:[%s15129_s10 + $0x34] ss:$8 sps:$4 sm:$0xff]  }
 0x47c   : > { %11044 = vmatpush3.bf16.msra.mxu0 %v11847_v61  ;;  %11066 = vmatpush3.bf16.msra.mxu1 %v11848_v47  ;;  %v11890_v61 = vld [vmem:[#allocation7 + $0x2e8] sm:$0xff]  }
 0x47d   : > { %11045 = vmatprep.subr.bf16.mxu0 %v11849_v42  ;;  %11067 = vmatprep.subr.bf16.mxu1 %v11850_v43  ;;  %v11891_v47 = vld [vmem:[#allocation7 + $0x228] sm:$0xff]   ;;  %v11893_v43 = vld [vmem:[#allocation7 + $0x270] sm:$0xff]  }
 0x47e   : > { %v11892_v42 = vld [vmem:[#allocation7 + $0x2a8] sm:$0xff]  }
 0x480   : > { %11046 = vmatpush3.bf16.msra.mxu0 %v11851_v13  ;;  %11068 = vmatpush3.bf16.msra.mxu1 %v11852_v53  ;;  %v11894_v13 = vld [vmem:[#allocation7 + $0x2f0] sm:$0xff]  }
 0x481   : > { %11047 = vmatprep.subr.bf16.mxu0 %v11853_v14  ;;  %11069 = vmatprep.subr.bf16.mxu1 %v11854_v45  ;;  %v11895_v53 = vld [vmem:[#allocation7 + $0x230] sm:$0xff]   ;;  %v11897_v45 = vld [vmem:[#allocation7 + $0x278] sm:$0xff]  }
 0x482   : > { %v11896_v14 = vld [vmem:[#allocation7 + $0x2b0] sm:$0xff]  }
 0x484   : > { %11048 = vmatpush3.bf16.msra.mxu0 %v11855_v11  ;;  %11070 = vmatpush3.bf16.msra.mxu1 %v11856_v18  ;;  %v11898_v11 = vld [vmem:[#allocation7 + $0x2f8] sm:$0xff]  }
 0x485   : > { %11049 = vmatprep.subr.bf16.mxu0 %v11857_v8  ;;  %11071 = vmatprep.subr.bf16.mxu1 %v11858_v20  ;;  %v11899_v18 = vld [vmem:[#allocation7 + $0x238] sm:$0xff]   ;;  %v11901_v20 = vld [vmem:[#allocation7 + $0x340] sm:$0xff]  }
 0x486   : > { %v11900_v8 = vld [vmem:[#allocation7 + $0x2b8] sm:$0xff]  }
 0x488   : > { %11050 = vmatpush3.bf16.msra.mxu0 %v11859_v39  ;;  %11072 = vmatpush3.bf16.msra.mxu1 %v11860_v59  ;;  %v11902_v39 = vld [vmem:[#allocation7 + $0x3c0] sm:$0xff]  }
 0x489   : > { %11051 = vmatprep.subr.bf16.mxu0 %v11861_v32  ;;  %11073 = vmatprep.subr.bf16.mxu1 %v11862_v6  ;;  %v11903_v59 = vld [vmem:[#allocation7 + $0x300] sm:$0xff]   ;;  %v6296_v32 = vcombine.low %v14005_v22, %v13999_v0  ;;  %v11921_v22 = vld [vmem:[#allocation7 + $0x368] sm:$0xff]  }
 0x48a   : > { %v11904_v6 = vld [vmem:[#allocation7 + $0x380] sm:$0xff]  }
 0x48b   : > { %v11917_v0 = vld [vmem:[#allocation7 + $0x360] sm:$0xff]  }
 0x48c   : > { %11052 = vmatpush3.bf16.msra.mxu0 %v11863_v21  ;;  %11074 = vmatpush3.bf16.msra.mxu1 %v11864_v60  ;;  %v6298_v21 = vcombine.low %v14012_v26, %v14002_v34  ;;  %v11905_v60 = vld [vmem:[#allocation7 + $0x348] sm:$0xff]   ;;  %v11918_v34 = vld [vmem:[#allocation7 + $0x3e0] sm:$0xff]   ;;  %v11925_v26 = vld [vmem:[#allocation7 + $0x370] sm:$0xff]  }
 0x48d   : > { %11053 = vmatprep.subr.bf16.mxu0 %v11865_v7  ;;  %11075 = vmatprep.subr.bf16.mxu1 %v11866_v12  ;;  %v11906_v7 = vld [vmem:[#allocation7 + $0x3c8] sm:$0xff]  }
 0x48e   : > { %v11907_v12 = vld [vmem:[#allocation7 + $0x308] sm:$0xff]  }
 0x490   : > { %11054 = vmatpush3.bf16.msra.mxu0 %v11867_v37  ;;  %11076 = vmatpush3.bf16.msra.mxu1 %v11868_v50  ;;  %v11910_v37 = vld [vmem:[#allocation7 + $0x3d0] sm:$0xff]  }
 0x491   : > { %11083 = vmatprep.subr.bf16.mxu0 %v11869_v52  ;;  %11105 = vmatprep.subr.bf16.mxu1 %v11870_v56  ;;  %v11911_v50 = vld [vmem:[#allocation7 + $0x310] sm:$0xff]   ;;  %v11913_v52 = vld [vmem:[#allocation7 + $0x358] sm:$0xff]  }
 0x492   : > { %v11914_v56 = vld [vmem:[#allocation7 + $0x3d8] sm:$0xff]  }
 0x493   : > { %6129 = vmatmul.mubr.bf16.vlgmr.msra.gmra.mrb[36].mxu0 %v5896_v2  ;;  %6170 = vmatmul.mubr.bf16.vlgmr.msra.gmra.mrb[164].mxu1 %v5898_v5  ;;  %v11922_v2 = vld [vmem:[#allocation7 + $0x3e8] sm:$0xff]  }
 0x494   : > { %11084 = vmatpush3.bf16.msra.mxu0 %v11871_v1  ;;  %6528 = vmatprep.mubr.bf16.mxu0 %v6297_v62  ;;  %v11920_v1 = vld [vmem:[#allocation7 + $0x3a0] sm:$0xff]   ;;  %v11923_v5 = vld [vmem:[#allocation7 + $0x328] sm:$0xff]   ;;  %v11926_v62 = vld [vmem:[#allocation7 + $0x3f0] sm:$0xff]  }
 0x495   : > { %11106 = vmatpush3.bf16.msra.mxu1 %v11872_v15  ;;  %6569 = vmatprep.mubr.bf16.mxu1 %v6299_v41  ;;  %v11924_v15 = vld [vmem:[#allocation7 + $0x3a8] sm:$0xff]   ;;  %v11929_v41 = vld [vmem:[#allocation7 + $0x378] sm:$0xff]  }
 0x496   : > { %11085 = vmatprep.subr.bf16.mxu0 %v11873_v23  ;;  %11107 = vmatprep.subr.bf16.mxu1 %v11874_v19  ;;  %v11927_v23 = vld [vmem:[#allocation7 + $0x330] sm:$0xff]  }
 0x497   : > { %v11928_v19 = vld [vmem:[#allocation7 + $0x3b0] sm:$0xff]  }
 0x498   : > { %11086 = vmatpush3.bf16.msra.mxu0 %v11875_v31  ;;  %v11930_v31 = vld [vmem:[#allocation7 + $0x3f8] sm:$0xff]  }
 0x499   : > { %11108 = vmatpush3.bf16.msra.mxu1 %v11876_v55  ;;  %11087 = vmatprep.subr.bf16.mxu0 %v11877_v46  ;;  %v11931_v55 = vld [vmem:[#allocation7 + $0x338] sm:$0xff]  }
 0x49a   : > { %11109 = vmatprep.subr.bf16.mxu1 %v11878_v57  ;;  %v11932_v46 = vld [vmem:[#allocation7 + $0x3b8] sm:$0xff]  }
 0x49b   : > { %v11933_v57 = vld [vmem:[%s15129_s10] ss:$8 sps:$4 sm:$0xff]  }
 0x49c   : > { %11088 = vmatpush3.bf16.msra.mxu0 %v11879_v63  ;;  %v11935_v63 = vld [vmem:[%s15129_s10 + $0x4] ss:$8 sps:$4 sm:$0xff]  }
 0x49d   : > { %11110 = vmatpush3.bf16.msra.mxu1 %v11880_v38  ;;  %11089 = vmatprep.subr.bf16.mxu0 %v11881_v36  ;;  %v11938_v38 = vld [vmem:[%s15129_s10 + $0x14] ss:$8 sps:$4 sm:$0xff]   ;;  %v11947_v36 = vld [vmem:[%s15129_s10 + $0x44] ss:$8 sps:$4 sm:$0xff]  }
 0x49e   : > { %11111 = vmatprep.subr.bf16.mxu1 %v11882_v30  ;;  %v11950_v30 = vld [vmem:[%s15129_s10 + $0x54] ss:$8 sps:$4 sm:$0xff]  }
 0x4a0   : > { %11090 = vmatpush3.bf16.msra.mxu0 %v11883_v49  ;;  %v11948_v49 = vld [vmem:[%s15129_s10 + $0x50] ss:$8 sps:$4 sm:$0xff]  }
 0x4a1   : > { %11112 = vmatpush3.bf16.msra.mxu1 %v11884_v24  ;;  %11091 = vmatprep.subr.bf16.mxu0 %v11885_v40  ;;  %v11953_v24 = vld [vmem:[%s15129_s10 + $0x64] ss:$8 sps:$4 sm:$0xff]   ;;  %v11951_v40 = vld [vmem:[%s15129_s10 + $0x60] ss:$8 sps:$4 sm:$0xff]  }
 0x4a2   : > { %11113 = vmatprep.subr.bf16.mxu1 %v11886_v4  ;;  %v11956_v4 = vld [vmem:[%s15129_s10 + $0x74] ss:$8 sps:$4 sm:$0xff]  }
 0x4a4   : > { %11092 = vmatpush3.bf16.msra.mxu0 %v11887_v48  ;;  %v11954_v48 = vld [vmem:[%s15129_s10 + $0x70] ss:$8 sps:$4 sm:$0xff]  }
 0x4a5   : > { %11114 = vmatpush3.bf16.msra.mxu1 %v11888_v28  ;;  %11093 = vmatprep.subr.bf16.mxu0 %v11889_v54  ;;  %v11959_v28 = vld [vmem:[%s15129_s10 + $0x84] ss:$8 sps:$4 sm:$0xff]   ;;  %v11957_v54 = vld [vmem:[%s15129_s10 + $0x80] ss:$8 sps:$4 sm:$0xff]  }
 0x4a6   : > { %11115 = vmatprep.subr.bf16.mxu1 %v11890_v61  ;;  %v11962_v61 = vld [vmem:[%s15129_s10 + $0x94] ss:$8 sps:$4 sm:$0xff]  }
 0x4a8   : > { %11094 = vmatpush3.bf16.msra.mxu0 %v11891_v47  ;;  %v11960_v47 = vld [vmem:[%s15129_s10 + $0x90] ss:$8 sps:$4 sm:$0xff]  }
 0x4a9   : > { %11116 = vmatpush3.bf16.msra.mxu1 %v11892_v42  ;;  %11095 = vmatprep.subr.bf16.mxu0 %v11893_v43  ;;  %v11965_v42 = vld [vmem:[%s15129_s10 + $0xa4] ss:$8 sps:$4 sm:$0xff]   ;;  %v11963_v43 = vld [vmem:[%s15129_s10 + $0xa0] ss:$8 sps:$4 sm:$0xff]  }
 0x4aa   : > { %11117 = vmatprep.subr.bf16.mxu1 %v11894_v13  ;;  %v11968_v13 = vld [vmem:[%s15129_s10 + $0xb4] ss:$8 sps:$4 sm:$0xff]  }
 0x4ac   : > { %11096 = vmatpush3.bf16.msra.mxu0 %v11895_v53  ;;  %v11966_v53 = vld [vmem:[%s15129_s10 + $0xb0] ss:$8 sps:$4 sm:$0xff]  }
 0x4ad   : > { %11118 = vmatpush3.bf16.msra.mxu1 %v11896_v14  ;;  %11097 = vmatprep.subr.bf16.mxu0 %v11897_v45  ;;  %v11969_v14 = vld [vmem:[%s15129_s10 + $0xc0] ss:$8 sps:$4 sm:$0xff]   ;;  %v11971_v45 = vld [vmem:[%s15129_s10 + $0xc4] ss:$8 sps:$4 sm:$0xff]  }
 0x4ae   : > { %11119 = vmatprep.subr.bf16.mxu1 %v11898_v11  ;;  %v11974_v11 = vld [vmem:[%s15129_s10 + $0xd4] ss:$8 sps:$4 sm:$0xff]  }
 0x4b0   : > { %11098 = vmatpush3.bf16.msra.mxu0 %v11899_v18  ;;  %v11972_v18 = vld [vmem:[%s15129_s10 + $0xd0] ss:$8 sps:$4 sm:$0xff]  }
 0x4b1   : > { %11120 = vmatpush3.bf16.msra.mxu1 %v11900_v8  ;;  %11127 = vmatprep.subr.bf16.mxu0 %v11901_v20  ;;  %v11977_v8 = vld [vmem:[%s15129_s10 + $0xe4] ss:$8 sps:$4 sm:$0xff]   ;;  %v11975_v20 = vld [vmem:[%s15129_s10 + $0xe0] ss:$8 sps:$4 sm:$0xff]  }
 0x4b2   : > { %11149 = vmatprep.subr.bf16.mxu1 %v11902_v39  ;;  %v11980_v39 = vld [vmem:[%s15129_s10 + $0xf4] ss:$8 sps:$4 sm:$0xff]  }
 0x4b3   : > { %6529 = vmatmul.mubr.bf16.vlgmr.msra.gmra.mrb[40].mxu0 %v6296_v32  ;;  %v11983_v32 = vld [vmem:[%s15129_s10 + $0x104] ss:$8 sps:$4 sm:$0xff]  }
 0x4b4   : > { %6570 = vmatmul.mubr.bf16.vlgmr.msra.gmra.mrb[168].mxu1 %v6298_v21  ;;  %11128 = vmatpush3.bf16.msra.mxu0 %v11903_v59  ;;  %v11978_v59 = vld [vmem:[%s15129_s10 + $0xf0] ss:$8 sps:$4 sm:$0xff]  }
 0x4b5   : > { %6924 = vmatprep.mubr.bf16.mxu0 %v6693_v25  ;;  %11150 = vmatpush3.bf16.msra.mxu1 %v11904_v6  ;;  %v11915_v25 = vld [vmem:[#allocation7 + $0x318] sm:$0xff]  }
 0x4b6   : > { %6965 = vmatprep.mubr.bf16.mxu1 %v6695_v27  ;;  %11129 = vmatprep.subr.bf16.mxu0 %v11905_v60  ;;  %v11919_v27 = vld [vmem:[#allocation7 + $0x320] sm:$0xff]  }
 0x4b7   : > { %11151 = vmatprep.subr.bf16.mxu1 %v11906_v7 }
 0x4b8   : > { %11130 = vmatpush3.bf16.msra.mxu0 %v11907_v12 }
 0x4b9   : > { %11152 = vmatpush3.bf16.msra.mxu1 %v11908_v51  ;;  %11131 = vmatprep.subr.bf16.mxu0 %v11909_v3 }
 0x4ba   : > { %11153 = vmatprep.subr.bf16.mxu1 %v11910_v37 }
 0x4bc   : > { %11132 = vmatpush3.bf16.msra.mxu0 %v11911_v50 }
 0x4bd   : > { %11154 = vmatpush3.bf16.msra.mxu1 %v11912_v9  ;;  %11133 = vmatprep.subr.bf16.mxu0 %v11913_v52 }
 0x4be   : > { %11155 = vmatprep.subr.bf16.mxu1 %v11914_v56 }
 0x4c0   : > { %11134 = vmatpush3.bf16.msra.mxu0 %v11915_v25 }
 0x4c1   : > { %11156 = vmatpush3.bf16.msra.mxu1 %v11916_v58  ;;  %11135 = vmatprep.subr.bf16.mxu0 %v11917_v0 }
 0x4c2   : > { %11157 = vmatprep.subr.bf16.mxu1 %v11918_v34 }
 0x4c4   : > { %11136 = vmatpush3.bf16.msra.mxu0 %v11919_v27 }
 0x4c5   : > { %11158 = vmatpush3.bf16.msra.mxu1 %v11920_v1  ;;  %11137 = vmatprep.subr.bf16.mxu0 %v11921_v22 }
 0x4c6   : > { %11159 = vmatprep.subr.bf16.mxu1 %v11922_v2 }
 0x4c8   : > { %11138 = vmatpush3.bf16.msra.mxu0 %v11923_v5 }
 0x4c9   : > { %11160 = vmatpush3.bf16.msra.mxu1 %v11924_v15  ;;  %11139 = vmatprep.subr.bf16.mxu0 %v11925_v26 }
 0x4ca   : > { %11161 = vmatprep.subr.bf16.mxu1 %v11926_v62 }
 0x4cc   : > { %11140 = vmatpush3.bf16.msra.mxu0 %v11927_v23 }
 0x4cd   : > { %11162 = vmatpush3.bf16.msra.mxu1 %v11928_v19  ;;  %11141 = vmatprep.subr.bf16.mxu0 %v11929_v41 }
 0x4ce   : > { %11163 = vmatprep.subr.bf16.mxu1 %v11930_v31 }
 0x4d0   : > { %11142 = vmatpush3.bf16.msra.mxu0 %v11931_v55 }
 0x4d1   : > { %11164 = vmatpush3.bf16.msra.mxu1 %v11932_v46  ;;  %8637 = vmatprep.subr.bf16.mxu0 %v11935_v63 }
 0x4d3   : > { %6925 = vmatmul.mubr.bf16.vlgmr.msra.gmra.mrb[44].mxu0 %v6692_v44  ;;  %v11942_v44 = vld [vmem:[%s15129_s10 + $0x30] ss:$8 sps:$4 sm:$0xff]  }
 0x4d4   : > { %6966 = vmatmul.mubr.bf16.vlgmr.msra.gmra.mrb[172].mxu1 %v6694_v29  ;;  %8638 = vmatpush1.bf16.msra.mxu0 %v11933_v57  ;;  %v11945_v29 = vld [vmem:[%s15129_s10 + $0x40] ss:$8 sps:$4 sm:$0xff]  }
 0x4d5   : > { %8639 = vmatprep.subr.bf16.mxu0 %v11938_v38 }
 0x4d8   : > { %8640 = vmatpush1.bf16.msra.mxu0 %v11936_v33 }
 0x4d9   : > { %8641 = vmatprep.subr.bf16.mxu0 %v11941_v35 }
 0x4dc   : > { %8642 = vmatpush1.bf16.msra.mxu0 %v11939_v10 }
 0x4dd   : > { %8643 = vmatprep.subr.bf16.mxu0 %v11944_v16 }
 0x4e0   : > { %8644 = vmatpush1.bf16.msra.mxu0 %v11942_v44 }
 0x4e1   : > { %8645 = vmatprep.subr.bf16.mxu0 %v11947_v36 }
 0x4e4   : > { %8646 = vmatpush1.bf16.msra.mxu0 %v11945_v29 }
 0x4e5   : > { %8647 = vmatprep.subr.bf16.mxu0 %v11950_v30 }
 0x4e8   : > { %8648 = vmatpush1.bf16.msra.mxu0 %v11948_v49 }
 0x4e9   : > { %8649 = vmatprep.subr.bf16.mxu0 %v11953_v24 }
 0x4ec   : > { %8650 = vmatpush1.bf16.msra.mxu0 %v11951_v40 }
 0x4ed   : > { %8651 = vmatprep.subr.bf16.mxu0 %v11956_v4 }
 0x4f0   : > { %8652 = vmatpush1.bf16.msra.mxu0 %v11954_v48 }
 0x4f1   : > { %8653 = vmatprep.subr.bf16.mxu0 %v11959_v28 }
 0x4f4   : > { %8654 = vmatpush1.bf16.msra.mxu0 %v11957_v54 }
 0x4f5   : > { %8655 = vmatprep.subr.bf16.mxu0 %v11962_v61 }
 0x4f8   : > { %8656 = vmatpush1.bf16.msra.mxu0 %v11960_v47 }
 0x4f9   : > { %8657 = vmatprep.subr.bf16.mxu0 %v11965_v42 }
 0x4fc   : > { %8658 = vmatpush1.bf16.msra.mxu0 %v11963_v43 }
 0x4fd   : > { %8659 = vmatprep.subr.bf16.mxu0 %v11968_v13 }
 0x500   : > { %8660 = vmatpush1.bf16.msra.mxu0 %v11966_v53 }
 0x501   : > { %8661 = vmatprep.subr.bf16.mxu0 %v11971_v45 }
 0x504   : > { %8662 = vmatpush1.bf16.msra.mxu0 %v11969_v14 }
 0x505   : > { %8663 = vmatprep.subr.bf16.mxu0 %v11974_v11 }
 0x508   : > { %8664 = vmatpush1.bf16.msra.mxu0 %v11972_v18 }
 0x509   : > { %8665 = vmatprep.subr.bf16.mxu0 %v11977_v8 }
 0x50c   : > { %8666 = vmatpush1.bf16.msra.mxu0 %v11975_v20  ;;  %v10222_v20 = vld [vmem:[%s15126_s7] ss:$0 sm:$0xff] }
 0x50d   : > { %8667 = vmatprep.subr.bf16.mxu0 %v11980_v39 }
 0x510   : > { %8668 = vmatpush1.bf16.msra.mxu0 %v11978_v59 }
 0x511   : > { %8678 = vmatprep.subr.bf16.mxu0 %v11983_v32 }
 0x546   : > { %v11011_v6 = vpop.f32.mrb[32].mxu0  ;;  %v11033_v21 = vpop.f32.mrb[160].mxu1 }
 0x547   : > { %v11012_v60 = vpop.f32.mrb[33].mxu0  ;;  %v11034_v7 = vpop.f32.mrb[161].mxu1 }
 0x548   : > { %v11013_v12 = vadd.f32 %v11012_v60, %v11011_v6  ;;  %v11035_v51 = vadd.f32 %v11034_v7, %v11033_v21  ;;  %v11014_v3 = vpop.f32.mrb[34].mxu0  ;;  %v11036_v37 = vpop.f32.mrb[162].mxu1  ;;  %v14137_v21 = vsub.s32 1, %v13856_v17  ;;  %v14140_v60 = vsub.s32 0, %v13856_v17 }
 0x549   : > { %v11015_v50 = vpop.f32.mrb[35].mxu0  ;;  %v11037_v9 = vpop.f32.mrb[163].mxu1  ;;  %v7007_v7 = vsub.s32 3, %v13856_v17 }
 0x54a   : > { %v5858_v52 = vadd.f32 %v11035_v51, %v11013_v12  ;;  %v11016_v56 = vadd.f32 %v11015_v50, %v11014_v3  ;;  %v11038_v25 = vadd.f32 %v11037_v9, %v11036_v37 }
 0x54c   : > { %v5861_v58 = vadd.f32 %v11038_v25, %v11016_v56 }
 0x566   : > { %v11055_v0 = vpop.f32.mrb[36].mxu0  ;;  %v11077_v34 = vpop.f32.mrb[164].mxu1 }
 0x567   : > { %v11056_v27 = vpop.f32.mrb[37].mxu0  ;;  %v11078_v1 = vpop.f32.mrb[165].mxu1 }
 0x568   : > { %v11057_v22 = vadd.f32 %v11056_v27, %v11055_v0  ;;  %v11079_v2 = vadd.f32 %v11078_v1, %v11077_v34  ;;  %v11058_v5 = vpop.f32.mrb[38].mxu0  ;;  %v11080_v15 = vpop.f32.mrb[166].mxu1  ;;  %v7003_v34 = vsub.s32 2, %v13856_v17  ;;  %v11986_v27 = vld [vmem:[%s15129_s10 + $0x114] ss:$8 sps:$4 sm:$0xff]   ;;  %v7015_v1 = vsub.s32 5, %v13856_v17 }
 0x569   : > { %v11059_v26 = vpop.f32.mrb[39].mxu0  ;;  %v11081_v62 = vpop.f32.mrb[167].mxu1 }
 0x56a   : > { %v6131_v23 = vadd.f32 %v11057_v22, %v5858_v52  ;;  %v11060_v19 = vadd.f32 %v11059_v26, %v11058_v5  ;;  %v11082_v41 = vadd.f32 %v11081_v62, %v11080_v15  ;;  %v7011_v22 = vsub.s32 4, %v13856_v17 }
 0x56c   : > { %v6172_v31 = vadd.f32 %v11079_v2, %v6131_v23  ;;  %v6134_v55 = vadd.f32 %v11060_v19, %v5861_v58  ;;  %v11981_v58 = vld [vmem:[%s15129_s10 + $0x100] ss:$8 sps:$4 sm:$0xff]   ;;  %v7023_v2 = vsub.s32 7, %v13856_v17 }
 0x56e   : > { %v6175_v46 = vadd.f32 %v11082_v41, %v6134_v55  ;;  %v11984_v41 = vld [vmem:[%s15129_s10 + $0x110] ss:$8 sps:$4 sm:$0xff]   ;;  %v11989_v55 = vld [vmem:[%s15129_s10 + $0x124] ss:$8 sps:$4 sm:$0xff]  }
 0x586   : > { %v11099_v57 = vpop.f32.mrb[40].mxu0 }
 0x587   : > { %v11121_v63 = vpop.f32.mrb[168].mxu1  ;;  %v11100_v38 = vpop.f32.mrb[41].mxu0 }
 0x588   : > { %v11101_v33 = vadd.f32 %v11100_v38, %v11099_v57  ;;  %v11122_v35 = vpop.f32.mrb[169].mxu1  ;;  %v11102_v10 = vpop.f32.mrb[42].mxu0  ;;  %v11987_v57 = vld [vmem:[%s15129_s10 + $0x120] ss:$8 sps:$4 sm:$0xff]   ;;  %v11990_v38 = vld [vmem:[%s15129_s10 + $0x130] ss:$8 sps:$4 sm:$0xff]  }
 0x589   : > { %v11123_v16 = vadd.f32 %v11122_v35, %v11121_v63  ;;  %v11124_v44 = vpop.f32.mrb[170].mxu1  ;;  %v11103_v29 = vpop.f32.mrb[43].mxu0  ;;  %v11992_v63 = vld [vmem:[%s15129_s10 + $0x134] ss:$8 sps:$4 sm:$0xff]   ;;  %v11993_v35 = vld [vmem:[%s15129_s10 + $0x140] ss:$8 sps:$4 sm:$0xff]  }
 0x58a   : > { %v11104_v36 = vadd.f32 %v11103_v29, %v11102_v10  ;;  %v11125_v30 = vpop.f32.mrb[171].mxu1  ;;  %v11998_v10 = vld [vmem:[%s15129_s10 + $0x154] ss:$8 sps:$4 sm:$0xff]   ;;  %v11999_v29 = vld [vmem:[%s15129_s10 + $0x160] ss:$8 sps:$4 sm:$0xff]  }
 0x58b   : > { %v6572_v49 = vadd.f32 %v11123_v16, %v11101_v33  ;;  %v11126_v24 = vadd.f32 %v11125_v30, %v11124_v44  ;;  %v11995_v33 = vld [vmem:[%s15129_s10 + $0x144] ss:$8 sps:$4 sm:$0xff]   ;;  %v11996_v16 = vld [vmem:[%s15129_s10 + $0x150] ss:$8 sps:$4 sm:$0xff]  }
 0x58c   : > { %v12001_v44 = vld [vmem:[%s15129_s10 + $0x164] ss:$8 sps:$4 sm:$0xff]   ;;  %v12002_v30 = vld [vmem:[%s15129_s10 + $0x170] ss:$8 sps:$4 sm:$0xff]  }
 0x58d   : > { %v6578_v40 = vadd.f32 %v6572_v49, %v6172_v31  ;;  %v6575_v4 = vadd.f32 %v11126_v24, %v11104_v36  ;;  %v7019_v31 = vsub.s32 6, %v13856_v17  ;;  %v12004_v36 = vld [vmem:[%s15129_s10 + $0x174] ss:$8 sps:$4 sm:$0xff]   ;;  %v12007_v49 = vld [vmem:[%s15129_s10 + $0x184] ss:$8 sps:$4 sm:$0xff]  }
 0x58e   : > { %v12005_v24 = vld [vmem:[%s15129_s10 + $0x180] ss:$8 sps:$4 sm:$0xff]   ;;  %v12130_v17 = vld [vmem:[%s15129_s10 + $0x414] ss:$8 sps:$4 sm:$0xff]  }
 0x58f   : > { %v6579_v48 = vadd.f32 %v6575_v4, %v6175_v46  ;;  %v12008_v4 = vld [vmem:[%s15129_s10 + $0x190] ss:$8 sps:$4 sm:$0xff]  }
 0x5a6   : > { %v11143_v28 = vpop.f32.mrb[44].mxu0 }
 0x5a7   : > { %v11165_v54 = vpop.f32.mrb[172].mxu1  ;;  %v11144_v61 = vpop.f32.mrb[45].mxu0 }
 0x5a8   : > { %v11145_v47 = vadd.f32 %v11144_v61, %v11143_v28  ;;  %v11166_v42 = vpop.f32.mrb[173].mxu1  ;;  %v11146_v43 = vpop.f32.mrb[46].mxu0  ;;  %v12011_v28 = vld [vmem:[%s15129_s10 + $0x1a0] ss:$8 sps:$4 sm:$0xff]   ;;  %v12014_v61 = vld [vmem:[%s15129_s10 + $0x1b0] ss:$8 sps:$4 sm:$0xff]  }
 0x5a9   : > { %v11167_v13 = vadd.f32 %v11166_v42, %v11165_v54  ;;  %v11168_v53 = vpop.f32.mrb[174].mxu1  ;;  %v11147_v14 = vpop.f32.mrb[47].mxu0  ;;  %v12016_v54 = vld [vmem:[%s15129_s10 + $0x1b4] ss:$8 sps:$4 sm:$0xff]   ;;  %v12017_v42 = vld [vmem:[%s15129_s10 + $0x1c0] ss:$8 sps:$4 sm:$0xff]  }
 0x5aa   : > { %v11148_v45 = vadd.f32 %v11147_v14, %v11146_v43  ;;  %v11169_v11 = vpop.f32.mrb[175].mxu1  ;;  %v12022_v43 = vld [vmem:[%s15129_s10 + $0x1d4] ss:$8 sps:$4 sm:$0xff]   ;;  %v12023_v14 = vld [vmem:[%s15129_s10 + $0x1e0] ss:$8 sps:$4 sm:$0xff]  }
 0x5ab   : > { %v6968_v18 = vadd.f32 %v11167_v13, %v11145_v47  ;;  %v11170_v8 = vadd.f32 %v11169_v11, %v11168_v53  ;;  %v12019_v47 = vld [vmem:[%s15129_s10 + $0x1c4] ss:$8 sps:$4 sm:$0xff]   ;;  %v12020_v13 = vld [vmem:[%s15129_s10 + $0x1d0] ss:$8 sps:$4 sm:$0xff]  }
 0x5ac   : > { %v12025_v53 = vld [vmem:[%s15129_s10 + $0x1e4] ss:$8 sps:$4 sm:$0xff]   ;;  %v12026_v11 = vld [vmem:[%s15129_s10 + $0x1f0] ss:$8 sps:$4 sm:$0xff]  }
 0x5ad   : > { %v6974_v39 = vadd.f32 %v6968_v18, %v6578_v40  ;;  %v6971_v59 = vadd.f32 %v11170_v8, %v11148_v45  ;;  %v12010_v40 = vld [vmem:[%s15129_s10 + $0x194] ss:$8 sps:$4 sm:$0xff]   ;;  %v12031_v8 = vld [vmem:[%s15129_s10 + $0x204] ss:$8 sps:$4 sm:$0xff]  }
 0x5ae   : > { %v12028_v45 = vld [vmem:[%s15129_s10 + $0x1f4] ss:$8 sps:$4 sm:$0xff]  }
 0x5af   : > { %v6983_v32 = vadd.f32 %v10222_v20, %v6974_v39  ;;  %v6975_v6 = vadd.f32 %v6971_v59, %v6579_v48  ;;  %v12013_v48 = vld [vmem:[%s15129_s10 + $0x1a4] ss:$8 sps:$4 sm:$0xff]   ;;  %v12029_v39 = vld [vmem:[%s15129_s10 + $0x200] ss:$8 sps:$4 sm:$0xff]  }
 0x5b1   : > { %vm6985_vm7 = vcmp.ge.f32.partialorder %v6983_v32, 0.0  ;;  %v6987_v12 = vmul.f32 0.2, %v6983_v32  ;;  %v6984_v51 = vadd.f32 %v10222_v20, %v6975_v6 }
 0x5b3   : > { %v14143_v3 = vsel %vm6985_vm7, %v6983_v32, %v6987_v12  ;;  %vm6986_vm1 = vcmp.ge.f32.partialorder %v6984_v51, 0.0  ;;  %v6988_v37 = vmul.f32 0.2, %v6984_v51  ;;  %v12034_v32 = vld [vmem:[%s15129_s10 + $0x214] ss:$8 sps:$4 sm:$0xff]  }
 0x5b4   : > { %v7000_v50 = vrot.slane %v14143_v3, %v14137_v21  ;;  %v6996_v9 = vrot.slane %v14143_v3, %v14140_v60  ;;  %v7008_v52 = vrot.slane %v14143_v3, %v7007_v7  ;;  %v7004_v18 = vrot.slane %v14143_v3, %v7003_v34  ;;  %v12037_v12 = vld [vmem:[%s15129_s10 + $0x224] ss:$8 sps:$4 sm:$0xff]  }
 0x5b5   : > { %v14150_v56 = vsel %vm6986_vm1, %v6984_v51, %v6988_v37  ;;  %v7016_v20 = vrot.slane %v14143_v3, %v7015_v1  ;;  %v12035_v51 = vld [vmem:[%s15129_s10 + $0x220] ss:$8 sps:$4 sm:$0xff]   ;;  %v12040_v37 = vld [vmem:[%s15129_s10 + $0x234] ss:$8 sps:$4 sm:$0xff]  }
 0x5b6   : > { %v7074_v25 = vpack.c.bf16 %v7000_v50, %v7000_v50  ;;  %v7073_v0 = vpack.c.bf16 %v6996_v9, %v6996_v9  ;;  %v7076_v5 = vpack.c.bf16 %v7008_v52, %v7008_v52  ;;  %v14163_v15 = vrot.slane %v14150_v56, %v7007_v7  ;;  %v12032_v7 = vld [vmem:[%s15129_s10 + $0x210] ss:$8 sps:$4 sm:$0xff]   ;;  %v12043_v9 = vld [vmem:[%s15129_s10 + $0x244] ss:$8 sps:$4 sm:$0xff]   ;;  %v12041_v52 = vld [vmem:[%s15129_s10 + $0x240] ss:$8 sps:$4 sm:$0xff]  }
 0x5b7   : > { %v14168_v26 = vrot.slane %v14150_v56, %v7003_v34  ;;  %v14173_v62 = vrot.slane %v14150_v56, %v7015_v1  ;;  %v14178_v23 = vrot.slane %v14150_v56, %v7011_v22  ;;  %v14183_v19 = vrot.slane %v14150_v56, %v7023_v2  ;;  %v12038_v50 = vld [vmem:[%s15129_s10 + $0x230] ss:$8 sps:$4 sm:$0xff]   ;;  %v12047_v34 = vld [vmem:[%s15129_s10 + $0x260] ss:$8 sps:$4 sm:$0xff]  }
 0x5b8   : > { %8669 = vmatprep.mubr.bf16.mxu0 %v7074_v25  ;;  %v14195_v46 = vrot.slane %v14150_v56, %v7019_v31  ;;  %v7075_v59 = vpack.c.bf16 %v7004_v18, %v7004_v18  ;;  %v7078_v6 = vpack.c.bf16 %v7016_v20, %v7016_v20  ;;  %v12046_v25 = vld [vmem:[%s15129_s10 + $0x254] ss:$8 sps:$4 sm:$0xff]   ;;  %v12050_v1 = vld [vmem:[%s15129_s10 + $0x270] ss:$8 sps:$4 sm:$0xff]   ;;  %v12097_v18 = vld [vmem:[%s15129_s10 + $0x364] ss:$8 sps:$4 sm:$0xff]  }
 0x5b9   : > { %8670 = vmatmul.mubr.bf16.vlgmr.msra.gmra.mrb[48].mxu0 %v7073_v0  ;;  %v12049_v0 = vld [vmem:[%s15129_s10 + $0x264] ss:$8 sps:$4 sm:$0xff]   ;;  %v12100_v20 = vld [vmem:[%s15129_s10 + $0x374] ss:$8 sps:$4 sm:$0xff]  }
 0x5ba   : > { %8679 = vmatpush1.bf16.msra.mxu0 %v11981_v58  ;;  %8710 = vmatprep.mubr.bf16.mxu0 %v7076_v5  ;;  %v12044_v58 = vld [vmem:[%s15129_s10 + $0x250] ss:$8 sps:$4 sm:$0xff]   ;;  %v12055_v5 = vld [vmem:[%s15129_s10 + $0x284] ss:$8 sps:$4 sm:$0xff]  }
 0x5bb   : > { %8680 = vmatprep.subr.bf16.mxu0 %v11986_v27  ;;  %v12052_v27 = vld [vmem:[%s15129_s10 + $0x274] ss:$8 sps:$4 sm:$0xff]  }
 0x5be   : > { %8681 = vmatpush1.bf16.msra.mxu0 %v11984_v41  ;;  %v12053_v41 = vld [vmem:[%s15129_s10 + $0x280] ss:$8 sps:$4 sm:$0xff]  }
 0x5bf   : > { %8682 = vmatprep.subr.bf16.mxu0 %v11989_v55  ;;  %v12058_v55 = vld [vmem:[%s15129_s10 + $0x294] ss:$8 sps:$4 sm:$0xff]  }
 0x5c2   : > { %8683 = vmatpush1.bf16.msra.mxu0 %v11987_v57  ;;  %v12056_v57 = vld [vmem:[%s15129_s10 + $0x290] ss:$8 sps:$4 sm:$0xff]  }
 0x5c3   : > { %8684 = vmatprep.subr.bf16.mxu0 %v11992_v63  ;;  %v12061_v63 = vld [vmem:[%s15129_s10 + $0x2a4] ss:$8 sps:$4 sm:$0xff]  }
 0x5c6   : > { %8685 = vmatpush1.bf16.msra.mxu0 %v11990_v38  ;;  %v12059_v38 = vld [vmem:[%s15129_s10 + $0x2a0] ss:$8 sps:$4 sm:$0xff]  }
 0x5c7   : > { %8686 = vmatprep.subr.bf16.mxu0 %v11995_v33  ;;  %v12064_v33 = vld [vmem:[%s15129_s10 + $0x2b4] ss:$8 sps:$4 sm:$0xff]  }
 0x5ca   : > { %8687 = vmatpush1.bf16.msra.mxu0 %v11993_v35  ;;  %v12062_v35 = vld [vmem:[%s15129_s10 + $0x2b0] ss:$8 sps:$4 sm:$0xff]  }
 0x5cb   : > { %8688 = vmatprep.subr.bf16.mxu0 %v11998_v10  ;;  %v12067_v10 = vld [vmem:[%s15129_s10 + $0x2c4] ss:$8 sps:$4 sm:$0xff]  }
 0x5ce   : > { %8689 = vmatpush1.bf16.msra.mxu0 %v11996_v16  ;;  %v12065_v16 = vld [vmem:[%s15129_s10 + $0x2c0] ss:$8 sps:$4 sm:$0xff]  }
 0x5cf   : > { %8690 = vmatprep.subr.bf16.mxu0 %v12001_v44  ;;  %v12070_v44 = vld [vmem:[%s15129_s10 + $0x2d4] ss:$8 sps:$4 sm:$0xff]  }
 0x5d2   : > { %8691 = vmatpush1.bf16.msra.mxu0 %v11999_v29  ;;  %v12068_v29 = vld [vmem:[%s15129_s10 + $0x2d0] ss:$8 sps:$4 sm:$0xff]  }
 0x5d3   : > { %8692 = vmatprep.subr.bf16.mxu0 %v12004_v36  ;;  %v12073_v36 = vld [vmem:[%s15129_s10 + $0x2e4] ss:$8 sps:$4 sm:$0xff]  }
 0x5d6   : > { %8693 = vmatpush1.bf16.msra.mxu0 %v12002_v30  ;;  %v12071_v30 = vld [vmem:[%s15129_s10 + $0x2e0] ss:$8 sps:$4 sm:$0xff]  }
 0x5d7   : > { %8694 = vmatprep.subr.bf16.mxu0 %v12007_v49  ;;  %v12076_v49 = vld [vmem:[%s15129_s10 + $0x2f4] ss:$8 sps:$4 sm:$0xff]  }
 0x5da   : > { %8695 = vmatpush1.bf16.msra.mxu0 %v12005_v24  ;;  %v12074_v24 = vld [vmem:[%s15129_s10 + $0x2f0] ss:$8 sps:$4 sm:$0xff]  }
 0x5db   : > { %8696 = vmatprep.subr.bf16.mxu0 %v12010_v40  ;;  %v7012_v40 = vrot.slane %v14143_v3, %v7011_v22 }
 0x5de   : > { %8697 = vmatpush1.bf16.msra.mxu0 %v12008_v4  ;;  %v12079_v4 = vld [vmem:[%s15129_s10 + $0x304] ss:$8 sps:$4 sm:$0xff]  }
 0x5df   : > { %8698 = vmatprep.subr.bf16.mxu0 %v12013_v48  ;;  %v7024_v48 = vrot.slane %v14143_v3, %v7023_v2  ;;  %v12085_v2 = vld [vmem:[%s15129_s10 + $0x324] ss:$8 sps:$4 sm:$0xff]  }
 0x5e1   : > { %v7080_v22 = vpack.c.bf16 %v7024_v48, %v7024_v48  ;;  %v12149_v48 = vld [vmem:[%s15129_s10 + $0x480] ss:$8 sps:$4 sm:$0xff]  }
 0x5e2   : > { %8699 = vmatpush1.bf16.msra.mxu0 %v12011_v28  ;;  %v12077_v28 = vld [vmem:[%s15129_s10 + $0x300] ss:$8 sps:$4 sm:$0xff]  }
 0x5e3   : > { %8700 = vmatprep.subr.bf16.mxu0 %v12016_v54  ;;  %v7077_v54 = vpack.c.bf16 %v7012_v40, %v7012_v40  ;;  %v12146_v40 = vld [vmem:[%s15129_s10 + $0x470] ss:$8 sps:$4 sm:$0xff]  }
 0x5e6   : > { %8701 = vmatpush1.bf16.msra.mxu0 %v12014_v61  ;;  %v12082_v61 = vld [vmem:[%s15129_s10 + $0x314] ss:$8 sps:$4 sm:$0xff]  }
 0x5e7   : > { %8702 = vmatprep.subr.bf16.mxu0 %v12019_v47  ;;  %v12080_v47 = vld [vmem:[%s15129_s10 + $0x310] ss:$8 sps:$4 sm:$0xff]  }
 0x5ea   : > { %8703 = vmatpush1.bf16.msra.mxu0 %v12017_v42  ;;  %v12083_v42 = vld [vmem:[%s15129_s10 + $0x320] ss:$8 sps:$4 sm:$0xff]  }
 0x5eb   : > { %8704 = vmatprep.subr.bf16.mxu0 %v12022_v43  ;;  %v12088_v43 = vld [vmem:[%s15129_s10 + $0x334] ss:$8 sps:$4 sm:$0xff]  }
 0x5ee   : > { %8705 = vmatpush1.bf16.msra.mxu0 %v12020_v13  ;;  %v12086_v13 = vld [vmem:[%s15129_s10 + $0x330] ss:$8 sps:$4 sm:$0xff]  }
 0x5ef   : > { %8706 = vmatprep.subr.bf16.mxu0 %v12025_v53  ;;  %v12091_v53 = vld [vmem:[%s15129_s10 + $0x344] ss:$8 sps:$4 sm:$0xff]  }
 0x5f2   : > { %8707 = vmatpush1.bf16.msra.mxu0 %v12023_v14  ;;  %v12089_v14 = vld [vmem:[%s15129_s10 + $0x340] ss:$8 sps:$4 sm:$0xff]  }
 0x5f3   : > { %8708 = vmatprep.subr.bf16.mxu0 %v12028_v45  ;;  %v12094_v45 = vld [vmem:[%s15129_s10 + $0x354] ss:$8 sps:$4 sm:$0xff]  }
 0x5f6   : > { %8709 = vmatpush1.bf16.msra.mxu0 %v12026_v11  ;;  %v12092_v11 = vld [vmem:[%s15129_s10 + $0x350] ss:$8 sps:$4 sm:$0xff]  }
 0x5f7   : > { %8719 = vmatprep.subr.bf16.mxu0 %v12031_v8  ;;  %v12095_v8 = vld [vmem:[%s15129_s10 + $0x360] ss:$8 sps:$4 sm:$0xff]  }
 0x5f9   : > { %8711 = vmatmul.mubr.bf16.vlgmr.msra.gmra.mrb[48].mxu0 %v7075_v59  ;;  %v12103_v59 = vld [vmem:[%s15129_s10 + $0x384] ss:$8 sps:$4 sm:$0xff]  }
 0x5fa   : > { %8720 = vmatpush1.bf16.msra.mxu0 %v12029_v39  ;;  %8751 = vmatprep.mubr.bf16.mxu0 %v7078_v6  ;;  %v12098_v39 = vld [vmem:[%s15129_s10 + $0x370] ss:$8 sps:$4 sm:$0xff]   ;;  %v12106_v6 = vld [vmem:[%s15129_s10 + $0x394] ss:$8 sps:$4 sm:$0xff]  }
 0x5fb   : > { %8721 = vmatprep.subr.bf16.mxu0 %v12034_v32  ;;  %v12101_v32 = vld [vmem:[%s15129_s10 + $0x380] ss:$8 sps:$4 sm:$0xff]  }
 0x5fe   : > { %8722 = vmatpush1.bf16.msra.mxu0 %v12032_v7  ;;  %v12104_v7 = vld [vmem:[%s15129_s10 + $0x390] ss:$8 sps:$4 sm:$0xff]  }
 0x5ff   : > { %8723 = vmatprep.subr.bf16.mxu0 %v12037_v12  ;;  %v12109_v12 = vld [vmem:[%s15129_s10 + $0x3a4] ss:$8 sps:$4 sm:$0xff]  }
 0x602   : > { %8724 = vmatpush1.bf16.msra.mxu0 %v12035_v51  ;;  %v12107_v51 = vld [vmem:[%s15129_s10 + $0x3a0] ss:$8 sps:$4 sm:$0xff]  }
 0x603   : > { %8725 = vmatprep.subr.bf16.mxu0 %v12040_v37  ;;  %v12112_v37 = vld [vmem:[%s15129_s10 + $0x3b4] ss:$8 sps:$4 sm:$0xff]  }
 0x606   : > { %8726 = vmatpush1.bf16.msra.mxu0 %v12038_v50  ;;  %v12110_v50 = vld [vmem:[%s15129_s10 + $0x3b0] ss:$8 sps:$4 sm:$0xff]  }
 0x607   : > { %8727 = vmatprep.subr.bf16.mxu0 %v12043_v9  ;;  %v12115_v9 = vld [vmem:[%s15129_s10 + $0x3c4] ss:$8 sps:$4 sm:$0xff]  }
 0x60a   : > { %8728 = vmatpush1.bf16.msra.mxu0 %v12041_v52  ;;  %v12113_v52 = vld [vmem:[%s15129_s10 + $0x3c0] ss:$8 sps:$4 sm:$0xff]  }
 0x60b   : > { %8729 = vmatprep.subr.bf16.mxu0 %v12046_v25  ;;  %v12118_v25 = vld [vmem:[%s15129_s10 + $0x3d4] ss:$8 sps:$4 sm:$0xff]  }
 0x60e   : > { %8730 = vmatpush1.bf16.msra.mxu0 %v12044_v58  ;;  %v12116_v58 = vld [vmem:[%s15129_s10 + $0x3d0] ss:$8 sps:$4 sm:$0xff]  }
 0x60f   : > { %8731 = vmatprep.subr.bf16.mxu0 %v12049_v0  ;;  %v12121_v0 = vld [vmem:[%s15129_s10 + $0x3e4] ss:$8 sps:$4 sm:$0xff]  }
 0x612   : > { %8732 = vmatpush1.bf16.msra.mxu0 %v12047_v34  ;;  %v12119_v34 = vld [vmem:[%s15129_s10 + $0x3e0] ss:$8 sps:$4 sm:$0xff]  }
 0x613   : > { %8733 = vmatprep.subr.bf16.mxu0 %v12052_v27  ;;  %v12124_v27 = vld [vmem:[%s15129_s10 + $0x3f4] ss:$8 sps:$4 sm:$0xff]  }
 0x616   : > { %8734 = vmatpush1.bf16.msra.mxu0 %v12050_v1  ;;  %v12122_v1 = vld [vmem:[%s15129_s10 + $0x3f0] ss:$8 sps:$4 sm:$0xff]  }
 0x617   : > { %8735 = vmatprep.subr.bf16.mxu0 %v12055_v5  ;;  %v7020_v5 = vrot.slane %v14143_v3, %v7019_v31  ;;  %v12128_v3 = vld [vmem:[%s15129_s10 + $0x410] ss:$8 sps:$4 sm:$0xff]   ;;  %v12133_v31 = vld [vmem:[%s15129_s10 + $0x424] ss:$8 sps:$4 sm:$0xff]  }
 0x61a   : > { %8736 = vmatpush1.bf16.msra.mxu0 %v12053_v41  ;;  %v12127_v41 = vld [vmem:[%s15129_s10 + $0x404] ss:$8 sps:$4 sm:$0xff]  }
 0x61b   : > { %8737 = vmatprep.subr.bf16.mxu0 %v12058_v55  ;;  %v7032_v55 = vrot.slane %v14150_v56, %v14137_v21 }
 0x61e   : > { %8738 = vmatpush1.bf16.msra.mxu0 %v12056_v57  ;;  %v12125_v57 = vld [vmem:[%s15129_s10 + $0x400] ss:$8 sps:$4 sm:$0xff]  }
 0x61f   : > { %8739 = vmatprep.subr.bf16.mxu0 %v12061_v63  ;;  %v7079_v63 = vpack.c.bf16 %v7020_v5, %v7020_v5  ;;  %v12292_v5 = vld [vmem:[%s15127_s8 + $0x64] ss:$8 sps:$4 sm:$0xff]  }
 0x622   : > { %8740 = vmatpush1.bf16.msra.mxu0 %v12059_v38  ;;  %v7082_v38 = vpack.c.bf16 %v7032_v55, %v7032_v55  ;;  %v12296_v55 = vld [vmem:[%s15127_s8 + $0x70] ss:$8 sps:$4 sm:$0xff]  }
 0x623   : > { %8741 = vmatprep.subr.bf16.mxu0 %v12064_v33  ;;  %v12131_v33 = vld [vmem:[%s15129_s10 + $0x420] ss:$8 sps:$4 sm:$0xff]  }
 0x626   : > { %8742 = vmatpush1.bf16.msra.mxu0 %v12062_v35  ;;  %v12136_v35 = vld [vmem:[%s15129_s10 + $0x434] ss:$8 sps:$4 sm:$0xff]  }
 0x627   : > { %8743 = vmatprep.subr.bf16.mxu0 %v12067_v10  ;;  %v12134_v10 = vld [vmem:[%s15129_s10 + $0x430] ss:$8 sps:$4 sm:$0xff]  }
 0x62a   : > { %8744 = vmatpush1.bf16.msra.mxu0 %v12065_v16  ;;  %v12139_v16 = vld [vmem:[%s15129_s10 + $0x444] ss:$8 sps:$4 sm:$0xff]  }
 0x62b   : > { %8745 = vmatprep.subr.bf16.mxu0 %v12070_v44  ;;  %v12137_v44 = vld [vmem:[%s15129_s10 + $0x440] ss:$8 sps:$4 sm:$0xff]  }
 0x62e   : > { %8746 = vmatpush1.bf16.msra.mxu0 %v12068_v29  ;;  %v12142_v29 = vld [vmem:[%s15129_s10 + $0x454] ss:$8 sps:$4 sm:$0xff]  }
 0x62f   : > { %8747 = vmatprep.subr.bf16.mxu0 %v12073_v36  ;;  %v12140_v36 = vld [vmem:[%s15129_s10 + $0x450] ss:$8 sps:$4 sm:$0xff]  }
 0x632   : > { %8748 = vmatpush1.bf16.msra.mxu0 %v12071_v30  ;;  %v12145_v30 = vld [vmem:[%s15129_s10 + $0x464] ss:$8 sps:$4 sm:$0xff]  }
 0x633   : > { %8749 = vmatprep.subr.bf16.mxu0 %v12076_v49  ;;  %v12143_v49 = vld [vmem:[%s15129_s10 + $0x460] ss:$8 sps:$4 sm:$0xff]  }
 0x636   : > { %8750 = vmatpush1.bf16.msra.mxu0 %v12074_v24  ;;  %v12148_v24 = vld [vmem:[%s15129_s10 + $0x474] ss:$8 sps:$4 sm:$0xff]  }
 0x637   : > { %8760 = vmatprep.subr.bf16.mxu0 %v12079_v4  ;;  %v12151_v4 = vld [vmem:[%s15129_s10 + $0x484] ss:$8 sps:$4 sm:$0xff]  }
 0x639   : > { %8752 = vmatmul.mubr.bf16.vlgmr.msra.gmra.mrb[48].mxu0 %v7077_v54  ;;  %v12152_v54 = vld [vmem:[%s15129_s10 + $0x490] ss:$8 sps:$4 sm:$0xff]  }
 0x63a   : > { %8761 = vmatpush1.bf16.msra.mxu0 %v12077_v28  ;;  %8792 = vmatprep.mubr.bf16.mxu0 %v7080_v22  ;;  %v12154_v28 = vld [vmem:[%s15129_s10 + $0x494] ss:$8 sps:$4 sm:$0xff]   ;;  %v12155_v22 = vld [vmem:[%s15129_s10 + $0x4a0] ss:$8 sps:$4 sm:$0xff]  }
 0x63b   : > { %8762 = vmatprep.subr.bf16.mxu0 %v12082_v61  ;;  %v12157_v61 = vld [vmem:[%s15129_s10 + $0x4a4] ss:$8 sps:$4 sm:$0xff]  }
 0x63e   : > { %8763 = vmatpush1.bf16.msra.mxu0 %v12080_v47  ;;  %v12160_v47 = vld [vmem:[%s15129_s10 + $0x4b4] ss:$8 sps:$4 sm:$0xff]  }
 0x63f   : > { %8764 = vmatprep.subr.bf16.mxu0 %v12085_v2  ;;  %v12158_v2 = vld [vmem:[%s15129_s10 + $0x4b0] ss:$8 sps:$4 sm:$0xff]  }
 0x642   : > { %8765 = vmatpush1.bf16.msra.mxu0 %v12083_v42  ;;  %v12254_v42 = vld [vmem:[%s15127_s8] ss:$8 sps:$4 sm:$0xff]  }
 0x643   : > { %8766 = vmatprep.subr.bf16.mxu0 %v12088_v43  ;;  %v12256_v43 = vld [vmem:[%s15127_s8 + $0x4] ss:$8 sps:$4 sm:$0xff]  }
 0x644   : > { %9145 = vmatprep.subr.bf16.mxu1 %v12256_v43 }
 0x645   : > { %9146 = vmatpush1.bf16.msra.mxu1 %v12254_v42 }
 0x646   : > { %8767 = vmatpush1.bf16.msra.mxu0 %v12086_v13  ;;  %v12163_v13 = vld [vmem:[%s15129_s10 + $0x4c4] ss:$8 sps:$4 sm:$0xff]  }
 0x647   : > { %8768 = vmatprep.subr.bf16.mxu0 %v12091_v53  ;;  %v12161_v53 = vld [vmem:[%s15129_s10 + $0x4c0] ss:$8 sps:$4 sm:$0xff]  }
 0x64a   : > { %8769 = vmatpush1.bf16.msra.mxu0 %v12089_v14  ;;  %v12260_v14 = vld [vmem:[%s15127_s8 + $0x10] ss:$8 sps:$4 sm:$0xff]  }
 0x64b   : > { %8770 = vmatprep.subr.bf16.mxu0 %v12094_v45  ;;  %v12262_v45 = vld [vmem:[%s15127_s8 + $0x14] ss:$8 sps:$4 sm:$0xff]  }
 0x64c   : > { %9147 = vmatprep.subr.bf16.mxu1 %v12262_v45  ;;  %v12208_v45 = vld [vmem:[%s15129_s10 + $0x5b4] ss:$8 sps:$4 sm:$0xff]  }
 0x64d   : > { %9148 = vmatpush1.bf16.msra.mxu1 %v12260_v14  ;;  %v12203_v14 = vld [vmem:[%s15129_s10 + $0x5a0] ss:$8 sps:$4 sm:$0xff]  }
 0x64e   : > { %8771 = vmatpush1.bf16.msra.mxu0 %v12092_v11  ;;  %v12166_v11 = vld [vmem:[%s15129_s10 + $0x4d4] ss:$8 sps:$4 sm:$0xff]  }
 0x64f   : > { %8772 = vmatprep.subr.bf16.mxu0 %v12097_v18  ;;  %v12164_v18 = vld [vmem:[%s15129_s10 + $0x4d0] ss:$8 sps:$4 sm:$0xff]  }
 0x652   : > { %8773 = vmatpush1.bf16.msra.mxu0 %v12095_v8  ;;  %v12266_v8 = vld [vmem:[%s15127_s8 + $0x20] ss:$8 sps:$4 sm:$0xff]  }
 0x653   : > { %8774 = vmatprep.subr.bf16.mxu0 %v12100_v20  ;;  %v12268_v20 = vld [vmem:[%s15127_s8 + $0x24] ss:$8 sps:$4 sm:$0xff]  }
 0x654   : > { %9149 = vmatprep.subr.bf16.mxu1 %v12268_v20  ;;  %v12214_v20 = vld [vmem:[%s15129_s10 + $0x5d4] ss:$8 sps:$4 sm:$0xff]  }
 0x655   : > { %9150 = vmatpush1.bf16.msra.mxu1 %v12266_v8  ;;  %v12209_v8 = vld [vmem:[%s15129_s10 + $0x5c0] ss:$8 sps:$4 sm:$0xff]  }
 0x656   : > { %8775 = vmatpush1.bf16.msra.mxu0 %v12098_v39  ;;  %v12169_v39 = vld [vmem:[%s15129_s10 + $0x4e4] ss:$8 sps:$4 sm:$0xff]  }
 0x657   : > { %8776 = vmatprep.subr.bf16.mxu0 %v12103_v59  ;;  %v12167_v59 = vld [vmem:[%s15129_s10 + $0x4e0] ss:$8 sps:$4 sm:$0xff]  }
 0x65a   : > { %8777 = vmatpush1.bf16.msra.mxu0 %v12101_v32  ;;  %v12272_v32 = vld [vmem:[%s15127_s8 + $0x30] ss:$8 sps:$4 sm:$0xff]  }
 0x65b   : > { %8778 = vmatprep.subr.bf16.mxu0 %v12106_v6  ;;  %v12274_v6 = vld [vmem:[%s15127_s8 + $0x34] ss:$8 sps:$4 sm:$0xff]  }
 0x65c   : > { %9151 = vmatprep.subr.bf16.mxu1 %v12274_v6  ;;  %v12220_v6 = vld [vmem:[%s15129_s10 + $0x5f4] ss:$8 sps:$4 sm:$0xff]  }
 0x65d   : > { %9152 = vmatpush1.bf16.msra.mxu1 %v12272_v32  ;;  %v12215_v32 = vld [vmem:[%s15129_s10 + $0x5e0] ss:$8 sps:$4 sm:$0xff]  }
 0x65e   : > { %8779 = vmatpush1.bf16.msra.mxu0 %v12104_v7  ;;  %v12172_v7 = vld [vmem:[%s15129_s10 + $0x4f4] ss:$8 sps:$4 sm:$0xff]  }
 0x65f   : > { %8780 = vmatprep.subr.bf16.mxu0 %v12109_v12  ;;  %v12170_v12 = vld [vmem:[%s15129_s10 + $0x4f0] ss:$8 sps:$4 sm:$0xff]  }
 0x662   : > { %8781 = vmatpush1.bf16.msra.mxu0 %v12107_v51  ;;  %v12278_v51 = vld [vmem:[%s15127_s8 + $0x40] ss:$8 sps:$4 sm:$0xff]  }
 0x663   : > { %8782 = vmatprep.subr.bf16.mxu0 %v12112_v37  ;;  %v12280_v37 = vld [vmem:[%s15127_s8 + $0x44] ss:$8 sps:$4 sm:$0xff]  }
 0x664   : > { %9153 = vmatprep.subr.bf16.mxu1 %v12280_v37  ;;  %v7083_v37 = vpack.c.bf16 %v14168_v26, %v14168_v26  ;;  %v12355_v26 = vld [vmem:[%s15131_s12 + $0x48] sm:$0xff]  }
 0x665   : > { %9154 = vmatpush1.bf16.msra.mxu1 %v12278_v51  ;;  %v12221_v51 = vld [vmem:[%s15129_s10 + $0x600] ss:$8 sps:$4 sm:$0xff]  }
 0x666   : > { %8783 = vmatpush1.bf16.msra.mxu0 %v12110_v50  ;;  %v7028_v50 = vrot.slane %v14150_v56, %v14140_v60 }
 0x667   : > { %8784 = vmatprep.subr.bf16.mxu0 %v12115_v9  ;;  %v12175_v9 = vld [vmem:[%s15129_s10 + $0x504] ss:$8 sps:$4 sm:$0xff]  }
 0x668   : > { %v7081_v56 = vpack.c.bf16 %v7028_v50, %v7028_v50  ;;  %v12226_v50 = vld [vmem:[%s15129_s10 + $0x614] ss:$8 sps:$4 sm:$0xff]  }
 0x66a   : > { %8785 = vmatpush1.bf16.msra.mxu0 %v12113_v52  ;;  %v12173_v52 = vld [vmem:[%s15129_s10 + $0x500] ss:$8 sps:$4 sm:$0xff]  }
 0x66b   : > { %8786 = vmatprep.subr.bf16.mxu0 %v12118_v25  ;;  %v12284_v25 = vld [vmem:[%s15127_s8 + $0x50] ss:$8 sps:$4 sm:$0xff]  }
 0x66e   : > { %8787 = vmatpush1.bf16.msra.mxu0 %v12116_v58  ;;  %v12286_v58 = vld [vmem:[%s15127_s8 + $0x54] ss:$8 sps:$4 sm:$0xff]  }
 0x66f   : > { %8788 = vmatprep.subr.bf16.mxu0 %v12121_v0  ;;  %v12178_v0 = vld [vmem:[%s15129_s10 + $0x514] ss:$8 sps:$4 sm:$0xff]   ;;  %9155 = vmatprep.subr.bf16.mxu1 %v12286_v58  ;;  %v12224_v58 = vld [vmem:[%s15129_s10 + $0x610] ss:$8 sps:$4 sm:$0xff]  }
 0x670   : > { %9156 = vmatpush1.bf16.msra.mxu1 %v12284_v25  ;;  %v12354_v25 = vld [vmem:[%s15131_s12] sm:$0xff]  }
 0x671   : > { %9157 = vmatprep.subr.bf16.mxu1 %v12292_v5  ;;  %v12359_v5 = vld [vmem:[%s15131_s12 + $0x58] sm:$0xff]  }
 0x672   : > { %8789 = vmatpush1.bf16.msra.mxu0 %v12119_v34  ;;  %v7084_v34 = vpack.c.bf16 %v14163_v15, %v14163_v15  ;;  %v12181_v15 = vld [vmem:[%s15129_s10 + $0x524] ss:$8 sps:$4 sm:$0xff]  }
 0x673   : > { %8790 = vmatprep.subr.bf16.mxu0 %v12124_v27  ;;  %v12176_v27 = vld [vmem:[%s15129_s10 + $0x510] ss:$8 sps:$4 sm:$0xff]  }
 0x676   : > { %8791 = vmatpush1.bf16.msra.mxu0 %v12122_v1  ;;  %v12290_v1 = vld [vmem:[%s15127_s8 + $0x60] ss:$8 sps:$4 sm:$0xff]  }
 0x677   : > { %8801 = vmatprep.subr.bf16.mxu0 %v12127_v41  ;;  %9158 = vmatpush1.bf16.msra.mxu1 %v12290_v1  ;;  %v12179_v41 = vld [vmem:[%s15129_s10 + $0x520] ss:$8 sps:$4 sm:$0xff]   ;;  %v12358_v1 = vld [vmem:[%s15131_s12 + $0x10] sm:$0xff]  }
 0x679   : > { %8793 = vmatmul.mubr.bf16.vlgmr.msra.gmra.mrb[48].mxu0 %v7079_v63  ;;  %v12184_v63 = vld [vmem:[%s15129_s10 + $0x534] ss:$8 sps:$4 sm:$0xff]  }
 0x67a   : > { %8802 = vmatpush1.bf16.msra.mxu0 %v12125_v57  ;;  %8833 = vmatprep.mubr.bf16.mxu0 %v7082_v38  ;;  %v12298_v57 = vld [vmem:[%s15127_s8 + $0x74] ss:$8 sps:$4 sm:$0xff]   ;;  %v12302_v38 = vld [vmem:[%s15127_s8 + $0x80] ss:$8 sps:$4 sm:$0xff]  }
 0x67b   : > { %8803 = vmatprep.subr.bf16.mxu0 %v12130_v17  ;;  %9159 = vmatprep.subr.bf16.mxu1 %v12298_v57  ;;  %v12182_v17 = vld [vmem:[%s15129_s10 + $0x530] ss:$8 sps:$4 sm:$0xff]   ;;  %v12361_v57 = vld [vmem:[%s15131_s12 + $0x60] sm:$0xff]  }
 0x67c   : > { %9160 = vmatpush1.bf16.msra.mxu1 %v12296_v55  ;;  %v12360_v55 = vld [vmem:[%s15131_s12 + $0x18] sm:$0xff]  }
 0x67e   : > { %8804 = vmatpush1.bf16.msra.mxu0 %v12128_v3  ;;  %v12304_v3 = vld [vmem:[%s15127_s8 + $0x84] ss:$8 sps:$4 sm:$0xff]  }
 0x67f   : > { %8805 = vmatprep.subr.bf16.mxu0 %v12133_v31  ;;  %v12187_v31 = vld [vmem:[%s15129_s10 + $0x544] ss:$8 sps:$4 sm:$0xff]   ;;  %9161 = vmatprep.subr.bf16.mxu1 %v12304_v3 }
 0x680   : > { %9162 = vmatpush1.bf16.msra.mxu1 %v12302_v38  ;;  %v12362_v38 = vld [vmem:[%s15131_s12 + $0x20] sm:$0xff]   ;;  %v12363_v3 = vld [vmem:[%s15131_s12 + $0x68] sm:$0xff]  }
 0x682   : > { %8806 = vmatpush1.bf16.msra.mxu0 %v12131_v33  ;;  %v12185_v33 = vld [vmem:[%s15129_s10 + $0x540] ss:$8 sps:$4 sm:$0xff]  }
 0x683   : > { %8807 = vmatprep.subr.bf16.mxu0 %v12136_v35  ;;  %v12308_v35 = vld [vmem:[%s15127_s8 + $0x90] ss:$8 sps:$4 sm:$0xff]  }
 0x686   : > { %8808 = vmatpush1.bf16.msra.mxu0 %v12134_v10  ;;  %v12310_v10 = vld [vmem:[%s15127_s8 + $0x94] ss:$8 sps:$4 sm:$0xff]  }
 0x687   : > { %8809 = vmatprep.subr.bf16.mxu0 %v12139_v16  ;;  %v12190_v16 = vld [vmem:[%s15129_s10 + $0x554] ss:$8 sps:$4 sm:$0xff]   ;;  %9163 = vmatprep.subr.bf16.mxu1 %v12310_v10  ;;  %v12239_v10 = vld [vmem:[%s15129_s10 + $0x660] ss:$8 sps:$4 sm:$0xff]  }
 0x688   : > { %9164 = vmatpush1.bf16.msra.mxu1 %v12308_v35  ;;  %v12364_v35 = vld [vmem:[%s15131_s12 + $0x28] sm:$0xff]  }
 0x68a   : > { %8810 = vmatpush1.bf16.msra.mxu0 %v12137_v44  ;;  %v12188_v44 = vld [vmem:[%s15129_s10 + $0x550] ss:$8 sps:$4 sm:$0xff]  }
 0x68b   : > { %8811 = vmatprep.subr.bf16.mxu0 %v12142_v29  ;;  %v12314_v29 = vld [vmem:[%s15127_s8 + $0xa0] ss:$8 sps:$4 sm:$0xff]  }
 0x68e   : > { %8812 = vmatpush1.bf16.msra.mxu0 %v12140_v36  ;;  %v12316_v36 = vld [vmem:[%s15127_s8 + $0xa4] ss:$8 sps:$4 sm:$0xff]  }
 0x68f   : > { %8813 = vmatprep.subr.bf16.mxu0 %v12145_v30  ;;  %v12193_v30 = vld [vmem:[%s15129_s10 + $0x564] ss:$8 sps:$4 sm:$0xff]   ;;  %9165 = vmatprep.subr.bf16.mxu1 %v12316_v36  ;;  %v12245_v36 = vld [vmem:[%s15129_s10 + $0x680] ss:$8 sps:$4 sm:$0xff]  }
 0x690   : > { %9166 = vmatpush1.bf16.msra.mxu1 %v12314_v29  ;;  %v12247_v29 = vld [vmem:[%s15129_s10 + $0x684] ss:$8 sps:$4 sm:$0xff]  }
 0x692   : > { %8814 = vmatpush1.bf16.msra.mxu0 %v12143_v49  ;;  %v12191_v49 = vld [vmem:[%s15129_s10 + $0x560] ss:$8 sps:$4 sm:$0xff]  }
 0x693   : > { %8815 = vmatprep.subr.bf16.mxu0 %v12148_v24  ;;  %v12320_v24 = vld [vmem:[%s15127_s8 + $0xb0] ss:$8 sps:$4 sm:$0xff]  }
 0x696   : > { %8816 = vmatpush1.bf16.msra.mxu0 %v12146_v40  ;;  %v12322_v40 = vld [vmem:[%s15127_s8 + $0xb4] ss:$8 sps:$4 sm:$0xff]  }
 0x697   : > { %8817 = vmatprep.subr.bf16.mxu0 %v12151_v4  ;;  %v12196_v4 = vld [vmem:[%s15129_s10 + $0x574] ss:$8 sps:$4 sm:$0xff]   ;;  %9167 = vmatprep.subr.bf16.mxu1 %v12322_v40  ;;  %v12251_v40 = vld [vmem:[%s15129_s10 + $0x6a0] ss:$8 sps:$4 sm:$0xff]  }
 0x698   : > { %9168 = vmatpush1.bf16.msra.mxu1 %v12320_v24  ;;  %v12253_v24 = vld [vmem:[%s15129_s10 + $0x6a4] ss:$8 sps:$4 sm:$0xff]  }
 0x69a   : > { %8818 = vmatpush1.bf16.msra.mxu0 %v12149_v48  ;;  %v12194_v48 = vld [vmem:[%s15129_s10 + $0x570] ss:$8 sps:$4 sm:$0xff]  }
 0x69b   : > { %8819 = vmatprep.subr.bf16.mxu0 %v12154_v28  ;;  %v12199_v28 = vld [vmem:[%s15129_s10 + $0x584] ss:$8 sps:$4 sm:$0xff]  }
 0x69e   : > { %8820 = vmatpush1.bf16.msra.mxu0 %v12152_v54  ;;  %v8971_v54 = vld [vmem:[%s544_s27] sm:$0x3]  ;;  %s9577_s27 = sshll.u32 %s530_s25, 4  ;;  %s9578_s27 = int_to_ptr.vmem [resolvable:$true] %s9577_s27 }
 0x69f   : > { %8821 = vmatprep.subr.bf16.mxu0 %v12157_v61  ;;  %v8980_v61 = vrot.slane %v8971_v54, %v14137_v21  ;;  %s12443_s21 = scalar_lea.vmem %s9578_s27, 16  ;;  %p12450_p4 = scmp.lt.s32.totalorder %s9578_s27, %s12448_s29 }
 0x6a0   : > { %p12444_p12 = scmp.ne.s32.totalorder %s9578_s27, %s12443_s21 }
 0x6a1   : > { %v8984_v42 = vpack.c.bf16 %v8980_v61, %v8980_v61  ;;  %v12271_v61 = vld [vmem:[%s15129_s10 + $0x6d4] ss:$8 sps:$4 sm:$0xff]  }
 0x6a2   : > { %8822 = vmatpush1.bf16.msra.mxu0 %v12155_v22  ;;  %v8976_v22 = vrot.slane %v8971_v54, %v14140_v60  ;;  %v12263_v54 = vld [vmem:[%s15129_s10 + $0x6c0] ss:$8 sps:$4 sm:$0xff]   ;;  %p12445_p2 = pnand %p12444_p12, %p15205_p1 }
 0x6a3   : > { %8823 = vmatprep.subr.bf16.mxu0 %v12160_v47  ;;  %v12197_v47 = vld [vmem:[%s15129_s10 + $0x580] ss:$8 sps:$4 sm:$0xff]   ;;  %10503 = vmatprep.mubr.msk.bf16.mxu1 %vm9141_vm8, %v8984_v42  ;;  %v12283_v42 = vld [vmem:[%s15129_s10 + $0x6f4] ss:$8 sps:$4 sm:$0xff]  }
 0x6a4   : > { %v8983_v43 = vpack.c.bf16 %v8976_v22, %v8976_v22  ;;  %v12269_v22 = vld [vmem:[%s15129_s10 + $0x6d0] ss:$8 sps:$4 sm:$0xff]   ;;  %p12446_p3 = pneg %p12445_p2 }
 0x6a6   : > { %8824 = vmatpush1.bf16.msra.mxu0 %v12158_v2  ;;  %v12202_v2 = vld [vmem:[%s15129_s10 + $0x594] ss:$8 sps:$4 sm:$0xff]   ;;  %9178 = vmatmul.mubr.bf16.vlgmr.msra.gmra.mrb[176].mxu1 %v8983_v43  ;;  %v12281_v43 = vld [vmem:[%s15129_s10 + $0x6f0] ss:$8 sps:$4 sm:$0xff]  }
 0x6a7   : > { %8825 = vmatprep.subr.bf16.mxu0 %v12163_v13  ;;  %v12200_v13 = vld [vmem:[%s15129_s10 + $0x590] ss:$8 sps:$4 sm:$0xff]  }
 0x6aa   : > { %8826 = vmatpush1.bf16.msra.mxu0 %v12161_v53  ;;  %v12205_v53 = vld [vmem:[%s15129_s10 + $0x5a4] ss:$8 sps:$4 sm:$0xff]  }
 0x6ab   : > { %8827 = vmatprep.subr.bf16.mxu0 %v12166_v11  ;;  %v12206_v11 = vld [vmem:[%s15129_s10 + $0x5b0] ss:$8 sps:$4 sm:$0xff]  }
 0x6ae   : > { %8828 = vmatpush1.bf16.msra.mxu0 %v12164_v18  ;;  %v12211_v18 = vld [vmem:[%s15129_s10 + $0x5c4] ss:$8 sps:$4 sm:$0xff]  }
 0x6af   : > { %8829 = vmatprep.subr.bf16.mxu0 %v12169_v39  ;;  %v12212_v39 = vld [vmem:[%s15129_s10 + $0x5d0] ss:$8 sps:$4 sm:$0xff]  }
 0x6b2   : > { %8830 = vmatpush1.bf16.msra.mxu0 %v12167_v59  ;;  %v12217_v59 = vld [vmem:[%s15129_s10 + $0x5e4] ss:$8 sps:$4 sm:$0xff]  }
 0x6b3   : > { %8831 = vmatprep.subr.bf16.mxu0 %v12172_v7  ;;  %v12218_v7 = vld [vmem:[%s15129_s10 + $0x5f0] ss:$8 sps:$4 sm:$0xff]  }
 0x6b6   : > { %8832 = vmatpush1.bf16.msra.mxu0 %v12170_v12  ;;  %v12223_v12 = vld [vmem:[%s15129_s10 + $0x604] ss:$8 sps:$4 sm:$0xff]  }
 0x6b7   : > { %8842 = vmatprep.subr.bf16.mxu0 %v12175_v9  ;;  %v7086_v9 = vpack.c.bf16 %v14173_v62, %v14173_v62  ;;  %v12229_v62 = vld [vmem:[%s15129_s10 + $0x624] ss:$8 sps:$4 sm:$0xff]  }
 0x6b9   : > { %8834 = vmatmul.mubr.bf16.vlgmr.msra.gmra.mrb[48].mxu0 %v7081_v56  ;;  %v12356_v56 = vld [vmem:[%s15131_s12 + $0x8] sm:$0xff]  }
 0x6ba   : > { %8843 = vmatpush1.bf16.msra.mxu0 %v12173_v52  ;;  %8874 = vmatprep.mubr.bf16.mxu0 %v7084_v34  ;;  %v12353_v52 = vld [vmem:[%s15131_s12 + $0x40] sm:$0xff]  }
 0x6bb   : > { %8844 = vmatprep.subr.bf16.mxu0 %v12178_v0  ;;  %11171 = vmatprep.subr.bf16.mxu1 %v12353_v52  ;;  %v12357_v0 = vld [vmem:[%s15131_s12 + $0x50] sm:$0xff]   ;;  %v12227_v34 = vld [vmem:[%s15129_s10 + $0x620] ss:$8 sps:$4 sm:$0xff]  }
 0x6bc   : > { %11172 = vmatpush3.bf16.msra.mxu1 %v12354_v25  ;;  %v12323_v52 = vld [vmem:[%s15129_s10 + $0x760] ss:$8 sps:$4 sm:$0xff]   ;;  %v12328_v25 = vld [vmem:[%s15129_s10 + $0x774] ss:$8 sps:$4 sm:$0xff]  }
 0x6bd   : > { %11173 = vmatprep.subr.bf16.mxu1 %v12355_v26  ;;  %v12326_v26 = vld [vmem:[%s15129_s10 + $0x770] ss:$8 sps:$4 sm:$0xff]  }
 0x6be   : > { %8845 = vmatpush1.bf16.msra.mxu0 %v12176_v27  ;;  %v12232_v27 = vld [vmem:[%s15129_s10 + $0x634] ss:$8 sps:$4 sm:$0xff]  }
 0x6bf   : > { %8846 = vmatprep.subr.bf16.mxu0 %v12181_v15  ;;  %v12230_v15 = vld [vmem:[%s15129_s10 + $0x630] ss:$8 sps:$4 sm:$0xff]  }
 0x6c0   : > { %11174 = vmatpush3.bf16.msra.mxu1 %v12356_v56  ;;  %v12334_v56 = vld [vmem:[%s15129_s10 + $0x794] ss:$8 sps:$4 sm:$0xff]  }
 0x6c1   : > { %11175 = vmatprep.subr.bf16.mxu1 %v12357_v0  ;;  %v12332_v0 = vld [vmem:[%s15129_s10 + $0x790] ss:$8 sps:$4 sm:$0xff]  }
 0x6c2   : > { %8847 = vmatpush1.bf16.msra.mxu0 %v12179_v41  ;;  %v12235_v41 = vld [vmem:[%s15129_s10 + $0x644] ss:$8 sps:$4 sm:$0xff]  }
 0x6c3   : > { %8848 = vmatprep.subr.bf16.mxu0 %v12184_v63  ;;  %v12233_v63 = vld [vmem:[%s15129_s10 + $0x640] ss:$8 sps:$4 sm:$0xff]  }
 0x6c4   : > { %11176 = vmatpush3.bf16.msra.mxu1 %v12358_v1  ;;  %v12340_v1 = vld [vmem:[%s15129_s10 + $0x7b4] ss:$8 sps:$4 sm:$0xff]  }
 0x6c5   : > { %11177 = vmatprep.subr.bf16.mxu1 %v12359_v5  ;;  %v12338_v5 = vld [vmem:[%s15129_s10 + $0x7b0] ss:$8 sps:$4 sm:$0xff]  }
 0x6c6   : > { %8849 = vmatpush1.bf16.msra.mxu0 %v12182_v17  ;;  %v12238_v17 = vld [vmem:[%s15129_s10 + $0x654] ss:$8 sps:$4 sm:$0xff]  }
 0x6c7   : > { %8850 = vmatprep.subr.bf16.mxu0 %v12187_v31  ;;  %v12236_v31 = vld [vmem:[%s15129_s10 + $0x650] ss:$8 sps:$4 sm:$0xff]  }
 0x6c8   : > { %11178 = vmatpush3.bf16.msra.mxu1 %v12360_v55  ;;  %v12346_v55 = vld [vmem:[%s15129_s10 + $0x7d4] ss:$8 sps:$4 sm:$0xff]  }
 0x6c9   : > { %11179 = vmatprep.subr.bf16.mxu1 %v12361_v57  ;;  %v12344_v57 = vld [vmem:[%s15129_s10 + $0x7d0] ss:$8 sps:$4 sm:$0xff]  }
 0x6ca   : > { %8851 = vmatpush1.bf16.msra.mxu0 %v12185_v33  ;;  %v12241_v33 = vld [vmem:[%s15129_s10 + $0x664] ss:$8 sps:$4 sm:$0xff]  }
 0x6cb   : > { %8852 = vmatprep.subr.bf16.mxu0 %v12190_v16  ;;  %v12244_v16 = vld [vmem:[%s15129_s10 + $0x674] ss:$8 sps:$4 sm:$0xff]  }
 0x6cc   : > { %11180 = vmatpush3.bf16.msra.mxu1 %v12362_v38  ;;  %v12352_v38 = vld [vmem:[%s15129_s10 + $0x7f4] ss:$8 sps:$4 sm:$0xff]  }
 0x6cd   : > { %11181 = vmatprep.subr.bf16.mxu1 %v12363_v3  ;;  %v12350_v3 = vld [vmem:[%s15129_s10 + $0x7f0] ss:$8 sps:$4 sm:$0xff]  }
 0x6ce   : > { %8853 = vmatpush1.bf16.msra.mxu0 %v12188_v44  ;;  %v12242_v44 = vld [vmem:[%s15129_s10 + $0x670] ss:$8 sps:$4 sm:$0xff]  }
 0x6cf   : > { %8854 = vmatprep.subr.bf16.mxu0 %v12193_v30  ;;  %v12250_v30 = vld [vmem:[%s15129_s10 + $0x694] ss:$8 sps:$4 sm:$0xff]  }
 0x6d0   : > { %11182 = vmatpush3.bf16.msra.mxu1 %v12364_v35 }
 0x6d2   : > { %8855 = vmatpush1.bf16.msra.mxu0 %v12191_v49  ;;  %v12248_v49 = vld [vmem:[%s15129_s10 + $0x690] ss:$8 sps:$4 sm:$0xff]  }
 0x6d3   : > { %8856 = vmatprep.subr.bf16.mxu0 %v12196_v4  ;;  %v12259_v4 = vld [vmem:[%s15129_s10 + $0x6b4] ss:$8 sps:$4 sm:$0xff]  }
 0x6d6   : > { %8857 = vmatpush1.bf16.msra.mxu0 %v12194_v48  ;;  %v12257_v48 = vld [vmem:[%s15129_s10 + $0x6b0] ss:$8 sps:$4 sm:$0xff]  }
 0x6d7   : > { %8858 = vmatprep.subr.bf16.mxu0 %v12199_v28  ;;  %v12265_v28 = vld [vmem:[%s15129_s10 + $0x6c4] ss:$8 sps:$4 sm:$0xff]  }
 0x6da   : > { %8859 = vmatpush1.bf16.msra.mxu0 %v12197_v47  ;;  %v12277_v47 = vld [vmem:[%s15129_s10 + $0x6e4] ss:$8 sps:$4 sm:$0xff]  }
 0x6db   : > { %8860 = vmatprep.subr.bf16.mxu0 %v12202_v2  ;;  %v12275_v2 = vld [vmem:[%s15129_s10 + $0x6e0] ss:$8 sps:$4 sm:$0xff]  }
 0x6de   : > { %8861 = vmatpush1.bf16.msra.mxu0 %v12200_v13  ;;  %v12289_v13 = vld [vmem:[%s15129_s10 + $0x704] ss:$8 sps:$4 sm:$0xff]  }
 0x6df   : > { %8862 = vmatprep.subr.bf16.mxu0 %v12205_v53  ;;  %v12365_v53 = vld [vmem:[%s15131_s12 + $0x70] sm:$0xff]  }
 0x6e0   : > { %11183 = vmatprep.subr.bf16.mxu1 %v12365_v53  ;;  %v12378_v53 = vld [vmem:[%s15131_s12 + $0xa0] sm:$0xff]  }
 0x6e2   : > { %8863 = vmatpush1.bf16.msra.mxu0 %v12203_v14  ;;  %v12366_v14 = vld [vmem:[%s15131_s12 + $0x30] sm:$0xff]  }
 0x6e3   : > { %8864 = vmatprep.subr.bf16.mxu0 %v12208_v45  ;;  %v12367_v45 = vld [vmem:[%s15131_s12 + $0x78] sm:$0xff]   ;;  %11184 = vmatpush3.bf16.msra.mxu1 %v12366_v14  ;;  %v12379_v14 = vld [vmem:[%s15131_s12 + $0xe8] sm:$0xff]  }
 0x6e4   : > { %11185 = vmatprep.subr.bf16.mxu1 %v12367_v45  ;;  %v12380_v45 = vld [vmem:[%s15131_s12 + $0xa8] sm:$0xff]  }
 0x6e6   : > { %8865 = vmatpush1.bf16.msra.mxu0 %v12206_v11  ;;  %v12287_v11 = vld [vmem:[%s15129_s10 + $0x700] ss:$8 sps:$4 sm:$0xff]  }
 0x6e7   : > { %8866 = vmatprep.subr.bf16.mxu0 %v12211_v18  ;;  %v7085_v18 = vpack.c.bf16 %v14178_v23, %v14178_v23  ;;  %v12293_v23 = vld [vmem:[%s15129_s10 + $0x710] ss:$8 sps:$4 sm:$0xff]  }
 0x6ea   : > { %8867 = vmatpush1.bf16.msra.mxu0 %v12209_v8  ;;  %v12295_v8 = vld [vmem:[%s15129_s10 + $0x714] ss:$8 sps:$4 sm:$0xff]  }
 0x6eb   : > { %8868 = vmatprep.subr.bf16.mxu0 %v12214_v20  ;;  %v12368_v20 = vld [vmem:[%s15131_s12 + $0x38] sm:$0xff]  }
 0x6ec   : > { %11186 = vmatpush3.bf16.msra.mxu1 %v12368_v20  ;;  %v12384_v20 = vld [vmem:[%s15131_s12 + $0xb8] sm:$0xff]  }
 0x6ee   : > { %8869 = vmatpush1.bf16.msra.mxu0 %v12212_v39  ;;  %v7088_v39 = vpack.c.bf16 %v14183_v19, %v14183_v19  ;;  %v12299_v19 = vld [vmem:[%s15129_s10 + $0x720] ss:$8 sps:$4 sm:$0xff]  }
 0x6ef   : > { %8870 = vmatprep.subr.bf16.mxu0 %v12217_v59  ;;  %v12369_v59 = vld [vmem:[%s15131_s12 + $0xc0] sm:$0xff]  }
 0x6f0   : > { %11193 = vmatprep.subr.bf16.mxu1 %v12369_v59 }
 0x6f2   : > { %8871 = vmatpush1.bf16.msra.mxu0 %v12215_v32  ;;  %v12301_v32 = vld [vmem:[%s15129_s10 + $0x724] ss:$8 sps:$4 sm:$0xff]  }
 0x6f3   : > { %8872 = vmatprep.subr.bf16.mxu0 %v12220_v6  ;;  %v12307_v6 = vld [vmem:[%s15129_s10 + $0x734] ss:$8 sps:$4 sm:$0xff]  }
 0x6f6   : > { %8873 = vmatpush1.bf16.msra.mxu0 %v12218_v7  ;;  %v12305_v7 = vld [vmem:[%s15129_s10 + $0x730] ss:$8 sps:$4 sm:$0xff]  }
 0x6f7   : > { %8883 = vmatprep.subr.bf16.mxu0 %v12223_v12  ;;  %v12313_v12 = vld [vmem:[%s15129_s10 + $0x744] ss:$8 sps:$4 sm:$0xff]  }
 0x6f9   : > { %8875 = vmatmul.mubr.bf16.vlgmr.msra.gmra.mrb[48].mxu0 %v7083_v37  ;;  %v12319_v37 = vld [vmem:[%s15129_s10 + $0x754] ss:$8 sps:$4 sm:$0xff]  }
 0x6fa   : > { %8884 = vmatpush1.bf16.msra.mxu0 %v12221_v51  ;;  %8915 = vmatprep.mubr.bf16.mxu0 %v7086_v9  ;;  %v12311_v51 = vld [vmem:[%s15129_s10 + $0x740] ss:$8 sps:$4 sm:$0xff]   ;;  %v12325_v9 = vld [vmem:[%s15129_s10 + $0x764] ss:$8 sps:$4 sm:$0xff]  }
 0x6fb   : > { %8885 = vmatprep.subr.bf16.mxu0 %v12226_v50  ;;  %v12317_v50 = vld [vmem:[%s15129_s10 + $0x750] ss:$8 sps:$4 sm:$0xff]  }
 0x6fe   : > { %8886 = vmatpush1.bf16.msra.mxu0 %v12224_v58  ;;  %v12331_v58 = vld [vmem:[%s15129_s10 + $0x784] ss:$8 sps:$4 sm:$0xff]  }
 0x6ff   : > { %8887 = vmatprep.subr.bf16.mxu0 %v12229_v62  ;;  %v12329_v62 = vld [vmem:[%s15129_s10 + $0x780] ss:$8 sps:$4 sm:$0xff]  }
 0x702   : > { %8888 = vmatpush1.bf16.msra.mxu0 %v12227_v34  ;;  %v12337_v34 = vld [vmem:[%s15129_s10 + $0x7a4] ss:$8 sps:$4 sm:$0xff]  }
 0x703   : > { %8889 = vmatprep.subr.bf16.mxu0 %v12232_v27  ;;  %v12335_v27 = vld [vmem:[%s15129_s10 + $0x7a0] ss:$8 sps:$4 sm:$0xff]  }
 0x706   : > { %8890 = vmatpush1.bf16.msra.mxu0 %v12230_v15  ;;  %v12343_v15 = vld [vmem:[%s15129_s10 + $0x7c4] ss:$8 sps:$4 sm:$0xff]  }
 0x707   : > { %8891 = vmatprep.subr.bf16.mxu0 %v12235_v41  ;;  %v12341_v41 = vld [vmem:[%s15129_s10 + $0x7c0] ss:$8 sps:$4 sm:$0xff]  }
 0x70a   : > { %8892 = vmatpush1.bf16.msra.mxu0 %v12233_v63  ;;  %v12349_v63 = vld [vmem:[%s15129_s10 + $0x7e4] ss:$8 sps:$4 sm:$0xff]  }
 0x70b   : > { %8893 = vmatprep.subr.bf16.mxu0 %v12238_v17  ;;  %v12347_v17 = vld [vmem:[%s15129_s10 + $0x7e0] ss:$8 sps:$4 sm:$0xff]  }
 0x70e   : > { %8894 = vmatpush1.bf16.msra.mxu0 %v12236_v31  ;;  %v7087_v31 = vpack.c.bf16 %v14195_v46, %v14195_v46 }
 0x70f   : > { %8895 = vmatprep.subr.bf16.mxu0 %v12241_v33  ;;  %v9009_v33 = vld [vmem:[%s15128_s9] sm:$0x3] }
 0x710   : > { %v9134_v35 = vrot.slane %v9009_v33, %v14140_v60 }
 0x712   : > { %8896 = vmatpush1.bf16.msra.mxu0 %v12239_v10  ;;  %v9138_v10 = vrot.slane %v9009_v33, %v14137_v21 }
 0x713   : > { %8897 = vmatprep.subr.bf16.mxu0 %v12244_v16 }
 0x716   : > { %8898 = vmatpush1.bf16.msra.mxu0 %v12242_v44 }
 0x717   : > { %8899 = vmatprep.subr.bf16.mxu0 %v12247_v29 }
 0x71a   : > { %8900 = vmatpush1.bf16.msra.mxu0 %v12245_v36 }
 0x71b   : > { %8901 = vmatprep.subr.bf16.mxu0 %v12250_v30 }
 0x71e   : > { %8902 = vmatpush1.bf16.msra.mxu0 %v12248_v49 }
 0x71f   : > { %8903 = vmatprep.subr.bf16.mxu0 %v12253_v24 }
 0x722   : > { %8904 = vmatpush1.bf16.msra.mxu0 %v12251_v40 }
 0x723   : > { %8905 = vmatprep.subr.bf16.mxu0 %v12259_v4 }
 0x726   : > { %8906 = vmatpush1.bf16.msra.mxu0 %v12257_v48 }
 0x727   : > { %8907 = vmatprep.subr.bf16.mxu0 %v12265_v28 }
 0x72a   : > { %8908 = vmatpush1.bf16.msra.mxu0 %v12263_v54  ;;  %v12370_v54 = vld [vmem:[%s15131_s12 + $0x80] sm:$0xff]  }
 0x72b   : > { %8909 = vmatprep.subr.bf16.mxu0 %v12271_v61  ;;  %v12371_v61 = vld [vmem:[%s15131_s12 + $0xc8] sm:$0xff]  }
 0x72e   : > { %8910 = vmatpush1.bf16.msra.mxu0 %v12269_v22  ;;  %v12372_v22 = vld [vmem:[%s15131_s12 + $0x88] sm:$0xff]  }
 0x72f   : > { %8911 = vmatprep.subr.bf16.mxu0 %v12277_v47  ;;  %v12373_v47 = vld [vmem:[%s15131_s12 + $0xd0] sm:$0xff]  }
 0x732   : > { %8912 = vmatpush1.bf16.msra.mxu0 %v12275_v2  ;;  %v12374_v2 = vld [vmem:[%s15131_s12 + $0x90] sm:$0xff]  }
 0x733   : > { %8913 = vmatprep.subr.bf16.mxu0 %v12283_v42  ;;  %v12375_v42 = vld [vmem:[%s15131_s12 + $0xd8] sm:$0xff]  }
 0x736   : > { %8914 = vmatpush1.bf16.msra.mxu0 %v12281_v43  ;;  %v12376_v43 = vld [vmem:[%s15131_s12 + $0x98] sm:$0xff]  }
 0x737   : > { %8924 = vmatprep.subr.bf16.mxu0 %v12289_v13  ;;  %v12377_v13 = vld [vmem:[%s15131_s12 + $0xe0] sm:$0xff]  }
 0x739   : > { %8916 = vmatmul.mubr.bf16.vlgmr.msra.gmra.mrb[48].mxu0 %v7085_v18  ;;  %v12382_v18 = vld [vmem:[%s15131_s12 + $0xb0] sm:$0xff]  }
 0x73a   : > { %8925 = vmatpush1.bf16.msra.mxu0 %v12287_v11  ;;  %8956 = vmatprep.mubr.bf16.mxu0 %v7088_v39  ;;  %v12381_v11 = vld [vmem:[%s15131_s12 + $0xf0] sm:$0xff]   ;;  %v7345_v39 = vld [vmem:[%s15130_s11] sm:$0x3] }
 0x73b   : > { %8926 = vmatprep.subr.bf16.mxu0 %v12295_v8  ;;  %v12383_v8 = vld [vmem:[%s15131_s12 + $0xf8] sm:$0xff]   ;;  %v8630_v59 = vrot.slane %v7345_v39, %v14140_v60 }
 0x73e   : > { %8927 = vmatpush1.bf16.msra.mxu0 %v12293_v23  ;;  %v8634_v23 = vrot.slane %v7345_v39, %v14137_v21 }
 0x73f   : > { %8928 = vmatprep.subr.bf16.mxu0 %v12301_v32 }
 0x742   : > { %8929 = vmatpush1.bf16.msra.mxu0 %v12299_v19 }
 0x743   : > { %8930 = vmatprep.subr.bf16.mxu0 %v12307_v6 }
 0x746   : > { %8931 = vmatpush1.bf16.msra.mxu0 %v12305_v7 }
 0x747   : > { %8932 = vmatprep.subr.bf16.mxu0 %v12313_v12 }
 0x74a   : > { %8933 = vmatpush1.bf16.msra.mxu0 %v12311_v51 }
 0x74b   : > { %8934 = vmatprep.subr.bf16.mxu0 %v12319_v37 }
 0x74e   : > { %8935 = vmatpush1.bf16.msra.mxu0 %v12317_v50 }
 0x74f   : > { %8936 = vmatprep.subr.bf16.mxu0 %v12325_v9 }
 0x752   : > { %8937 = vmatpush1.bf16.msra.mxu0 %v12323_v52 }
 0x753   : > { %8938 = vmatprep.subr.bf16.mxu0 %v12328_v25 }
 0x756   : > { %8939 = vmatpush1.bf16.msra.mxu0 %v12326_v26 }
 0x757   : > { %8940 = vmatprep.subr.bf16.mxu0 %v12331_v58 }
 0x75a   : > { %8941 = vmatpush1.bf16.msra.mxu0 %v12329_v62 }
 0x75b   : > { %8942 = vmatprep.subr.bf16.mxu0 %v12334_v56 }
 0x75e   : > { %8943 = vmatpush1.bf16.msra.mxu0 %v12332_v0  ;;  %v9260_v0 = vld [vmem:[%s15132_s13] sm:$0x1] }
 0x75f   : > { %8944 = vmatprep.subr.bf16.mxu0 %v12337_v34 }
 0x762   : > { %8945 = vmatpush1.bf16.msra.mxu0 %v12335_v27 }
 0x763   : > { %8946 = vmatprep.subr.bf16.mxu0 %v12340_v1 }
 0x766   : > { %8947 = vmatpush1.bf16.msra.mxu0 %v12338_v5 }
 0x767   : > { %8948 = vmatprep.subr.bf16.mxu0 %v12343_v15 }
 0x76a   : > { %8949 = vmatpush1.bf16.msra.mxu0 %v12341_v41 }
 0x76b   : > { %8950 = vmatprep.subr.bf16.mxu0 %v12346_v55 }
 0x76e   : > { %8951 = vmatpush1.bf16.msra.mxu0 %v12344_v57 }
 0x76f   : > { %8952 = vmatprep.subr.bf16.mxu0 %v12349_v63 }
 0x772   : > { %8953 = vmatpush1.bf16.msra.mxu0 %v12347_v17 }
 0x773   : > { %8954 = vmatprep.subr.bf16.mxu0 %v12352_v38 }
 0x776   : > { %8955 = vmatpush1.bf16.msra.mxu0 %v12350_v3 }
 0x779   : > { %8957 = vmatmul.mubr.bf16.vlgmr.msra.gmra.mrb[48].mxu0 %v7087_v31  ;;  %v9179_v16 = vpop.f32.mrb[176].mxu1 }
 0x77a   : > { %v9180_v44 = vadd.f32 %v9179_v16, %v9134_v35  ;;  %v9181_v29 = vpop.f32.mrb[177].mxu1 }
 0x77b   : > { %v9182_v36 = vadd.f32 %v9181_v29, %v9138_v10  ;;  %v9183_v30 = vpop.f32.mrb[178].mxu1 }
 0x77c   : > { %vm9186_vm9 = vcmp.ge.f32.partialorder %v9180_v44, 0.0  ;;  %v9188_v49 = vmul.f32 0.2, %v9180_v44  ;;  %v9184_v24 = vpop.f32.mrb[179].mxu1 }
 0x77d   : > { %vm9187_vm10 = vcmp.ge.f32.partialorder %v9182_v36, 0.0  ;;  %v9189_v40 = vmul.f32 0.2, %v9182_v36 }
 0x77e   : > { %v9190_v46 = vsel %vm9186_vm9, %v9180_v44, %v9188_v49 }
 0x77f   : > { %v9192_v4 = vpack.c.bf16 %v9190_v46, %v9190_v46  ;;  %v9191_v48 = vsel %vm9187_vm10, %v9182_v36, %v9189_v40 }
 0x780   : > { %v9193_v28 = vpack.c.bf16 %v9191_v48, %v9191_v48 }
 0x782   : > { %9485 = vmatprep.mubr.bf16.mxu1 %v9193_v28 }
 0x783   : > { %9486 = vmatmul.mubr.bf16.vlgmr.msra.gmra.mrb[180].mxu1 %v9192_v4 }
 0x784   : > { %11194 = vmatpush3.bf16.msra.mxu1 %v12370_v54 }
 0x785   : > { %11195 = vmatprep.subr.bf16.mxu1 %v12371_v61 }
 0x788   : > { %11196 = vmatpush3.bf16.msra.mxu1 %v12372_v22 }
 0x789   : > { %11197 = vmatprep.subr.bf16.mxu1 %v12373_v47 }
 0x78c   : > { %11198 = vmatpush3.bf16.msra.mxu1 %v12374_v2 }
 0x78d   : > { %11199 = vmatprep.subr.bf16.mxu1 %v12375_v42 }
 0x790   : > { %11200 = vmatpush3.bf16.msra.mxu1 %v12376_v43 }
 0x791   : > { %11201 = vmatprep.subr.bf16.mxu1 %v12377_v13 }
 0x794   : > { %11202 = vmatpush3.bf16.msra.mxu1 %v12378_v53 }
 0x795   : > { %11203 = vmatprep.subr.bf16.mxu1 %v12379_v14 }
 0x798   : > { %11204 = vmatpush3.bf16.msra.mxu1 %v12380_v45 }
 0x799   : > { %11205 = vmatprep.subr.bf16.mxu1 %v12381_v11 }
 0x79c   : > { %11206 = vmatpush3.bf16.msra.mxu1 %v12382_v18 }
 0x79d   : > { %11207 = vmatprep.subr.bf16.mxu1 %v12383_v8 }
 0x7a0   : > { %11208 = vmatpush3.bf16.msra.mxu1 %v12384_v20 }
 0x84c   : > { %v8958_v32 = vpop.f32.mrb[48].mxu0 }
 0x84d   : > { %v11383_v19 = vadd.f32 %v8958_v32, %v8630_v59  ;;  %v8960_v6 = vpop.f32.mrb[49].mxu0 }
 0x84e   : > { %v11384_v7 = vadd.f32 %v8960_v6, %v8634_v23  ;;  %v8962_v12 = vpop.f32.mrb[50].mxu0 }
 0x84f   : > { %vm8965_vm11 = vcmp.ge.f32.partialorder %v11383_v19, 0.0  ;;  %v8967_v51 = vmul.f32 0.2, %v11383_v19  ;;  %v8963_v37 = vpop.f32.mrb[51].mxu0 }
 0x850   : > { %vm8966_vm12 = vcmp.ge.f32.partialorder %v11384_v7, 0.0  ;;  %v8968_v50 = vmul.f32 0.2, %v11384_v7 }
 0x851   : > { %v8969_v9 = vsel %vm8965_vm11, %v11383_v19, %v8967_v51 }
 0x852   : > { %v8970_v52 = vsel %vm8966_vm12, %v11384_v7, %v8968_v50  ;;  %v9194_v26 = vpack.c.bf16 %v8969_v9, %v8969_v9 }
 0x853   : > { %v9195_v25 = vpack.c.bf16 %v8970_v52, %v8970_v52 }
 0x855   : > { %9525 = vmatprep.mubr.bf16.mxu1 %v9195_v25 }
 0x856   : > { %9526 = vmatmul.mubr.bf16.vlgmr.msra.gmra.mrb[184].mxu1 %v9194_v26  ;;  %v11187_v60 = vpop.f32.mrb[180].mxu1 }
 0x857   : > { %v11188_v58 = vpop.f32.mrb[181].mxu1 }
 0x858   : > { %v11189_v21 = vadd.f32 %v11188_v58, %v11187_v60  ;;  %v11190_v62 = vpop.f32.mrb[182].mxu1 }
 0x859   : > { %v11191_v56 = vpop.f32.mrb[183].mxu1 }
 0x85a   : > { %v9488_v1 = vadd.f32 %v11189_v21, %v9260_v0 }
 0x929   : > { %v11209_v34 = vpop.f32.mrb[184].mxu1 }
 0x92a   : > { %v11210_v27 = vpop.f32.mrb[185].mxu1 }
 0x92b   : > { %v11211_v5 = vadd.f32 %v11210_v27, %v11209_v34  ;;  %v11212_v15 = vpop.f32.mrb[186].mxu1 }
 0x92c   : > { %v11213_v41 = vpop.f32.mrb[187].mxu1 }
 0x92d   : > { %v9528_v55 = vadd.f32 %v11211_v5, %v9488_v1 }
 0x92f   : > { %v9533_v57 = vmul.f32 0.1, %v9528_v55  ;;  %v9534_v38 = vmul.f32 0.01, %v9528_v55 }
 0x931   : > { %v9538_v63 = vmul.f32 0.5, %v9533_v57  ;;  %9536 = vst.msk [vmem:[%s530_s25] sm:$0x1] %vm9535_vm13, %v9533_v57  ;;  %v9545_v3 = vmul.f32 2.0, %v9534_v38  ;;  %v9537_v35 = vsub.f32 -0.5, %v9534_v38 }
 0x933   : > { %v9539_v17 = vmul.f32 %v9538_v63, %v9533_v57  ;;  %v9546_v31 = vmul.f32 1.442695, %v9545_v3 }
 0x935   : > { %9541 = vrot.lane.b32.xlu0 %v9539_v17, %s12522_s17  ;;  %12385 = vpow2.f32 %v9546_v31 }
 0x93f   : > { %v12386_v33 = vpop.eup %12385 }
 0x940   : > { %v9548_v16 = vmul.f32 0.5, %v12386_v33 }
 0x9a7   : > { %v9542_v10 = vpop.permute.xlu0 %9541 }
 0x9a8   : > { %v9544_v44 = vadd.f32 %v9542_v10, %v9537_v35 }
 0x9aa   : > { %v9549_v29 = vadd.f32 %v9548_v16, %v9544_v44 }
 0x9ac   : > { %9551 = vrot.lane.b32.xlu1 %v9549_v29, %s12522_s17  ;;  %s12449_s17 = scalar_lea.vmem %s12448_s29, 32 }
 0x9ad   : > { %p12451_p7 = scmp.lt.s32.totalorder %s12449_s17, %s12443_s21 }
 0x9af   : > { %p12452_p8 = por %p12451_p7, %p12450_p4 }
 0x9b1   : > { %p12453_p11 = pnand %p12452_p8, %p12446_p3 }
 0xa1e   : > { %v9552_v36 = vpop.permute.xlu1 %9551 }
 0xa1f   : > { %v9554_v30 = vsel %vm9535_vm13, %v9552_v36, 0.0 }
 0xa20   : > { %9555 = vadd.xlane.f32.xlu0 %v9554_v30 }
 0xa21   : > { %12456 = shalt.err (!%p12453_p11)
}
 0xa22   : > { %s12457_s22 = scalar_lea.hbm %s15079_s20, 16  ;;  %s12461_s15 = scalar_lea.hbm %s15204_s26, 32 }
 0xa23   : > { %p12458_p13 = scmp.ne.s32.totalorder %s15079_s20, %s12457_s22  ;;  %p12462_p6 = scmp.lt.u32.totalorder %s15079_s20, %s15204_s26 }
 0xa24   : > { %p12463_p9 = scmp.lt.u32.totalorder %s12461_s15, %s12457_s22  ;;  %p12465_p12 = scmp.lt.u32.totalorder %s12457_s22, %s15079_s20 }
 0xa25   : > { %p12459_p5 = pnand %p12458_p13, %p15205_p1 }
 0xa26   : > { %p12464_p10 = por %p12463_p9, %p12462_p6 }
 0xa27   : > { %p12460_p0 = pneg %p12459_p5 }
 0xa28   : > { %p12466_p2 = por %p12465_p12, %p12464_p10 }
 0xa2a   : > { %p12467_p3 = pnand %p12466_p2, %p12460_p0 }
 0xa2c   : > { %12470 = shalt.err (!%p12467_p3)
}
 0xa2d   : > { %11490 = dma.vmem_to_hbm [thread:$0]  (%p15205_p1), %s9578_s27, 16, %s15079_s20, %s9562_s18   ;;  %vm9559_vm14 = vcmask 0  }
 0xa2e   : > { %s15206_s29 = sld [smem:[#allocation25_spill]] }
 0xa34   : > { %s547_s17 = scalar_lea.vmem %s15206_s29, %s12726_s28 }
 0xaad   : > { %v9556_v49 = vpop.xlane.xlu0 %9555 }
 0xaae   : > { %v9558_v24 = vmul.f32 0.015625, %v9556_v49 }
 0xab0   : > { %9560 = vst.msk [vmem:[%s547_s17] sm:$0x1] %vm9559_vm14, %v9558_v24 }
 0xab1 PF: > { %s15207_s16 = sld [smem:[#allocation15_spill]]  ;;  %s15208_s25 = sld [smem:[#allocation13_spill]] }
 0xab2   : > { %s15209_s22 = sld [smem:[#allocation19_spill]] }
 0xab7   : > { %p11507_p4 = scmp.ge.s32.totalorder %s15207_s16, 2  ;;  %s9592_s15 = sand.u32 1, %s15208_s25  }
 0xab8   : > { %p15210_p7 = scmp.ne.s32.totalorder %s15209_s22, 0  ;;  %s9593_s14 = scalar_lea.sflag [#allocation6], %s9592_s15 }
 0xaba   : > { %p11500_p8 = pnand %p11507_p4, %p15210_p7 }
 0xabc   : > { %12496 = dma.done.wait (!%p11500_p8), %s9593_s14, 16  }
 0xabd   : > { %12498 = vsyncadd (!%p11500_p8), %s9593_s14, 4294967280  ;;  %s15211_s21 = sld [smem:[#allocation16_spill]]  ;;  %s15212_s20 = sld [smem:[#allocation14_spill]] }
 0xabe   : > { %s15213_s27 = sld [smem:[#allocation17_spill]]  ;;  %s15214_s18 = smov %s12505_s19 }
 0xac3   : > { %p28_p1 = scmp.ge.s32.totalorder %s15211_s21, 4   ;;  %s15215_s19 = smov %s15212_s20 }
 0xac4   : > { %s15216_s20 = smov %s15213_s27 }
 0xac5   :  { %30 = sbr.rel (!%p28_p1) target bundleno = 8 (0x8), region = 146 }
 0xacc   :  { %9603 = vsyncpa [#allocation5], 1 }
 0xacd   :  { %9605 = vsyncpa [#allocation5 + $0x1], 1 }
 0xace   :  { %9606 = vsyncpa [#allocation8], 1 }
 0xacf   :  { %9607 = vsyncpa [#allocation6], 1 }
 0xad0   :  { %9609 = vsyncpa [#allocation6 + $0x1], 1 }

</bundles_post_ra>
